<compile_context>
chip_gen: v6e
topology: v6e:2x2x1
jax: 0.10.0
libtpu: 0.0.40
codegen_flags: <defaults>
</compile_context>

<pallas_src>
import functools

import numpy as np

import jax
import jax.numpy as jnp
from jax.experimental import pallas as pl
from jax.experimental.pallas import tpu as pltpu


# Network geometry implied by the module for a (4, 16, 16) observation:
#   conv1 4->32  k5 s2 p2 : 16x16 -> 8x8
#   conv2 32->32 k3 s1    : 8x8   -> 6x6
#   maxpool 2x2 s2        : 6x6   -> 3x3
#   conv3 32->64 k3 s1    : 3x3   -> 1x1
#   fc1 1*1*64 -> 512, fc2 512 -> n_actions
_H1 = _W1 = 8
_H2 = _W2 = 6
_HP = _WP = 3
_C1, _C2, _C3 = 32, 32, 64
_K1 = 4 * 5 * 5           # conv1 im2col K = 100
_K1_PAD = 128             # pad K to 128: aligned MXU LHS, no masked vld
_NOUT_PAD = 128           # fc2 output lanes padded 4 -> 128 (unmasked store)


def _round_up(x, m):
    return (x + m - 1) // m * m


# ----------------------------------------------------------------------------
# The single fused kernel: everything is 2-D matmuls (MXU) + relu/max (VPU).
# ----------------------------------------------------------------------------
def _dqn_fused_kernel(p1_ref, w1_ref,
                      s2_ref, w2c_ref, b2_ref,
                      p4_ref,
                      t3_ref, w3c_ref, b3_ref,
                      wf1_ref, bf1_ref,
                      wf2_ref, bf2_ref,
                      out_ref):
    dot = functools.partial(jnp.dot, preferred_element_type=jnp.float32)

    # conv1 + relu:  (B*64, 128) @ (128, 32).  Bias is folded into the padded
    # K column of w1 (patch column 100 is a constant 1.0).
    h1 = jnp.maximum(dot(p1_ref[...], w1_ref[...]), 0.0)           # (R1, 32)

    # conv2 + relu: one wide weight matmul over all 9 taps (N = 288 lanes),
    # then 9 constant 0/1 row-gather matmuls accumulate the taps in f32.
    q2 = dot(h1, w2c_ref[...])                                     # (R1, 288)
    acc2 = dot(s2_ref[0], q2[:, :_C2])
    for t in range(1, 9):
        acc2 = acc2 + dot(s2_ref[t], q2[:, t * _C2:(t + 1) * _C2])
    h2 = jnp.maximum(acc2 + b2_ref[...], 0.0)                      # (R2, 32)

    # maxpool 2x2 / stride 2: elementwise max of 4 row-gathers.
    pooled = dot(p4_ref[0], h2)
    for k in range(1, 4):
        pooled = jnp.maximum(pooled, dot(p4_ref[k], h2))           # (RP, 32)

    # conv3 + relu (its 3x3 kernel covers the whole pooled 3x3 map -> 1x1).
    q3 = dot(pooled, w3c_ref[...])                                 # (RP, 576)
    acc3 = dot(t3_ref[0], q3[:, :_C3])
    for t in range(1, 9):
        acc3 = acc3 + dot(t3_ref[t], q3[:, t * _C3:(t + 1) * _C3])
    h3 = jnp.maximum(acc3 + b3_ref[...], 0.0)                      # (BP, 64)

    # fc1 + relu, fc2.  BP >= 8 rows and 128 output lanes -> unmasked,
    # lane-dense store.
    h4 = jnp.maximum(dot(h3, wf1_ref[...]) + bf1_ref[...], 0.0)    # (BP, 512)
    out_ref[...] = dot(h4, wf2_ref[...]) + bf2_ref[...]            # (BP, 128)


# ----------------------------------------------------------------------------
# One-time parameter packing (pre-transposed / padded weights + constant
# gather matrices).  Pure host-side numpy; runs once, not in the hot path.
# ----------------------------------------------------------------------------
def _pack_params(params, batch):
    B = int(batch)
    f32 = np.float32
    c1w = np.asarray(params["conv1_w"], f32)   # (32, 4, 5, 5)
    c2w = np.asarray(params["conv2_w"], f32)   # (32, 32, 3, 3)
    c3w = np.asarray(params["conv3_w"], f32)   # (64, 32, 3, 3)

    # conv1 im2col weight: column order (cin, kh, kw) to match
    # lax.conv_general_dilated_patches; K padded 100 -> 128; bias in row 100.
    w1 = np.zeros((_K1_PAD, _C1), f32)
    w1[:_K1] = c1w.reshape(_C1, _K1).T
    w1[_K1] = np.asarray(params["conv1_b"], f32)

    # conv2 / conv3: all 9 taps' (cin, cout) matrices concatenated on lanes,
    # tap order (di, dj) matching the gather matrices below.
    w2c = np.concatenate(
        [c2w[:, :, di, dj].T for di in range(3) for dj in range(3)], axis=1)
    w3c = np.concatenate(
        [c3w[:, :, di, dj].T for di in range(3) for dj in range(3)], axis=1)

    # Constant 0/1 row-gather matrices.  Row orderings:
    #   h1 rows   : b*64 + i*8 + j   (conv1 output, 8x8 grid)
    #   h2 rows   : b*36 + i*6 + j   (conv2 output, 6x6 grid)
    #   pool rows : b*9  + i*3 + j   (pooled,       3x3 grid)
    R1 = B * _H1 * _W1
    R2 = _round_up(B * _H2 * _W2, 8)
    RP = _round_up(B * _HP * _WP, 8)
    BP = max(_round_up(B, 8), 8)

    s2 = np.zeros((9, R2, R1), f32)    # conv2 im2col gather from h1
    p4 = np.zeros((4, RP, R2), f32)    # maxpool gather from h2
    t3 = np.zeros((9, BP, RP), f32)    # conv3 im2col gather from pooled
    for b in range(B):
        for i in range(_H2):
            for j in range(_W2):
                r2 = b * 36 + i * 6 + j
                for di in range(3):
                    for dj in range(3):
                        s2[di * 3 + dj, r2,
                           b * 64 + (i + di) * 8 + (j + dj)] = 1.0
        for i in range(_HP):
            for j in range(_WP):
                rp = b * 9 + i * 3 + j
                for u in range(2):
                    for v in range(2):
                        p4[u * 2 + v, rp,
                           b * 36 + (2 * i + u) * 6 + (2 * j + v)] = 1.0
        for di in range(3):
            for dj in range(3):
                t3[di * 3 + dj, b, b * 9 + di * 3 + dj] = 1.0

    n_actions = int(np.asarray(params["fc2_w"]).shape[0])
    wf1 = np.asarray(params["fc1_w"], f32).T                 # (64, 512)
    wf2 = np.zeros((512, _NOUT_PAD), f32)
    wf2[:, :n_actions] = np.asarray(params["fc2_w"], f32).T
    bf2 = np.zeros((1, _NOUT_PAD), f32)
    bf2[0, :n_actions] = np.asarray(params["fc2_b"], f32)

    packed = dict(
        w1=w1,
        s2=s2, w2c=w2c, b2=np.asarray(params["conv2_b"], f32)[None, :],
        p4=p4,
        t3=t3, w3c=w3c, b3=np.asarray(params["conv3_b"], f32)[None, :],
        wf1=wf1, bf1=np.asarray(params["fc1_b"], f32)[None, :],
        wf2=wf2, bf2=bf2,
    )
    return {k: jnp.asarray(v) for k, v in packed.items()}, BP


def make_dqn_forward(params, batch_size):
    """Build a jitted forward: (B, 4, 16, 16) float32 -> (B, n_actions)."""
    B = int(batch_size)
    n_actions = int(np.asarray(params["fc2_w"]).shape[0])
    packed, BP = _pack_params(params, B)

    vmem = pl.BlockSpec(memory_space=pltpu.MemorySpace.VMEM)
    fused = pl.pallas_call(
        _dqn_fused_kernel,
        out_shape=jax.ShapeDtypeStruct((BP, _NOUT_PAD), jnp.float32),
        in_specs=[vmem] * 13,
        out_specs=vmem,
    )

    @jax.jit
    def forward(x_nchw):
        if x_nchw.ndim == 3:                        # PyTorch unsqueeze(0)
            x_nchw = x_nchw[None]
        assert x_nchw.shape == (B, 4, 16, 16), x_nchw.shape
        x = jnp.transpose(x_nchw.astype(jnp.float32), (0, 2, 3, 1))  # NHWC
        # conv1 im2col as a single XLA patch-extraction op; feature ordering
        # is (cin, kh, kw), matching the packed w1 matrix.
        patches = jax.lax.conv_general_dilated_patches(
            x, filter_shape=(5, 5), window_strides=(2, 2),
            padding=((2, 2), (2, 2)),
            dimension_numbers=("NHWC", "HWIO", "NHWC"),
            precision=jax.lax.Precision.HIGHEST)    # (B, 8, 8, 100)
        patches = patches.reshape(B * _H1 * _W1, _K1)
        # Pad K 100 -> 128; column 100 is the constant-1 bias column.
        ones = jnp.ones((B * _H1 * _W1, 1), jnp.float32)
        zeros = jnp.zeros((B * _H1 * _W1, _K1_PAD - _K1 - 1), jnp.float32)
        patches = jnp.concatenate([patches, ones, zeros], axis=1)
        out = fused(patches, packed["w1"],
                    packed["s2"], packed["w2c"], packed["b2"],
                    packed["p4"],
                    packed["t3"], packed["w3c"], packed["b3"],
                    packed["wf1"], packed["bf1"],
                    packed["wf2"], packed["bf2"])
        return out[:B, :n_actions]

    return forward


# ----------------------------------------------------------------------------
# Deterministic synthetic parameters (PyTorch layouts) + pure-JAX reference.
# ----------------------------------------------------------------------------
def init_dqn_params(key, in_h, in_w, n_actions):
    width = in_w // 2 - 2
    height = in_h // 2 - 2
    width = width // 2 - 2
    height = height // 2 - 2
    flat = width * height * 64

    ks = jax.random.split(key, 10)

    def w(k, shape, fan_in):
        return jax.random.normal(k, shape, jnp.float32) / jnp.sqrt(fan_in)

    return {
        "conv1_w": w(ks[0], (32, 4, 5, 5), 4 * 5 * 5),
        "conv1_b": 0.01 * jax.random.normal(ks[1], (32,), jnp.float32),
        "conv2_w": w(ks[2], (32, 32, 3, 3), 32 * 3 * 3),
        "conv2_b": 0.01 * jax.random.normal(ks[3], (32,), jnp.float32),
        "conv3_w": w(ks[4], (64, 32, 3, 3), 32 * 3 * 3),
        "conv3_b": 0.01 * jax.random.normal(ks[5], (64,), jnp.float32),
        "fc1_w": w(ks[6], (512, flat), flat),        # PyTorch Linear: (out, in)
        "fc1_b": 0.01 * jax.random.normal(ks[7], (512,), jnp.float32),
        "fc2_w": w(ks[8], (n_actions, 512), 512),
        "fc2_b": 0.01 * jax.random.normal(ks[9], (n_actions,), jnp.float32),
    }


def dqn_reference(params, x_nchw):
    """Pure-JAX (non-Pallas) reference of the PyTorch forward, for checking."""
    dn = ("NCHW", "OIHW", "NCHW")
    hp = jax.lax.Precision.HIGHEST
    x = x_nchw.astype(jnp.float32)
    if x.ndim == 3:
        x = x[None]
    y = jax.lax.conv_general_dilated(x, params["conv1_w"], (2, 2),
                                     ((2, 2), (2, 2)), dimension_numbers=dn,
                                     precision=hp)
    y = jax.nn.relu(y + params["conv1_b"][None, :, None, None])
    y = jax.lax.conv_general_dilated(y, params["conv2_w"], (1, 1), "VALID",
                                     dimension_numbers=dn, precision=hp)
    y = jax.nn.relu(y + params["conv2_b"][None, :, None, None])
    y = jax.lax.reduce_window(y, -jnp.inf, jax.lax.max,
                              (1, 1, 2, 2), (1, 1, 2, 2), "VALID")
    y = jax.lax.conv_general_dilated(y, params["conv3_w"], (1, 1), "VALID",
                                     dimension_numbers=dn, precision=hp)
    y = jax.nn.relu(y + params["conv3_b"][None, :, None, None])
    y = y.reshape(y.shape[0], -1)
    y = jax.nn.relu(jnp.dot(y, params["fc1_w"].T, precision=hp)
                    + params["fc1_b"])
    return jnp.dot(y, params["fc2_w"].T, precision=hp) + params["fc2_b"]


if __name__ == "__main__":
    key = jax.random.PRNGKey(0)
    k_param, k_input = jax.random.split(key)

    B, C, H, W = 2, 4, 16, 16
    N_ACTIONS = 4

    params = init_dqn_params(k_param, H, W, N_ACTIONS)
    x = jax.random.normal(k_input, (B, C, H, W), jnp.float32)

    # Host-side precondition (the PyTorch `torch.any` guard), kept OUT of the
    # jitted hot path so the forward has no device->host sync.
    assert bool(jnp.any(x)), "Input is empty"

    forward = make_dqn_forward(params, batch_size=B)
    q_values = jax.block_until_ready(forward(x))

    assert q_values.shape == (B, N_ACTIONS), q_values.shape
    assert q_values.dtype == jnp.float32
    assert bool(jnp.all(jnp.isfinite(q_values)))

    # Numerical check against the pure-JAX reference.
    q_ref = jax.block_until_ready(dqn_reference(params, x))
    np.testing.assert_allclose(np.asarray(q_values), np.asarray(q_ref),
                               rtol=2e-2, atol=2e-2)

    print("KERNEL_OK")
</pallas_src>

<mosaic_0001>
module attributes {stable_mosaic.version = 11 : i64} {
  func.func @_dqn_fused_kernel(%arg0: memref<128x128xf32, #tpu.memory_space<vmem>>, %arg1: memref<128x32xf32, #tpu.memory_space<vmem>>, %arg2: memref<9x72x128xf32, #tpu.memory_space<vmem>>, %arg3: memref<32x288xf32, #tpu.memory_space<vmem>>, %arg4: memref<1x32xf32, #tpu.memory_space<vmem>>, %arg5: memref<4x24x72xf32, #tpu.memory_space<vmem>>, %arg6: memref<9x8x24xf32, #tpu.memory_space<vmem>>, %arg7: memref<32x576xf32, #tpu.memory_space<vmem>>, %arg8: memref<1x64xf32, #tpu.memory_space<vmem>>, %arg9: memref<64x512xf32, #tpu.memory_space<vmem>>, %arg10: memref<1x512xf32, #tpu.memory_space<vmem>>, %arg11: memref<512x128xf32, #tpu.memory_space<vmem>>, %arg12: memref<1x128xf32, #tpu.memory_space<vmem>>, %arg13: memref<8x128xf32, #tpu.memory_space<vmem>>) attributes {dimension_semantics = [], scalar_prefetch = 0 : i64, scratch_operands = 0 : i64, tpu.core_type = #tpu.core_type<tc>} {
    %c0 = arith.constant 0 : index
    %c0_0 = arith.constant 0 : index
    %0 = vector.load %arg0[%c0, %c0_0] : memref<128x128xf32, #tpu.memory_space<vmem>>, vector<128x128xf32>
    %c0_1 = arith.constant 0 : index
    %c0_2 = arith.constant 0 : index
    %1 = vector.load %arg1[%c0_1, %c0_2] : memref<128x32xf32, #tpu.memory_space<vmem>>, vector<128x32xf32>
    %cst = arith.constant dense<0.000000e+00> : vector<128x32xf32>
    %2 = tpu.matmul %0, %1, %cst {dimension_numbers = #tpu.dot_dimension_numbers<[1], [0], [0], [1], [0, 0, 1, 1], [], []>} : vector<128x128xf32>, vector<128x32xf32>, vector<128x32xf32> -> vector<128x32xf32>
    %cst_3 = arith.constant 0.000000e+00 : f32
    %3 = vector.broadcast %cst_3 : f32 to vector<128x32xf32>
    %4 = arith.maximumf %2, %3 : vector<128x32xf32>
    %c0_4 = arith.constant 0 : index
    %c0_5 = arith.constant 0 : index
    %5 = vector.load %arg3[%c0_4, %c0_5] : memref<32x288xf32, #tpu.memory_space<vmem>>, vector<32x288xf32>
    %cst_6 = arith.constant dense<0.000000e+00> : vector<128x288xf32>
    %6 = tpu.matmul %4, %5, %cst_6 {dimension_numbers = #tpu.dot_dimension_numbers<[1], [0], [0], [1], [0, 0, 1, 1], [], []>} : vector<128x32xf32>, vector<32x288xf32>, vector<128x288xf32> -> vector<128x288xf32>
    %c0_7 = arith.constant 0 : index
    %c0_8 = arith.constant 0 : index
    %c0_9 = arith.constant 0 : index
    %7 = vector.load %arg2[%c0_7, %c0_8, %c0_9] : memref<9x72x128xf32, #tpu.memory_space<vmem>>, vector<1x72x128xf32>
    %8 = vector.shape_cast %7 : vector<1x72x128xf32> to vector<72x128xf32>
    %9 = vector.extract_strided_slice %6 {offsets = [0, 0], sizes = [128, 32], strides = [1, 1]} : vector<128x288xf32> to vector<128x32xf32>
    %cst_10 = arith.constant dense<0.000000e+00> : vector<72x32xf32>
    %10 = tpu.matmul %8, %9, %cst_10 {dimension_numbers = #tpu.dot_dimension_numbers<[1], [0], [0], [1], [0, 0, 1, 1], [], []>} : vector<72x128xf32>, vector<128x32xf32>, vector<72x32xf32> -> vector<72x32xf32>
    %c1 = arith.constant 1 : index
    %c0_11 = arith.constant 0 : index
    %c0_12 = arith.constant 0 : index
    %11 = vector.load %arg2[%c1, %c0_11, %c0_12] : memref<9x72x128xf32, #tpu.memory_space<vmem>>, vector<1x72x128xf32>
    %12 = vector.shape_cast %11 : vector<1x72x128xf32> to vector<72x128xf32>
    %13 = vector.extract_strided_slice %6 {offsets = [0, 32], sizes = [128, 32], strides = [1, 1]} : vector<128x288xf32> to vector<128x32xf32>
    %cst_13 = arith.constant dense<0.000000e+00> : vector<72x32xf32>
    %14 = tpu.matmul %12, %13, %cst_13 {dimension_numbers = #tpu.dot_dimension_numbers<[1], [0], [0], [1], [0, 0, 1, 1], [], []>} : vector<72x128xf32>, vector<128x32xf32>, vector<72x32xf32> -> vector<72x32xf32>
    %15 = arith.addf %10, %14 : vector<72x32xf32>
    %c2 = arith.constant 2 : index
    %c0_14 = arith.constant 0 : index
    %c0_15 = arith.constant 0 : index
    %16 = vector.load %arg2[%c2, %c0_14, %c0_15] : memref<9x72x128xf32, #tpu.memory_space<vmem>>, vector<1x72x128xf32>
    %17 = vector.shape_cast %16 : vector<1x72x128xf32> to vector<72x128xf32>
    %18 = vector.extract_strided_slice %6 {offsets = [0, 64], sizes = [128, 32], strides = [1, 1]} : vector<128x288xf32> to vector<128x32xf32>
    %cst_16 = arith.constant dense<0.000000e+00> : vector<72x32xf32>
    %19 = tpu.matmul %17, %18, %cst_16 {dimension_numbers = #tpu.dot_dimension_numbers<[1], [0], [0], [1], [0, 0, 1, 1], [], []>} : vector<72x128xf32>, vector<128x32xf32>, vector<72x32xf32> -> vector<72x32xf32>
    %20 = arith.addf %15, %19 : vector<72x32xf32>
    %c3 = arith.constant 3 : index
    %c0_17 = arith.constant 0 : index
    %c0_18 = arith.constant 0 : index
    %21 = vector.load %arg2[%c3, %c0_17, %c0_18] : memref<9x72x128xf32, #tpu.memory_space<vmem>>, vector<1x72x128xf32>
    %22 = vector.shape_cast %21 : vector<1x72x128xf32> to vector<72x128xf32>
    %23 = vector.extract_strided_slice %6 {offsets = [0, 96], sizes = [128, 32], strides = [1, 1]} : vector<128x288xf32> to vector<128x32xf32>
    %cst_19 = arith.constant dense<0.000000e+00> : vector<72x32xf32>
    %24 = tpu.matmul %22, %23, %cst_19 {dimension_numbers = #tpu.dot_dimension_numbers<[1], [0], [0], [1], [0, 0, 1, 1], [], []>} : vector<72x128xf32>, vector<128x32xf32>, vector<72x32xf32> -> vector<72x32xf32>
    %25 = arith.addf %20, %24 : vector<72x32xf32>
    %c4 = arith.constant 4 : index
    %c0_20 = arith.constant 0 : index
    %c0_21 = arith.constant 0 : index
    %26 = vector.load %arg2[%c4, %c0_20, %c0_21] : memref<9x72x128xf32, #tpu.memory_space<vmem>>, vector<1x72x128xf32>
    %27 = vector.shape_cast %26 : vector<1x72x128xf32> to vector<72x128xf32>
    %28 = vector.extract_strided_slice %6 {offsets = [0, 128], sizes = [128, 32], strides = [1, 1]} : vector<128x288xf32> to vector<128x32xf32>
    %cst_22 = arith.constant dense<0.000000e+00> : vector<72x32xf32>
    %29 = tpu.matmul %27, %28, %cst_22 {dimension_numbers = #tpu.dot_dimension_numbers<[1], [0], [0], [1], [0, 0, 1, 1], [], []>} : vector<72x128xf32>, vector<128x32xf32>, vector<72x32xf32> -> vector<72x32xf32>
    %30 = arith.addf %25, %29 : vector<72x32xf32>
    %c5 = arith.constant 5 : index
    %c0_23 = arith.constant 0 : index
    %c0_24 = arith.constant 0 : index
    %31 = vector.load %arg2[%c5, %c0_23, %c0_24] : memref<9x72x128xf32, #tpu.memory_space<vmem>>, vector<1x72x128xf32>
    %32 = vector.shape_cast %31 : vector<1x72x128xf32> to vector<72x128xf32>
    %33 = vector.extract_strided_slice %6 {offsets = [0, 160], sizes = [128, 32], strides = [1, 1]} : vector<128x288xf32> to vector<128x32xf32>
    %cst_25 = arith.constant dense<0.000000e+00> : vector<72x32xf32>
    %34 = tpu.matmul %32, %33, %cst_25 {dimension_numbers = #tpu.dot_dimension_numbers<[1], [0], [0], [1], [0, 0, 1, 1], [], []>} : vector<72x128xf32>, vector<128x32xf32>, vector<72x32xf32> -> vector<72x32xf32>
    %35 = arith.addf %30, %34 : vector<72x32xf32>
    %c6 = arith.constant 6 : index
    %c0_26 = arith.constant 0 : index
    %c0_27 = arith.constant 0 : index
    %36 = vector.load %arg2[%c6, %c0_26, %c0_27] : memref<9x72x128xf32, #tpu.memory_space<vmem>>, vector<1x72x128xf32>
    %37 = vector.shape_cast %36 : vector<1x72x128xf32> to vector<72x128xf32>
    %38 = vector.extract_strided_slice %6 {offsets = [0, 192], sizes = [128, 32], strides = [1, 1]} : vector<128x288xf32> to vector<128x32xf32>
    %cst_28 = arith.constant dense<0.000000e+00> : vector<72x32xf32>
    %39 = tpu.matmul %37, %38, %cst_28 {dimension_numbers = #tpu.dot_dimension_numbers<[1], [0], [0], [1], [0, 0, 1, 1], [], []>} : vector<72x128xf32>, vector<128x32xf32>, vector<72x32xf32> -> vector<72x32xf32>
    %40 = arith.addf %35, %39 : vector<72x32xf32>
    %c7 = arith.constant 7 : index
    %c0_29 = arith.constant 0 : index
    %c0_30 = arith.constant 0 : index
    %41 = vector.load %arg2[%c7, %c0_29, %c0_30] : memref<9x72x128xf32, #tpu.memory_space<vmem>>, vector<1x72x128xf32>
    %42 = vector.shape_cast %41 : vector<1x72x128xf32> to vector<72x128xf32>
    %43 = vector.extract_strided_slice %6 {offsets = [0, 224], sizes = [128, 32], strides = [1, 1]} : vector<128x288xf32> to vector<128x32xf32>
    %cst_31 = arith.constant dense<0.000000e+00> : vector<72x32xf32>
    %44 = tpu.matmul %42, %43, %cst_31 {dimension_numbers = #tpu.dot_dimension_numbers<[1], [0], [0], [1], [0, 0, 1, 1], [], []>} : vector<72x128xf32>, vector<128x32xf32>, vector<72x32xf32> -> vector<72x32xf32>
    %45 = arith.addf %40, %44 : vector<72x32xf32>
    %c8 = arith.constant 8 : index
    %c0_32 = arith.constant 0 : index
    %c0_33 = arith.constant 0 : index
    %46 = vector.load %arg2[%c8, %c0_32, %c0_33] : memref<9x72x128xf32, #tpu.memory_space<vmem>>, vector<1x72x128xf32>
    %47 = vector.shape_cast %46 : vector<1x72x128xf32> to vector<72x128xf32>
    %48 = vector.extract_strided_slice %6 {offsets = [0, 256], sizes = [128, 32], strides = [1, 1]} : vector<128x288xf32> to vector<128x32xf32>
    %cst_34 = arith.constant dense<0.000000e+00> : vector<72x32xf32>
    %49 = tpu.matmul %47, %48, %cst_34 {dimension_numbers = #tpu.dot_dimension_numbers<[1], [0], [0], [1], [0, 0, 1, 1], [], []>} : vector<72x128xf32>, vector<128x32xf32>, vector<72x32xf32> -> vector<72x32xf32>
    %50 = arith.addf %45, %49 : vector<72x32xf32>
    %c0_35 = arith.constant 0 : index
    %c0_36 = arith.constant 0 : index
    %51 = vector.load %arg4[%c0_35, %c0_36] : memref<1x32xf32, #tpu.memory_space<vmem>>, vector<1x32xf32>
    %52 = vector.broadcast %51 : vector<1x32xf32> to vector<72x32xf32>
    %53 = arith.addf %50, %52 : vector<72x32xf32>
    %cst_37 = arith.constant 0.000000e+00 : f32
    %54 = vector.broadcast %cst_37 : f32 to vector<72x32xf32>
    %55 = arith.maximumf %53, %54 : vector<72x32xf32>
    %c0_38 = arith.constant 0 : index
    %c0_39 = arith.constant 0 : index
    %c0_40 = arith.constant 0 : index
    %56 = vector.load %arg5[%c0_38, %c0_39, %c0_40] : memref<4x24x72xf32, #tpu.memory_space<vmem>>, vector<1x24x72xf32>
    %57 = vector.shape_cast %56 : vector<1x24x72xf32> to vector<24x72xf32>
    %cst_41 = arith.constant dense<0.000000e+00> : vector<24x32xf32>
    %58 = tpu.matmul %57, %55, %cst_41 {dimension_numbers = #tpu.dot_dimension_numbers<[1], [0], [0], [1], [0, 0, 1, 1], [], []>} : vector<24x72xf32>, vector<72x32xf32>, vector<24x32xf32> -> vector<24x32xf32>
    %c1_42 = arith.constant 1 : index
    %c0_43 = arith.constant 0 : index
    %c0_44 = arith.constant 0 : index
    %59 = vector.load %arg5[%c1_42, %c0_43, %c0_44] : memref<4x24x72xf32, #tpu.memory_space<vmem>>, vector<1x24x72xf32>
    %60 = vector.shape_cast %59 : vector<1x24x72xf32> to vector<24x72xf32>
    %cst_45 = arith.constant dense<0.000000e+00> : vector<24x32xf32>
    %61 = tpu.matmul %60, %55, %cst_45 {dimension_numbers = #tpu.dot_dimension_numbers<[1], [0], [0], [1], [0, 0, 1, 1], [], []>} : vector<24x72xf32>, vector<72x32xf32>, vector<24x32xf32> -> vector<24x32xf32>
    %62 = arith.maximumf %58, %61 : vector<24x32xf32>
    %c2_46 = arith.constant 2 : index
    %c0_47 = arith.constant 0 : index
    %c0_48 = arith.constant 0 : index
    %63 = vector.load %arg5[%c2_46, %c0_47, %c0_48] : memref<4x24x72xf32, #tpu.memory_space<vmem>>, vector<1x24x72xf32>
    %64 = vector.shape_cast %63 : vector<1x24x72xf32> to vector<24x72xf32>
    %cst_49 = arith.constant dense<0.000000e+00> : vector<24x32xf32>
    %65 = tpu.matmul %64, %55, %cst_49 {dimension_numbers = #tpu.dot_dimension_numbers<[1], [0], [0], [1], [0, 0, 1, 1], [], []>} : vector<24x72xf32>, vector<72x32xf32>, vector<24x32xf32> -> vector<24x32xf32>
    %66 = arith.maximumf %62, %65 : vector<24x32xf32>
    %c3_50 = arith.constant 3 : index
    %c0_51 = arith.constant 0 : index
    %c0_52 = arith.constant 0 : index
    %67 = vector.load %arg5[%c3_50, %c0_51, %c0_52] : memref<4x24x72xf32, #tpu.memory_space<vmem>>, vector<1x24x72xf32>
    %68 = vector.shape_cast %67 : vector<1x24x72xf32> to vector<24x72xf32>
    %cst_53 = arith.constant dense<0.000000e+00> : vector<24x32xf32>
    %69 = tpu.matmul %68, %55, %cst_53 {dimension_numbers = #tpu.dot_dimension_numbers<[1], [0], [0], [1], [0, 0, 1, 1], [], []>} : vector<24x72xf32>, vector<72x32xf32>, vector<24x32xf32> -> vector<24x32xf32>
    %70 = arith.maximumf %66, %69 : vector<24x32xf32>
    %c0_54 = arith.constant 0 : index
    %c0_55 = arith.constant 0 : index
    %71 = vector.load %arg7[%c0_54, %c0_55] : memref<32x576xf32, #tpu.memory_space<vmem>>, vector<32x576xf32>
    %cst_56 = arith.constant dense<0.000000e+00> : vector<24x576xf32>
    %72 = tpu.matmul %70, %71, %cst_56 {dimension_numbers = #tpu.dot_dimension_numbers<[1], [0], [0], [1], [0, 0, 1, 1], [], []>} : vector<24x32xf32>, vector<32x576xf32>, vector<24x576xf32> -> vector<24x576xf32>
    %c0_57 = arith.constant 0 : index
    %c0_58 = arith.constant 0 : index
    %c0_59 = arith.constant 0 : index
    %73 = vector.load %arg6[%c0_57, %c0_58, %c0_59] : memref<9x8x24xf32, #tpu.memory_space<vmem>>, vector<1x8x24xf32>
    %74 = vector.shape_cast %73 : vector<1x8x24xf32> to vector<8x24xf32>
    %75 = vector.extract_strided_slice %72 {offsets = [0, 0], sizes = [24, 64], strides = [1, 1]} : vector<24x576xf32> to vector<24x64xf32>
    %cst_60 = arith.constant dense<0.000000e+00> : vector<8x64xf32>
    %76 = tpu.matmul %74, %75, %cst_60 {dimension_numbers = #tpu.dot_dimension_numbers<[1], [0], [0], [1], [0, 0, 1, 1], [], []>} : vector<8x24xf32>, vector<24x64xf32>, vector<8x64xf32> -> vector<8x64xf32>
    %c1_61 = arith.constant 1 : index
    %c0_62 = arith.constant 0 : index
    %c0_63 = arith.constant 0 : index
    %77 = vector.load %arg6[%c1_61, %c0_62, %c0_63] : memref<9x8x24xf32, #tpu.memory_space<vmem>>, vector<1x8x24xf32>
    %78 = vector.shape_cast %77 : vector<1x8x24xf32> to vector<8x24xf32>
    %79 = vector.extract_strided_slice %72 {offsets = [0, 64], sizes = [24, 64], strides = [1, 1]} : vector<24x576xf32> to vector<24x64xf32>
    %cst_64 = arith.constant dense<0.000000e+00> : vector<8x64xf32>
    %80 = tpu.matmul %78, %79, %cst_64 {dimension_numbers = #tpu.dot_dimension_numbers<[1], [0], [0], [1], [0, 0, 1, 1], [], []>} : vector<8x24xf32>, vector<24x64xf32>, vector<8x64xf32> -> vector<8x64xf32>
    %81 = arith.addf %76, %80 : vector<8x64xf32>
    %c2_65 = arith.constant 2 : index
    %c0_66 = arith.constant 0 : index
    %c0_67 = arith.constant 0 : index
    %82 = vector.load %arg6[%c2_65, %c0_66, %c0_67] : memref<9x8x24xf32, #tpu.memory_space<vmem>>, vector<1x8x24xf32>
    %83 = vector.shape_cast %82 : vector<1x8x24xf32> to vector<8x24xf32>
    %84 = vector.extract_strided_slice %72 {offsets = [0, 128], sizes = [24, 64], strides = [1, 1]} : vector<24x576xf32> to vector<24x64xf32>
    %cst_68 = arith.constant dense<0.000000e+00> : vector<8x64xf32>
    %85 = tpu.matmul %83, %84, %cst_68 {dimension_numbers = #tpu.dot_dimension_numbers<[1], [0], [0], [1], [0, 0, 1, 1], [], []>} : vector<8x24xf32>, vector<24x64xf32>, vector<8x64xf32> -> vector<8x64xf32>
    %86 = arith.addf %81, %85 : vector<8x64xf32>
    %c3_69 = arith.constant 3 : index
    %c0_70 = arith.constant 0 : index
    %c0_71 = arith.constant 0 : index
    %87 = vector.load %arg6[%c3_69, %c0_70, %c0_71] : memref<9x8x24xf32, #tpu.memory_space<vmem>>, vector<1x8x24xf32>
    %88 = vector.shape_cast %87 : vector<1x8x24xf32> to vector<8x24xf32>
    %89 = vector.extract_strided_slice %72 {offsets = [0, 192], sizes = [24, 64], strides = [1, 1]} : vector<24x576xf32> to vector<24x64xf32>
    %cst_72 = arith.constant dense<0.000000e+00> : vector<8x64xf32>
    %90 = tpu.matmul %88, %89, %cst_72 {dimension_numbers = #tpu.dot_dimension_numbers<[1], [0], [0], [1], [0, 0, 1, 1], [], []>} : vector<8x24xf32>, vector<24x64xf32>, vector<8x64xf32> -> vector<8x64xf32>
    %91 = arith.addf %86, %90 : vector<8x64xf32>
    %c4_73 = arith.constant 4 : index
    %c0_74 = arith.constant 0 : index
    %c0_75 = arith.constant 0 : index
    %92 = vector.load %arg6[%c4_73, %c0_74, %c0_75] : memref<9x8x24xf32, #tpu.memory_space<vmem>>, vector<1x8x24xf32>
    %93 = vector.shape_cast %92 : vector<1x8x24xf32> to vector<8x24xf32>
    %94 = vector.extract_strided_slice %72 {offsets = [0, 256], sizes = [24, 64], strides = [1, 1]} : vector<24x576xf32> to vector<24x64xf32>
    %cst_76 = arith.constant dense<0.000000e+00> : vector<8x64xf32>
    %95 = tpu.matmul %93, %94, %cst_76 {dimension_numbers = #tpu.dot_dimension_numbers<[1], [0], [0], [1], [0, 0, 1, 1], [], []>} : vector<8x24xf32>, vector<24x64xf32>, vector<8x64xf32> -> vector<8x64xf32>
    %96 = arith.addf %91, %95 : vector<8x64xf32>
    %c5_77 = arith.constant 5 : index
    %c0_78 = arith.constant 0 : index
    %c0_79 = arith.constant 0 : index
    %97 = vector.load %arg6[%c5_77, %c0_78, %c0_79] : memref<9x8x24xf32, #tpu.memory_space<vmem>>, vector<1x8x24xf32>
    %98 = vector.shape_cast %97 : vector<1x8x24xf32> to vector<8x24xf32>
    %99 = vector.extract_strided_slice %72 {offsets = [0, 320], sizes = [24, 64], strides = [1, 1]} : vector<24x576xf32> to vector<24x64xf32>
    %cst_80 = arith.constant dense<0.000000e+00> : vector<8x64xf32>
    %100 = tpu.matmul %98, %99, %cst_80 {dimension_numbers = #tpu.dot_dimension_numbers<[1], [0], [0], [1], [0, 0, 1, 1], [], []>} : vector<8x24xf32>, vector<24x64xf32>, vector<8x64xf32> -> vector<8x64xf32>
    %101 = arith.addf %96, %100 : vector<8x64xf32>
    %c6_81 = arith.constant 6 : index
    %c0_82 = arith.constant 0 : index
    %c0_83 = arith.constant 0 : index
    %102 = vector.load %arg6[%c6_81, %c0_82, %c0_83] : memref<9x8x24xf32, #tpu.memory_space<vmem>>, vector<1x8x24xf32>
    %103 = vector.shape_cast %102 : vector<1x8x24xf32> to vector<8x24xf32>
    %104 = vector.extract_strided_slice %72 {offsets = [0, 384], sizes = [24, 64], strides = [1, 1]} : vector<24x576xf32> to vector<24x64xf32>
    %cst_84 = arith.constant dense<0.000000e+00> : vector<8x64xf32>
    %105 = tpu.matmul %103, %104, %cst_84 {dimension_numbers = #tpu.dot_dimension_numbers<[1], [0], [0], [1], [0, 0, 1, 1], [], []>} : vector<8x24xf32>, vector<24x64xf32>, vector<8x64xf32> -> vector<8x64xf32>
    %106 = arith.addf %101, %105 : vector<8x64xf32>
    %c7_85 = arith.constant 7 : index
    %c0_86 = arith.constant 0 : index
    %c0_87 = arith.constant 0 : index
    %107 = vector.load %arg6[%c7_85, %c0_86, %c0_87] : memref<9x8x24xf32, #tpu.memory_space<vmem>>, vector<1x8x24xf32>
    %108 = vector.shape_cast %107 : vector<1x8x24xf32> to vector<8x24xf32>
    %109 = vector.extract_strided_slice %72 {offsets = [0, 448], sizes = [24, 64], strides = [1, 1]} : vector<24x576xf32> to vector<24x64xf32>
    %cst_88 = arith.constant dense<0.000000e+00> : vector<8x64xf32>
    %110 = tpu.matmul %108, %109, %cst_88 {dimension_numbers = #tpu.dot_dimension_numbers<[1], [0], [0], [1], [0, 0, 1, 1], [], []>} : vector<8x24xf32>, vector<24x64xf32>, vector<8x64xf32> -> vector<8x64xf32>
    %111 = arith.addf %106, %110 : vector<8x64xf32>
    %c8_89 = arith.constant 8 : index
    %c0_90 = arith.constant 0 : index
    %c0_91 = arith.constant 0 : index
    %112 = vector.load %arg6[%c8_89, %c0_90, %c0_91] : memref<9x8x24xf32, #tpu.memory_space<vmem>>, vector<1x8x24xf32>
    %113 = vector.shape_cast %112 : vector<1x8x24xf32> to vector<8x24xf32>
    %114 = vector.extract_strided_slice %72 {offsets = [0, 512], sizes = [24, 64], strides = [1, 1]} : vector<24x576xf32> to vector<24x64xf32>
    %cst_92 = arith.constant dense<0.000000e+00> : vector<8x64xf32>
    %115 = tpu.matmul %113, %114, %cst_92 {dimension_numbers = #tpu.dot_dimension_numbers<[1], [0], [0], [1], [0, 0, 1, 1], [], []>} : vector<8x24xf32>, vector<24x64xf32>, vector<8x64xf32> -> vector<8x64xf32>
    %116 = arith.addf %111, %115 : vector<8x64xf32>
    %c0_93 = arith.constant 0 : index
    %c0_94 = arith.constant 0 : index
    %117 = vector.load %arg8[%c0_93, %c0_94] : memref<1x64xf32, #tpu.memory_space<vmem>>, vector<1x64xf32>
    %118 = vector.broadcast %117 : vector<1x64xf32> to vector<8x64xf32>
    %119 = arith.addf %116, %118 : vector<8x64xf32>
    %cst_95 = arith.constant 0.000000e+00 : f32
    %120 = vector.broadcast %cst_95 : f32 to vector<8x64xf32>
    %121 = arith.maximumf %119, %120 : vector<8x64xf32>
    %c0_96 = arith.constant 0 : index
    %c0_97 = arith.constant 0 : index
    %122 = vector.load %arg9[%c0_96, %c0_97] : memref<64x512xf32, #tpu.memory_space<vmem>>, vector<64x512xf32>
    %cst_98 = arith.constant dense<0.000000e+00> : vector<8x512xf32>
    %123 = tpu.matmul %121, %122, %cst_98 {dimension_numbers = #tpu.dot_dimension_numbers<[1], [0], [0], [1], [0, 0, 1, 1], [], []>} : vector<8x64xf32>, vector<64x512xf32>, vector<8x512xf32> -> vector<8x512xf32>
    %c0_99 = arith.constant 0 : index
    %c0_100 = arith.constant 0 : index
    %124 = vector.load %arg10[%c0_99, %c0_100] : memref<1x512xf32, #tpu.memory_space<vmem>>, vector<1x512xf32>
    %125 = vector.broadcast %124 : vector<1x512xf32> to vector<8x512xf32>
    %126 = arith.addf %123, %125 : vector<8x512xf32>
    %cst_101 = arith.constant 0.000000e+00 : f32
    %127 = vector.broadcast %cst_101 : f32 to vector<8x512xf32>
    %128 = arith.maximumf %126, %127 : vector<8x512xf32>
    %c0_102 = arith.constant 0 : index
    %c0_103 = arith.constant 0 : index
    %129 = vector.load %arg11[%c0_102, %c0_103] : memref<512x128xf32, #tpu.memory_space<vmem>>, vector<512x128xf32>
    %cst_104 = arith.constant dense<0.000000e+00> : vector<8x128xf32>
    %130 = tpu.matmul %128, %129, %cst_104 {dimension_numbers = #tpu.dot_dimension_numbers<[1], [0], [0], [1], [0, 0, 1, 1], [], []>} : vector<8x512xf32>, vector<512x128xf32>, vector<8x128xf32> -> vector<8x128xf32>
    %c0_105 = arith.constant 0 : index
    %c0_106 = arith.constant 0 : index
    %131 = vector.load %arg12[%c0_105, %c0_106] : memref<1x128xf32, #tpu.memory_space<vmem>>, vector<1x128xf32>
    %132 = vector.broadcast %131 : vector<1x128xf32> to vector<8x128xf32>
    %133 = arith.addf %130, %132 : vector<8x128xf32>
    %c0_107 = arith.constant 0 : index
    %c0_108 = arith.constant 0 : index
    %134 = vector.load %arg13[%c0_107, %c0_108] : memref<8x128xf32, #tpu.memory_space<vmem>>, vector<8x128xf32>
    tpu.vector_store %arg13[%c0_107, %c0_108], %133 {strides = array<i32>} : memref<8x128xf32, #tpu.memory_space<vmem>>, vector<8x128xf32>,
    return
  }
}

</mosaic_0001>

<bundles_post_ra>
// kernel: forward.1
= control target key start
LH: loop header
LB: loop body
LE: loop exit
PB: predicated region body
PF: predicated region fallthrough
CT: control target
= control target key end

     0   :  { %v5330_v44 = vmov 0.0   ;;  %vm249_vm0 = vcmask 261120   ;;  %s5332_s24 = smov 64   ;;  %vm5333_vm1 = vmmov 0   ;;  %s5334_s29 = smov 32   ;;  %vm2094_vm2 = vcmask 588800   ;;  %s7304_s1 = inlined_call_operand.vmem [shape: f32[128,32], index: 1, kind: input, shape index: {}]   ;;  %s7305_s0 = inlined_call_operand.vmem [shape: f32[128,128], index: 0, kind: input, shape index: {}]   ;;  %s7306_s3 = inlined_call_operand.vmem [shape: f32[32,288], index: 3, kind: input, shape index: {}]   ;;  %s7307_s2 = inlined_call_operand.vmem [shape: f32[9,72,128], index: 2, kind: input, shape index: {}]   ;;  %s7308_s4 = inlined_call_operand.vmem [shape: f32[1,32], index: 4, kind: input, shape index: {}]   ;;  %s7309_s5 = inlined_call_operand.vmem [shape: f32[4,24,72], index: 5, kind: input, shape index: {}]   ;;  %s7310_s7 = inlined_call_operand.vmem [shape: f32[32,576], index: 7, kind: input, shape index: {}]   ;;  %s7311_s6 = inlined_call_operand.vmem [shape: f32[9,8,24], index: 6, kind: input, shape index: {}]   ;;  %s7312_s9 = inlined_call_operand.vmem [shape: f32[64,512], index: 9, kind: input, shape index: {}]   ;;  %s7313_s11 = inlined_call_operand.vmem [shape: f32[512,128], index: 11, kind: input, shape index: {}]   ;;  %s7314_s8 = inlined_call_operand.vmem [shape: f32[1,64], index: 8, kind: input, shape index: {}]   ;;  %s7315_s10 = inlined_call_operand.vmem [shape: f32[1,512], index: 10, kind: input, shape index: {}]   ;;  %s7316_s12 = inlined_call_operand.vmem [shape: f32[1,128], index: 12, kind: input, shape index: {}]   ;;  %s7317_s13 = inlined_call_operand.vmem [shape: f32[8,128], index: 13, kind: output, shape index: {}]  }
   0x1   :  { %v75_v0 = vld [vmem:[%s7304_s1 + $0x78] sm:$0xff]  ;;  %v74_v1 = vld [vmem:[%s7304_s1 + $0x70] sm:$0xff]  ;;  %v73_v2 = vld [vmem:[%s7304_s1 + $0x68] sm:$0xff]  ;;  %362 = vmatprep.mubr.f32.mxu1 %v5330_v44  ;;  %vm2762_vm3 = vcmask 195584   ;;  %vm3540_vm4 = vcmask 523264  }
   0x2   :  { %4500 = vmatprep.subr.mxu0 %v75_v0  ;;  %v72_v3 = vld [vmem:[%s7304_s1 + $0x60] sm:$0xff]  ;;  %v71_v5 = vld [vmem:[%s7304_s1 + $0x58] sm:$0xff]  ;;  %v70_v6 = vld [vmem:[%s7304_s1 + $0x50] sm:$0xff] }
   0x3   :  { %4501 = vmatpush3.msra.mxu0 %v75_v0  ;;  %v44_v4 = vld [vmem:[%s7305_s0] sm:$0xff]  ;;  %v69_v7 = vld [vmem:[%s7304_s1 + $0x48] sm:$0xff]  ;;  %v247_v8 = vld [vmem:[%s7306_s3 + $0x50] sm:$0xff] }
   0x4   :  { %4502 = vmatprep.subr.mxu0 %v74_v1  ;;  %4532 = vmatprep.mubr.f32.mxu0 %v44_v4  ;;  %v246_v9 = vld [vmem:[%s7306_s3 + $0x48] sm:$0xff]  ;;  %v244_v10 = vld [vmem:[%s7306_s3 + $0x38] sm:$0xff]  ;;  %v68_v11 = vld [vmem:[%s7304_s1 + $0x40] sm:$0xff] }
   0x5   :  { %4503 = vmatpush3.msra.mxu0 %v74_v1  ;;  %322 = vmatprep.subr.mxu1 %v247_v8  ;;  %v67_v12 = vld [vmem:[%s7304_s1 + $0x38] sm:$0xff]  ;;  %v66_v13 = vld [vmem:[%s7304_s1 + $0x30] sm:$0xff]  ;;  %v65_v14 = vld [vmem:[%s7304_s1 + $0x28] sm:$0xff] }
   0x6   :  { %4504 = vmatprep.subr.mxu0 %v73_v2  ;;  %323 = vmatpush1.msra.mxu1 %v246_v9  ;;  %v64_v15 = vld [vmem:[%s7304_s1 + $0x20] sm:$0xff]  ;;  %v63_v16 = vld [vmem:[%s7304_s1 + $0x18] sm:$0xff]  ;;  %v62_v17 = vld [vmem:[%s7304_s1 + $0x10] sm:$0xff] }
   0x7   :  { %4505 = vmatpush3.msra.mxu0 %v73_v2  ;;  %324 = vmatprep.subr.mxu1 %v244_v10  ;;  %v61_v18 = vld [vmem:[%s7304_s1 + $0x8] sm:$0xff]  ;;  %v60_v19 = vld [vmem:[%s7304_s1] sm:$0xff]  ;;  %v248_v21 = vld [vmem:[%s7306_s3 + $0x58] sm:$0xff] }
   0x8   :  { %4506 = vmatprep.subr.mxu0 %v72_v3  ;;  %v45_v20 = vld [vmem:[%s7305_s0 + $0x8] sm:$0xff]  ;;  %v46_v22 = vld [vmem:[%s7305_s0 + $0x10] sm:$0xff]  ;;  %v47_v23 = vld [vmem:[%s7305_s0 + $0x18] sm:$0xff] }
   0x9   :  { %4507 = vmatpush3.msra.mxu0 %v72_v3  ;;  %v48_v24 = vld [vmem:[%s7305_s0 + $0x20] sm:$0xff]  ;;  %v49_v25 = vld [vmem:[%s7305_s0 + $0x28] sm:$0xff]  ;;  %v50_v26 = vld [vmem:[%s7305_s0 + $0x30] sm:$0xff] }
   0xa   :  { %4508 = vmatprep.subr.mxu0 %v71_v5  ;;  %v51_v27 = vld [vmem:[%s7305_s0 + $0x38] sm:$0xff]  ;;  %v52_v28 = vld [vmem:[%s7305_s0 + $0x40] sm:$0xff]  ;;  %v53_v29 = vld [vmem:[%s7305_s0 + $0x48] sm:$0xff] }
   0xb   :  { %4509 = vmatpush3.msra.mxu0 %v71_v5  ;;  %v54_v30 = vld [vmem:[%s7305_s0 + $0x50] sm:$0xff]  ;;  %v55_v31 = vld [vmem:[%s7305_s0 + $0x58] sm:$0xff]  ;;  %v56_v32 = vld [vmem:[%s7305_s0 + $0x60] sm:$0xff] }
   0xc   :  { %4510 = vmatprep.subr.mxu0 %v70_v6  ;;  %v57_v33 = vld [vmem:[%s7305_s0 + $0x68] sm:$0xff]  ;;  %v58_v34 = vld [vmem:[%s7305_s0 + $0x70] sm:$0xff]  ;;  %v59_v35 = vld [vmem:[%s7305_s0 + $0x78] sm:$0xff] }
   0xd   :  { %4511 = vmatpush3.msra.mxu0 %v70_v6  ;;  %v243_v36 = vld [vmem:[%s7306_s3 + $0x30] sm:$0xff]  ;;  %v245_v37 = vld [vmem:[%s7306_s3 + $0x40] sm:$0xff]  ;;  %v240_v39 = vld [vmem:[%s7306_s3 + $0x18] sm:$0xff] }
   0xe   :  { %4512 = vmatprep.subr.mxu0 %v69_v7  ;;  %325 = vmatpush1.msra.mxu1 %v243_v36  ;;  %v241_v38 = vld [vmem:[%s7306_s3 + $0x20] sm:$0xff]  ;;  %v242_v40 = vld [vmem:[%s7306_s3 + $0x28] sm:$0xff]  ;;  %v239_v43 = vld [vmem:[%s7306_s3 + $0x10] sm:$0xff] }
   0xf   :  { %4513 = vmatpush3.msra.mxu0 %v69_v7  ;;  %326 = vmatprep.subr.mxu1 %v241_v38  ;;  %v238_v41 = vld [vmem:[%s7306_s3 + $0x8] sm:$0xff]  ;;  %v237_v42 = vld [vmem:[%s7306_s3] sm:$0xff]  ;;  %s5331_s3 = smov 96  }
  0x10   :  { %4514 = vmatprep.subr.mxu0 %v68_v11  ;;  %327 = vmatpush1.msra.mxu1 %v240_v39 }
  0x11   :  { %4515 = vmatpush3.msra.mxu0 %v68_v11  ;;  %328 = vmatprep.subr.mxu1 %v238_v41 }
  0x12   :  { %4516 = vmatprep.subr.mxu0 %v67_v12  ;;  %329 = vmatpush1.msra.mxu1 %v237_v42 }
  0x13   :  { %4517 = vmatpush3.msra.mxu0 %v67_v12  ;;  %4588 = vmatprep.subr.mxu1 %v5330_v44 }
  0x14   :  { %4518 = vmatprep.subr.mxu0 %v66_v13 }
  0x15   :  { %4519 = vmatpush3.msra.mxu0 %v66_v13 }
  0x16   :  { %4520 = vmatprep.subr.mxu0 %v65_v14 }
  0x17   :  { %4521 = vmatpush3.msra.mxu0 %v65_v14 }
  0x18   :  { %4522 = vmatprep.subr.mxu0 %v64_v15 }
  0x19   :  { %4523 = vmatpush3.msra.mxu0 %v64_v15 }
  0x1a   :  { %4524 = vmatprep.subr.mxu0 %v63_v16 }
  0x1b   :  { %4525 = vmatpush3.msra.mxu0 %v63_v16 }
  0x1c   :  { %4526 = vmatprep.subr.mxu0 %v62_v17 }
  0x1d   :  { %4527 = vmatpush3.msra.mxu0 %v62_v17 }
  0x1e   :  { %4528 = vmatprep.subr.mxu0 %v61_v18 }
  0x1f   :  { %4529 = vmatpush3.msra.mxu0 %v61_v18 }
  0x20   :  { %4530 = vmatprep.subr.mxu0 %v60_v19 }
  0x21   :  { %4531 = vmatpush3.msra.mxu0 %v60_v19 }
  0x22   :  { %4533 = vmatmul.mubr.f32.vlgmr.msra.gmra.mxu0 %v45_v20  ;;  %4556 = vmatprep.subr.mxu0 %v248_v21 }
  0x23   :  { %4535 = vmatprep.mubr.f32.mxu0 %v46_v22  ;;  %4557 = vmatpush3.msra.mxu0 %v248_v21 }
  0x24   :  { %4558 = vmatprep.subr.mxu0 %v245_v37 }
  0x25   :  { %4559 = vmatpush3.msra.mxu0 %v245_v37 }
  0x26   :  { %4536 = vmatmul.mubr.f32.gmra.mxu0 %v47_v23  ;;  %4560 = vmatprep.subr.mxu0 %v242_v40 }
  0x27   :  { %4538 = vmatprep.mubr.f32.mxu0 %v48_v24  ;;  %4561 = vmatpush3.msra.mxu0 %v242_v40 }
  0x28   :  { %4562 = vmatprep.subr.mxu0 %v239_v43 }
  0x29   :  { %4563 = vmatpush3.msra.mxu0 %v239_v43 }
  0x2a   :  { %4539 = vmatmul.mubr.f32.gmra.mxu0 %v49_v25  ;;  %4647 = vmatprep.subr.mxu0 %v5330_v44 }
  0x2b   :  { %4541 = vmatprep.mubr.f32.mxu0 %v50_v26 }
  0x2e   :  { %4542 = vmatmul.mubr.f32.gmra.mxu0 %v51_v27 }
  0x2f   :  { %4544 = vmatprep.mubr.f32.mxu0 %v52_v28 }
  0x32   :  { %4545 = vmatmul.mubr.f32.gmra.mxu0 %v53_v29 }
  0x33   :  { %4547 = vmatprep.mubr.f32.mxu0 %v54_v30 }
  0x36   :  { %4548 = vmatmul.mubr.f32.gmra.mxu0 %v55_v31 }
  0x37   :  { %4550 = vmatprep.mubr.f32.mxu0 %v56_v32 }
  0x3a   :  { %4551 = vmatmul.mubr.f32.gmra.mxu0 %v57_v33 }
  0x3b   :  { %4553 = vmatprep.mubr.f32.mxu0 %v58_v34 }
  0x3e   :  { %4554 = vmatmul.mubr.f32.gmra.mxu0 %v59_v35 }
  0xe2   :  { %v4534_v45 = vpop.f32.mrf.mxu0 }
  0xe3   :  { %v222_v48 = vmax.f32 %v4534_v45, 0.0  ;;  %v604_v45 = vld [vmem:[%s7307_s2] sm:$0xff] }
  0xe4   :  { %v142_v46 = vpop.f32.mrf.mxu0 }
  0xe5   :  { %v221_v47 = vmax.f32 %v142_v46, 0.0  ;;  %v605_v46 = vld [vmem:[%s7307_s2 + $0x8] sm:$0xff] }
  0xe6   :  { %v4537_v49 = vpop.f32.mrf.mxu0 }
  0xe7   :  { %3906 = vmatmul.mubr.msk.f32.vlgmr.msra.gmra.mxu1 %vm249_vm0, %v221_v47  ;;  %4564 = vmatprep.mubr.msk.f32.mxu0 %vm249_vm0, %v221_v47  ;;  %v224_v50 = vmax.f32 %v4537_v49, 0.0  ;;  %v606_v47 = vld [vmem:[%s7307_s2 + $0x10] sm:$0xff]  ;;  %v608_v49 = vld [vmem:[%s7307_s2 + $0x20] sm:$0xff] }
  0xe8   :  { %v152_v51 = vpop.f32.mrf.mxu0  ;;  %4565 = vmatmul.mubr.msk.f32.vlgmr.msra.gmra.mxu0 %vm249_vm0, %v222_v48  ;;  %368 = vmatprep.mubr.f32.mxu1 %v5330_v44 }
  0xe9   :  { %v223_v52 = vmax.f32 %v152_v51, 0.0  ;;  %v610_v51 = vld [vmem:[%s7307_s2 + $0x30] sm:$0xff] }
  0xea   :  { %v4540_v53 = vpop.f32.mrf.mxu0 }
  0xeb   :  { %3907 = vmatmul.mubr.msk.f32.gmra.mxu1 %vm249_vm0, %v222_v48  ;;  %4567 = vmatprep.mubr.msk.f32.mxu0 %vm249_vm0, %v223_v52  ;;  %v226_v54 = vmax.f32 %v4540_v53, 0.0  ;;  %v607_v48 = vld [vmem:[%s7307_s2 + $0x18] sm:$0xff]  ;;  %v612_v53 = vld [vmem:[%s7307_s2 + $0x40] sm:$0xff] }
  0xec   :  { %4568 = vmatmul.mubr.msk.f32.gmra.mxu0 %vm249_vm0, %v224_v50  ;;  %374 = vmatprep.mubr.f32.mxu1 %v5330_v44  ;;  %v162_v55 = vpop.f32.mrf.mxu0 }
  0xed   :  { %v225_v56 = vmax.f32 %v162_v55, 0.0 }
  0xee   :  { %v4543_v57 = vpop.f32.mrf.mxu0 }
  0xef   :  { %3908 = vmatmul.mubr.msk.f32.gmra.mxu1 %vm249_vm0, %v223_v52  ;;  %4570 = vmatprep.mubr.msk.f32.mxu0 %vm249_vm0, %v225_v56  ;;  %v228_v58 = vmax.f32 %v4543_v57, 0.0  ;;  %v611_v52 = vld [vmem:[%s7307_s2 + $0x38] sm:$0xff] }
  0xf0   :  { %380 = vmatprep.mubr.f32.mxu1 %v5330_v44  ;;  %4571 = vmatmul.mubr.msk.f32.gmra.mxu0 %vm249_vm0, %v226_v54  ;;  %v172_v59 = vpop.f32.mrf.mxu0 }
  0xf1   :  { %v227_v60 = vmax.f32 %v172_v59, 0.0 }
  0xf2   :  { %v4546_v61 = vpop.f32.mrf.mxu0 }
  0xf3   :  { %3909 = vmatmul.mubr.msk.f32.gmra.mxu1 %vm249_vm0, %v224_v50  ;;  %4573 = vmatprep.mubr.msk.f32.mxu0 %vm249_vm0, %v227_v60  ;;  %v230_v62 = vmax.f32 %v4546_v61, 0.0  ;;  %v609_v50 = vld [vmem:[%s7307_s2 + $0x28] sm:$0xff] }
  0xf4   :  { %386 = vmatprep.mubr.f32.mxu1 %v5330_v44  ;;  %4574 = vmatmul.mubr.msk.f32.gmra.mxu0 %vm249_vm0, %v228_v58  ;;  %v182_v63 = vpop.f32.mrf.mxu0 }
  0xf5   :  { %v229_v0 = vmax.f32 %v182_v63, 0.0 }
  0xf6   :  { %v4549_v1 = vpop.f32.mrf.mxu0 }
  0xf7   :  { %3910 = vmatmul.mubr.msk.f32.gmra.mxu1 %vm249_vm0, %v225_v56  ;;  %4576 = vmatprep.mubr.msk.f32.mxu0 %vm249_vm0, %v229_v0  ;;  %v232_v2 = vmax.f32 %v4549_v1, 0.0 }
  0xf8   :  { %392 = vmatprep.mubr.f32.mxu1 %v5330_v44  ;;  %4577 = vmatmul.mubr.msk.f32.gmra.mxu0 %vm249_vm0, %v230_v62  ;;  %v192_v3 = vpop.f32.mrf.mxu0 }
  0xf9   :  { %v231_v4 = vmax.f32 %v192_v3, 0.0 }
  0xfa   :  { %v4552_v5 = vpop.f32.mrf.mxu0 }
  0xfb   :  { %3911 = vmatmul.mubr.msk.f32.gmra.mxu1 %vm249_vm0, %v226_v54  ;;  %4579 = vmatprep.mubr.msk.f32.mxu0 %vm249_vm0, %v231_v4  ;;  %v234_v6 = vmax.f32 %v4552_v5, 0.0 }
  0xfc   :  { %398 = vmatprep.mubr.f32.mxu1 %v5330_v44  ;;  %4580 = vmatmul.mubr.msk.f32.gmra.mxu0 %vm249_vm0, %v232_v2  ;;  %v202_v7 = vpop.f32.mrf.mxu0 }
  0xfd   :  { %v233_v8 = vmax.f32 %v202_v7, 0.0 }
  0xfe   :  { %v4555_v9 = vpop.f32.mrf.mxu0 }
  0xff   :  { %3912 = vmatmul.mubr.msk.f32.gmra.mxu1 %vm249_vm0, %v227_v60  ;;  %4582 = vmatprep.mubr.msk.f32.mxu0 %vm249_vm0, %v233_v8  ;;  %v236_v10 = vmax.f32 %v4555_v9, 0.0 }
 0x100   :  { %404 = vmatprep.mubr.f32.mxu1 %v5330_v44  ;;  %4583 = vmatmul.mubr.msk.f32.gmra.mxu0 %vm249_vm0, %v234_v6  ;;  %v212_v11 = vpop.f32.mrf.mxu0 }
 0x101   :  { %v235_v12 = vmax.f32 %v212_v11, 0.0 }
 0x103   :  { %3913 = vmatmul.mubr.msk.f32.gmra.mxu1 %vm249_vm0, %v228_v58  ;;  %4585 = vmatprep.mubr.msk.f32.mxu0 %vm249_vm0, %v235_v12 }
 0x104   :  { %410 = vmatprep.mubr.f32.mxu1 %v5330_v44  ;;  %4586 = vmatmul.mubr.msk.f32.gmra.mxu0 %vm249_vm0, %v236_v10 }
 0x105   :  { %4679 = vmatprep.mubr.msk.f32.mxu0 %vm5333_vm1, %v5330_v44 }
 0x107   :  { %3914 = vmatmul.mubr.msk.f32.gmra.mxu1 %vm249_vm0, %v229_v0 }
 0x108   :  { %416 = vmatprep.mubr.f32.mxu1 %v5330_v44 }
 0x10b   :  { %3915 = vmatmul.mubr.msk.f32.gmra.mxu1 %vm249_vm0, %v230_v62 }
 0x10c   :  { %422 = vmatprep.mubr.f32.mxu1 %v5330_v44 }
 0x10f   :  { %3916 = vmatmul.mubr.msk.f32.gmra.mxu1 %vm249_vm0, %v231_v4 }
 0x110   :  { %428 = vmatprep.mubr.f32.mxu1 %v5330_v44 }
 0x113   :  { %3917 = vmatmul.mubr.msk.f32.gmra.mxu1 %vm249_vm0, %v232_v2 }
 0x114   :  { %434 = vmatprep.mubr.f32.mxu1 %v5330_v44 }
 0x117   :  { %3918 = vmatmul.mubr.msk.f32.gmra.mxu1 %vm249_vm0, %v233_v8 }
 0x118   :  { %440 = vmatprep.mubr.f32.mxu1 %v5330_v44 }
 0x11b   :  { %3919 = vmatmul.mubr.msk.f32.gmra.mxu1 %vm249_vm0, %v234_v6 }
 0x11c   :  { %446 = vmatprep.mubr.f32.mxu1 %v5330_v44 }
 0x11f   :  { %3920 = vmatmul.mubr.msk.f32.gmra.mxu1 %vm249_vm0, %v235_v12 }
 0x120   :  { %452 = vmatprep.mubr.f32.mxu1 %v5330_v44 }
 0x123   :  { %3921 = vmatmul.mubr.msk.f32.gmra.mxu1 %vm249_vm0, %v236_v10 }
 0x124   :  { %4620 = vmatprep.mubr.msk.f32.mxu1 %vm5333_vm1, %v5330_v44 }
 0x1a7   :  { %v5587_v13 = vpop.f32.mrf.mxu1 }
 0x1a9   :  { %v5589_v14 = vpop.f32.mrf.mxu1 }
 0x1ab   :  { %v5591_v15 = vpop.f32.mrf.mxu1 }
 0x1ad   :  { %v5593_v16 = vpop.f32.mrf.mxu1 }
 0x1af   :  { %v5595_v17 = vpop.f32.mrf.mxu1 }
 0x1b1   :  { %v5597_v18 = vpop.f32.mrf.mxu1 }
 0x1b3   :  { %v5599_v19 = vpop.f32.mrf.mxu1 }
 0x1b5   :  { %v5601_v20 = vpop.f32.mrf.mxu1 }
 0x1b7   :  { %v5603_v21 = vpop.f32.mrf.mxu1 }
 0x1b8   :  { %647 = vrot.lane.b32.xlu1 %v5603_v21, %s5331_s3 }
 0x1b9   :  { %v5607_v22 = vpop.f32.mrf.mxu1 }
 0x1bb   :  { %v5609_v23 = vpop.f32.mrf.mxu1 }
 0x1bc   :  { %649 = vrot.lane.b32.xlu0 %v5609_v23, %s5331_s3 }
 0x1bd   :  { %v5613_v24 = vpop.f32.mrf.mxu1 }
 0x1bf   :  { %v5615_v25 = vpop.f32.mrf.mxu1 }
 0x1c0   :  { %651 = vrot.lane.b32.xlu1 %v5615_v25, %s5331_s3 }
 0x1c1   :  { %v5619_v26 = vpop.f32.mrf.mxu1 }
 0x1c3   :  { %v5621_v27 = vpop.f32.mrf.mxu1 }
 0x1c4   :  { %653 = vrot.lane.b32.xlu0 %v5621_v27, %s5331_s3 }
 0x1c5   :  { %v5625_v28 = vpop.f32.mrf.mxu1 }
 0x1c7   :  { %v5627_v29 = vpop.f32.mrf.mxu1 }
 0x1c8   :  { %655 = vrot.lane.b32.xlu1 %v5627_v29, %s5331_s3 }
 0x1c9   :  { %v5631_v30 = vpop.f32.mrf.mxu1 }
 0x1cb   :  { %v5633_v31 = vpop.f32.mrf.mxu1 }
 0x1cc   :  { %657 = vrot.lane.b32.xlu0 %v5633_v31, %s5331_s3 }
 0x1cd   :  { %v5637_v32 = vpop.f32.mrf.mxu1 }
 0x1cf   :  { %v5639_v33 = vpop.f32.mrf.mxu1 }
 0x1d0   :  { %659 = vrot.lane.b32.xlu1 %v5639_v33, %s5331_s3 }
 0x1d1   :  { %v5643_v34 = vpop.f32.mrf.mxu1 }
 0x1d3   :  { %v5645_v35 = vpop.f32.mrf.mxu1 }
 0x1d4   :  { %661 = vrot.lane.b32.xlu0 %v5645_v35, %s5331_s3 }
 0x1d5   :  { %v5649_v36 = vpop.f32.mrf.mxu1 }
 0x1d7   :  { %v5651_v37 = vpop.f32.mrf.mxu1 }
 0x1d8   :  { %663 = vrot.lane.b32.xlu1 %v5651_v37, %s5331_s3 }
 0x1d9   :  { %v5655_v38 = vpop.f32.mrf.mxu1 }
 0x1db   :  { %v5657_v39 = vpop.f32.mrf.mxu1 }
 0x1dc   :  { %665 = vrot.lane.b32.xlu1 %v5657_v39, %s5331_s3 }
 0x1dd   :  { %v5661_v40 = vpop.f32.mrf.mxu1 }
 0x1df   :  { %v5663_v41 = vpop.f32.mrf.mxu1 }
 0x1e0   :  { %643 = vrot.lane.b32.xlu1 %v5595_v17, %s5331_s3  ;;  %667 = vrot.lane.b32.xlu0 %v5663_v41, %s5331_s3 }
 0x1e1   :  { %v5669_v42 = vpop.f32.mrf.mxu1 }
 0x1e3   :  { %v5671_v43 = vpop.f32.mrf.mxu1 }
 0x1e4   :  { %639 = vrot.lane.b32.xlu1 %v5587_v13, %s5331_s3  ;;  %669 = vrot.lane.b32.xlu0 %v5671_v43, %s5331_s3 }
 0x1e5   :  { %4648 = vmatpush3.msra.mxu0 %v5671_v43  ;;  %v5860_v62 = vpop.f32.mrf.mxu1 }
 0x1e6   :  { %4649 = vmatprep.subr.mxu0 %v5330_v44 }
 0x1e7   :  { %4650 = vmatpush3.msra.mxu0 %v5663_v41 }
 0x1e8   :  { %4651 = vmatprep.subr.mxu0 %v5330_v44  ;;  %945 = vrot.lane.b32.xlu1 %v5663_v41, %s5332_s24 }
 0x1e9   :  { %645 = vrot.lane.b32.xlu0 %v5599_v19, %s5331_s3  ;;  %4652 = vmatpush3.msra.mxu0 %v5657_v39 }
 0x1ea   :  { %4653 = vmatprep.subr.mxu0 %v5330_v44 }
 0x1eb   :  { %4654 = vmatpush3.msra.mxu0 %v5651_v37 }
 0x1ec   :  { %4655 = vmatprep.subr.mxu0 %v5330_v44  ;;  %941 = vrot.lane.b32.xlu1 %v5651_v37, %s5332_s24 }
 0x1ed   :  { %641 = vrot.lane.b32.xlu0 %v5591_v15, %s5331_s3  ;;  %4656 = vmatpush3.msra.mxu0 %v5645_v35 }
 0x1ee   :  { %4657 = vmatprep.subr.mxu0 %v5330_v44 }
 0x1ef   :  { %4658 = vmatpush3.msra.mxu0 %v5639_v33 }
 0x1f0   :  { %4659 = vmatprep.subr.mxu0 %v5330_v44  ;;  %937 = vrot.lane.b32.xlu1 %v5639_v33, %s5332_s24 }
 0x1f1   :  { %943 = vrot.lane.b32.xlu0 %v5657_v39, %s5332_s24  ;;  %4660 = vmatpush3.msra.mxu0 %v5633_v31 }
 0x1f2   :  { %4661 = vmatprep.subr.mxu0 %v5330_v44 }
 0x1f3   :  { %4662 = vmatpush3.msra.mxu0 %v5627_v29 }
 0x1f4   :  { %4663 = vmatprep.subr.mxu0 %v5330_v44  ;;  %933 = vrot.lane.b32.xlu1 %v5627_v29, %s5332_s24 }
 0x1f5   :  { %939 = vrot.lane.b32.xlu0 %v5645_v35, %s5332_s24  ;;  %4664 = vmatpush3.msra.mxu0 %v5621_v27 }
 0x1f6   :  { %4665 = vmatprep.subr.mxu0 %v5330_v44 }
 0x1f7   :  { %4666 = vmatpush3.msra.mxu0 %v5615_v25 }
 0x1f8   :  { %4667 = vmatprep.subr.mxu0 %v5330_v44  ;;  %929 = vrot.lane.b32.xlu1 %v5615_v25, %s5332_s24 }
 0x1f9   :  { %935 = vrot.lane.b32.xlu0 %v5633_v31, %s5332_s24  ;;  %4668 = vmatpush3.msra.mxu0 %v5609_v23 }
 0x1fa   :  { %4669 = vmatprep.subr.mxu0 %v5330_v44 }
 0x1fb   :  { %4670 = vmatpush3.msra.mxu0 %v5603_v21 }
 0x1fc   :  { %4671 = vmatprep.subr.mxu0 %v5330_v44  ;;  %925 = vrot.lane.b32.xlu1 %v5603_v21, %s5332_s24 }
 0x1fd   :  { %931 = vrot.lane.b32.xlu0 %v5621_v27, %s5332_s24  ;;  %4672 = vmatpush3.msra.mxu0 %v5599_v19 }
 0x1fe   :  { %4673 = vmatprep.subr.mxu0 %v5330_v44 }
 0x1ff   :  { %4674 = vmatpush3.msra.mxu0 %v5595_v17 }
 0x200   :  { %4675 = vmatprep.subr.mxu0 %v5330_v44  ;;  %921 = vrot.lane.b32.xlu1 %v5595_v17, %s5332_s24 }
 0x201   :  { %927 = vrot.lane.b32.xlu0 %v5609_v23, %s5332_s24  ;;  %4676 = vmatpush3.msra.mxu0 %v5591_v15 }
 0x202   :  { %4677 = vmatprep.subr.mxu0 %v5330_v44 }
 0x203   :  { %4678 = vmatpush3.msra.mxu0 %v5587_v13 }
 0x204   :  { %917 = vrot.lane.b32.xlu1 %v5587_v13, %s5332_s24  ;;  %4680 = vmatmul.mubr.f32.vlgmr.msra.gmra.mxu0 %v604_v45 }
 0x205   :  { %923 = vrot.lane.b32.xlu0 %v5599_v19, %s5332_s24  ;;  %4682 = vmatprep.mubr.msk.f32.mxu0 %vm5333_vm1, %v5330_v44 }
 0x206   :  { %4765 = vmatprep.subr.mxu0 %v5330_v44 }
 0x208   :  { %1122 = vrot.lane.b32.xlu1 %v5663_v41, %s5334_s29  ;;  %4683 = vmatmul.mubr.f32.gmra.mxu0 %v605_v46 }
 0x209   :  { %947 = vrot.lane.b32.xlu0 %v5671_v43, %s5332_s24  ;;  %4685 = vmatprep.mubr.msk.f32.mxu0 %vm5333_vm1, %v5330_v44 }
 0x20c   :  { %1118 = vrot.lane.b32.xlu1 %v5651_v37, %s5334_s29  ;;  %4686 = vmatmul.mubr.f32.gmra.mxu0 %v606_v47  ;;  %v3940_v37 = vld [vmem:[%s7307_s2 + $0x58] sm:$0xff]  ;;  %v3942_v47 = vld [vmem:[%s7307_s2 + $0x68] sm:$0xff] }
 0x20d   :  { %919 = vrot.lane.b32.xlu0 %v5591_v15, %s5332_s24  ;;  %4688 = vmatprep.mubr.msk.f32.mxu0 %vm5333_vm1, %v5330_v44 }
 0x210   :  { %1114 = vrot.lane.b32.xlu1 %v5639_v33, %s5334_s29  ;;  %4689 = vmatmul.mubr.f32.gmra.mxu0 %v607_v48 }
 0x211   :  { %1120 = vrot.lane.b32.xlu0 %v5657_v39, %s5334_s29  ;;  %4691 = vmatprep.mubr.msk.f32.mxu0 %vm5333_vm1, %v5330_v44 }
 0x214   :  { %1110 = vrot.lane.b32.xlu1 %v5627_v29, %s5334_s29  ;;  %4692 = vmatmul.mubr.f32.gmra.mxu0 %v608_v49 }
 0x215   :  { %1116 = vrot.lane.b32.xlu0 %v5645_v35, %s5334_s29  ;;  %4694 = vmatprep.mubr.msk.f32.mxu0 %vm5333_vm1, %v5330_v44 }
 0x218   :  { %1106 = vrot.lane.b32.xlu1 %v5615_v25, %s5334_s29  ;;  %4695 = vmatmul.mubr.f32.gmra.mxu0 %v609_v50  ;;  %v3938_v25 = vld [vmem:[%s7307_s2 + $0x48] sm:$0xff]  ;;  %v3943_v50 = vld [vmem:[%s7307_s2 + $0x70] sm:$0xff] }
 0x219   :  { %1112 = vrot.lane.b32.xlu0 %v5633_v31, %s5334_s29  ;;  %4697 = vmatprep.mubr.msk.f32.mxu0 %vm5333_vm1, %v5330_v44  ;;  %v3939_v31 = vld [vmem:[%s7307_s2 + $0x50] sm:$0xff] }
 0x21c   :  { %1102 = vrot.lane.b32.xlu1 %v5603_v21, %s5334_s29  ;;  %4698 = vmatmul.mubr.f32.gmra.mxu0 %v610_v51 }
 0x21d   :  { %1108 = vrot.lane.b32.xlu0 %v5621_v27, %s5334_s29  ;;  %4700 = vmatprep.mubr.msk.f32.mxu0 %vm5333_vm1, %v5330_v44 }
 0x220   :  { %1098 = vrot.lane.b32.xlu1 %v5595_v17, %s5334_s29  ;;  %4701 = vmatmul.mubr.f32.gmra.mxu0 %v611_v52 }
 0x221   :  { %1104 = vrot.lane.b32.xlu0 %v5609_v23, %s5334_s29  ;;  %4703 = vmatprep.mubr.msk.f32.mxu0 %vm5333_vm1, %v5330_v44 }
 0x224   :  { %1094 = vrot.lane.b32.xlu1 %v5587_v13, %s5334_s29  ;;  %4704 = vmatmul.mubr.f32.gmra.mxu0 %v612_v53  ;;  %v3944_v53 = vld [vmem:[%s7307_s2 + $0x78] sm:$0xff] }
 0x225   :  { %1100 = vrot.lane.b32.xlu0 %v5599_v19, %s5334_s29  ;;  %4797 = vmatprep.mubr.msk.f32.mxu0 %vm5333_vm1, %v5330_v44 }
 0x228   :  { %1444 = vrot.lane.b32.xlu1 %v5669_v42, %s5331_s3 }
 0x229   :  { %1124 = vrot.lane.b32.xlu0 %v5671_v43, %s5334_s29  ;;  %v3941_v43 = vld [vmem:[%s7307_s2 + $0x60] sm:$0xff] }
 0x22a   :  { %v5842_v54 = vpop.permute.xlu1 %647 }
 0x22c   :  { %1442 = vrot.lane.b32.xlu1 %v5661_v40, %s5331_s3 }
 0x22d   :  { %1096 = vrot.lane.b32.xlu0 %v5591_v15, %s5334_s29 }
 0x22e   :  { %v650_v56 = vpop.permute.xlu0 %649 }
 0x230   :  { %1440 = vrot.lane.b32.xlu1 %v5655_v38, %s5331_s3 }
 0x231   :  { %1621 = vrot.lane.b32.xlu0 %v5669_v42, %s5332_s24 }
 0x232   :  { %v652_v55 = vpop.permute.xlu1 %651 }
 0x234   :  { %1438 = vrot.lane.b32.xlu1 %v5649_v36, %s5331_s3 }
 0x235   :  { %1619 = vrot.lane.b32.xlu0 %v5661_v40, %s5332_s24 }
 0x236   :  { %v654_v58 = vpop.permute.xlu0 %653 }
 0x238   :  { %1436 = vrot.lane.b32.xlu1 %v5643_v34, %s5331_s3 }
 0x239   :  { %1617 = vrot.lane.b32.xlu0 %v5655_v38, %s5332_s24 }
 0x23a   :  { %v656_v57 = vpop.permute.xlu1 %655 }
 0x23c   :  { %1434 = vrot.lane.b32.xlu1 %v5637_v32, %s5331_s3 }
 0x23d   :  { %1615 = vrot.lane.b32.xlu0 %v5649_v36, %s5332_s24 }
 0x23e   :  { %v658_v60 = vpop.permute.xlu0 %657 }
 0x240   :  { %1432 = vrot.lane.b32.xlu1 %v5631_v30, %s5331_s3 }
 0x241   :  { %1613 = vrot.lane.b32.xlu0 %v5643_v34, %s5332_s24 }
 0x242   :  { %v660_v59 = vpop.permute.xlu1 %659 }
 0x244   :  { %1430 = vrot.lane.b32.xlu1 %v5625_v28, %s5331_s3 }
 0x245   :  { %1611 = vrot.lane.b32.xlu0 %v5637_v32, %s5332_s24 }
 0x246   :  { %v662_v63 = vpop.permute.xlu0 %661 }
 0x248   :  { %1428 = vrot.lane.b32.xlu1 %v5619_v26, %s5331_s3 }
 0x249   :  { %1609 = vrot.lane.b32.xlu0 %v5631_v30, %s5332_s24 }
 0x24a   :  { %v664_v61 = vpop.permute.xlu1 %663 }
 0x24c   :  { %1426 = vrot.lane.b32.xlu1 %v5613_v24, %s5331_s3 }
 0x24d   :  { %1446 = vrot.lane.b32.xlu0 %v5860_v62, %s5331_s3 }
 0x24e   :  { %v666_v0 = vpop.permute.xlu1 %665 }
 0x250   :  { %1424 = vrot.lane.b32.xlu1 %v5607_v22, %s5331_s3 }
 0x251   :  { %1623 = vrot.lane.b32.xlu0 %v5860_v62, %s5332_s24 }
 0x252   :  { %v644_v1 = vpop.permute.xlu1 %643  ;;  %v668_v2 = vpop.permute.xlu0 %667 }
 0x254   :  { %1422 = vrot.lane.b32.xlu1 %v5601_v20, %s5331_s3 }
 0x255   :  { %1607 = vrot.lane.b32.xlu0 %v5625_v28, %s5332_s24 }
 0x256   :  { %v640_v3 = vpop.permute.xlu1 %639  ;;  %v670_v4 = vpop.permute.xlu0 %669 }
 0x257   :  { %4589 = vmatpush3.msra.mxu1 %v670_v4  ;;  %v3948_v4 = vld [vmem:[%s7307_s2 + $0x98] sm:$0xff] }
 0x258   :  { %1420 = vrot.lane.b32.xlu1 %v5597_v18, %s5331_s3  ;;  %4590 = vmatprep.subr.mxu1 %v5330_v44 }
 0x259   :  { %1605 = vrot.lane.b32.xlu0 %v5619_v26, %s5332_s24  ;;  %4591 = vmatpush3.msra.mxu1 %v668_v2 }
 0x25a   :  { %v5879_v5 = vpop.permute.xlu1 %945  ;;  %4592 = vmatprep.subr.mxu1 %v5330_v44 }
 0x25b   :  { %v646_v6 = vpop.permute.xlu0 %645  ;;  %4593 = vmatpush3.msra.mxu1 %v666_v0  ;;  %v6071_v0 = vpop.f32.mrf.mxu0 }
 0x25c   :  { %1418 = vrot.lane.b32.xlu1 %v5593_v16, %s5331_s3  ;;  %4594 = vmatprep.subr.mxu1 %v5330_v44 }
 0x25d   :  { %1603 = vrot.lane.b32.xlu0 %v5613_v24, %s5332_s24  ;;  %4595 = vmatpush3.msra.mxu1 %v664_v61 }
 0x25e   :  { %v5887_v7 = vpop.permute.xlu1 %941  ;;  %4596 = vmatprep.subr.mxu1 %v5330_v44 }
 0x25f   :  { %v642_v8 = vpop.permute.xlu0 %641  ;;  %4597 = vmatpush3.msra.mxu1 %v662_v63  ;;  %v3947_v63 = vld [vmem:[%s7307_s2 + $0x90] sm:$0xff] }
 0x260   :  { %1416 = vrot.lane.b32.xlu1 %v5589_v14, %s5331_s3  ;;  %4598 = vmatprep.subr.mxu1 %v5330_v44 }
 0x261   :  { %1601 = vrot.lane.b32.xlu0 %v5607_v22, %s5332_s24  ;;  %4599 = vmatpush3.msra.mxu1 %v660_v59  ;;  %v3946_v59 = vld [vmem:[%s7307_s2 + $0x88] sm:$0xff] }
 0x262   :  { %v5895_v9 = vpop.permute.xlu1 %937  ;;  %4600 = vmatprep.subr.mxu1 %v5330_v44 }
 0x263   :  { %v944_v10 = vpop.permute.xlu0 %943  ;;  %4601 = vmatpush3.msra.mxu1 %v658_v60 }
 0x264   :  { %1593 = vrot.lane.b32.xlu1 %v5589_v14, %s5332_s24  ;;  %4602 = vmatprep.subr.mxu1 %v5330_v44 }
 0x265   :  { %1599 = vrot.lane.b32.xlu0 %v5601_v20, %s5332_s24  ;;  %4603 = vmatpush3.msra.mxu1 %v656_v57 }
 0x266   :  { %v5903_v11 = vpop.permute.xlu1 %933  ;;  %4604 = vmatprep.subr.mxu1 %v5330_v44 }
 0x267   :  { %v5906_v12 = vpop.permute.xlu0 %939  ;;  %4605 = vmatpush3.msra.mxu1 %v654_v58 }
 0x268   :  { %1798 = vrot.lane.b32.xlu1 %v5669_v42, %s5334_s29  ;;  %4606 = vmatprep.subr.mxu1 %v5330_v44 }
 0x269   :  { %1597 = vrot.lane.b32.xlu0 %v5597_v18, %s5332_s24  ;;  %4607 = vmatpush3.msra.mxu1 %v652_v55 }
 0x26a   :  { %v5913_v13 = vpop.permute.xlu1 %929  ;;  %4608 = vmatprep.subr.mxu1 %v5330_v44 }
 0x26b   :  { %v5916_v15 = vpop.permute.xlu0 %935  ;;  %4609 = vmatpush3.msra.mxu1 %v650_v56  ;;  %v3945_v56 = vld [vmem:[%s7307_s2 + $0x80] sm:$0xff] }
 0x26c   :  { %1794 = vrot.lane.b32.xlu1 %v5655_v38, %s5334_s29  ;;  %4610 = vmatprep.subr.mxu1 %v5330_v44 }
 0x26d   :  { %1595 = vrot.lane.b32.xlu0 %v5593_v16, %s5332_s24  ;;  %4611 = vmatpush3.msra.mxu1 %v5842_v54 }
 0x26e   :  { %v5924_v17 = vpop.permute.xlu1 %925  ;;  %4612 = vmatprep.subr.mxu1 %v5330_v44 }
 0x26f   :  { %v5927_v19 = vpop.permute.xlu0 %931  ;;  %4613 = vmatpush3.msra.mxu1 %v646_v6 }
 0x270   :  { %1790 = vrot.lane.b32.xlu1 %v5643_v34, %s5334_s29  ;;  %4614 = vmatprep.subr.mxu1 %v5330_v44 }
 0x271   :  { %1800 = vrot.lane.b32.xlu0 %v5860_v62, %s5334_s29  ;;  %4615 = vmatpush3.msra.mxu1 %v644_v1 }
 0x272   :  { %v5934_v21 = vpop.permute.xlu1 %921  ;;  %4616 = vmatprep.subr.mxu1 %v5330_v44 }
 0x273   :  { %v5937_v23 = vpop.permute.xlu0 %927  ;;  %4617 = vmatpush3.msra.mxu1 %v642_v8 }
 0x274   :  { %1786 = vrot.lane.b32.xlu1 %v5631_v30, %s5334_s29  ;;  %4618 = vmatprep.subr.mxu1 %v5330_v44 }
 0x275   :  { %1796 = vrot.lane.b32.xlu0 %v5661_v40, %s5334_s29  ;;  %4619 = vmatpush3.msra.mxu1 %v640_v3  ;;  %v6079_v3 = vpop.f32.mrf.mxu0 }
 0x276   :  { %v5947_v27 = vpop.permute.xlu1 %917  ;;  %4621 = vmatmul.mubr.f32.vlgmr.msra.gmra.mxu1 %v3938_v25  ;;  %4706 = vmatprep.subr.mxu1 %v5330_v44 }
 0x277   :  { %v5950_v29 = vpop.permute.xlu0 %923  ;;  %4623 = vmatprep.mubr.msk.f32.mxu1 %vm5333_vm1, %v5330_v44  ;;  %v6096_v6 = vpop.f32.mrf.mxu0 }
 0x278   :  { %1782 = vrot.lane.b32.xlu1 %v5619_v26, %s5334_s29 }
 0x279   :  { %1792 = vrot.lane.b32.xlu0 %v5649_v36, %s5334_s29 }
 0x27a   :  { %v5961_v33 = vpop.permute.xlu1 %1122  ;;  %4624 = vmatmul.mubr.f32.gmra.mxu1 %v3939_v31 }
 0x27b   :  { %v948_v35 = vpop.permute.xlu0 %947  ;;  %4626 = vmatprep.mubr.msk.f32.mxu1 %vm5333_vm1, %v5330_v44 }
 0x27c   :  { %4707 = vmatpush3.msra.mxu1 %v948_v35  ;;  %1778 = vrot.lane.b32.xlu1 %v5607_v22, %s5334_s29 }
 0x27d   :  { %4708 = vmatprep.subr.mxu1 %v5330_v44  ;;  %1788 = vrot.lane.b32.xlu0 %v5637_v32, %s5334_s29 }
 0x27e   :  { %4709 = vmatpush3.msra.mxu1 %v5879_v5  ;;  %v5974_v39 = vpop.permute.xlu1 %1118 }
 0x27f   :  { %4627 = vmatmul.mubr.f32.gmra.mxu1 %v3940_v37  ;;  %4710 = vmatprep.subr.mxu1 %v5330_v44  ;;  %v920_v41 = vpop.permute.xlu0 %919  ;;  %v3957_v37 = vld [vmem:[%s7307_s2 + $0xe0] sm:$0xff] }
 0x280   :  { %4711 = vmatpush3.msra.mxu1 %v944_v10  ;;  %1774 = vrot.lane.b32.xlu1 %v5597_v18, %s5334_s29 }
 0x281   :  { %4712 = vmatprep.subr.mxu1 %v5330_v44  ;;  %1784 = vrot.lane.b32.xlu0 %v5625_v28, %s5334_s29 }
 0x282   :  { %4629 = vmatprep.mubr.msk.f32.mxu1 %vm5333_vm1, %v5330_v44  ;;  %4713 = vmatpush3.msra.mxu1 %v5887_v7  ;;  %v5988_v45 = vpop.permute.xlu1 %1114 }
 0x283   :  { %4630 = vmatmul.mubr.f32.gmra.mxu1 %v3941_v43  ;;  %4714 = vmatprep.subr.mxu1 %v5330_v44  ;;  %v5991_v46 = vpop.permute.xlu0 %1120 }
 0x284   :  { %4715 = vmatpush3.msra.mxu1 %v5906_v12  ;;  %1770 = vrot.lane.b32.xlu1 %v5589_v14, %s5334_s29 }
 0x285   :  { %4716 = vmatprep.subr.mxu1 %v5330_v44  ;;  %1780 = vrot.lane.b32.xlu0 %v5613_v24, %s5334_s29 }
 0x286   :  { %4632 = vmatprep.mubr.msk.f32.mxu1 %vm5333_vm1, %v5330_v44  ;;  %4717 = vmatpush3.msra.mxu1 %v5895_v9  ;;  %v6005_v48 = vpop.permute.xlu1 %1110 }
 0x287   :  { %4633 = vmatmul.mubr.f32.gmra.mxu1 %v3942_v47  ;;  %4718 = vmatprep.subr.mxu1 %v5330_v44  ;;  %v6008_v49 = vpop.permute.xlu0 %1116 }
 0x288   :  { %4719 = vmatpush3.msra.mxu1 %v5916_v15  ;;  %4635 = vmatprep.mubr.msk.f32.mxu1 %vm5333_vm1, %v5330_v44 }
 0x289   :  { %4720 = vmatprep.subr.mxu1 %v5330_v44  ;;  %1776 = vrot.lane.b32.xlu0 %v5601_v20, %s5334_s29 }
 0x28a   :  { %4721 = vmatpush3.msra.mxu1 %v5903_v11  ;;  %v6020_v51 = vpop.permute.xlu1 %1106 }
 0x28b   :  { %4636 = vmatmul.mubr.f32.gmra.mxu1 %v3943_v50  ;;  %4722 = vmatprep.subr.mxu1 %v5330_v44  ;;  %v6023_v52 = vpop.permute.xlu0 %1112 }
 0x28c   :  { %4723 = vmatpush3.msra.mxu1 %v5927_v19  ;;  %4638 = vmatprep.mubr.msk.f32.mxu1 %vm5333_vm1, %v5330_v44 }
 0x28d   :  { %4724 = vmatprep.subr.mxu1 %v5330_v44  ;;  %1772 = vrot.lane.b32.xlu0 %v5593_v16, %s5334_s29 }
 0x28e   :  { %4725 = vmatpush3.msra.mxu1 %v5913_v13  ;;  %v6035_v54 = vpop.permute.xlu1 %1102 }
 0x28f   :  { %4639 = vmatmul.mubr.f32.gmra.mxu1 %v3944_v53  ;;  %4726 = vmatprep.subr.mxu1 %v5330_v44  ;;  %v6038_v55 = vpop.permute.xlu0 %1108 }
 0x290   :  { %4727 = vmatpush3.msra.mxu1 %v5937_v23  ;;  %4641 = vmatprep.mubr.msk.f32.mxu1 %vm5333_vm1, %v5330_v44 }
 0x291   :  { %4728 = vmatprep.subr.mxu1 %v5330_v44 }
 0x292   :  { %4729 = vmatpush3.msra.mxu1 %v5924_v17  ;;  %v6048_v57 = vpop.permute.xlu1 %1098 }
 0x293   :  { %4642 = vmatmul.mubr.f32.gmra.mxu1 %v3945_v56  ;;  %4730 = vmatprep.subr.mxu1 %v5330_v44  ;;  %v6051_v58 = vpop.permute.xlu0 %1104  ;;  %v3960_v56 = vld [vmem:[%s7307_s2 + $0xf8] sm:$0xff] }
 0x294   :  { %4731 = vmatpush3.msra.mxu1 %v5950_v29  ;;  %4644 = vmatprep.mubr.msk.f32.mxu1 %vm5333_vm1, %v5330_v44 }
 0x295   :  { %4732 = vmatprep.subr.mxu1 %v5330_v44 }
 0x296   :  { %4733 = vmatpush3.msra.mxu1 %v5934_v21  ;;  %v6061_v60 = vpop.permute.xlu1 %1094  ;;  %v3953_v21 = vld [vmem:[%s7307_s2 + $0xc0] sm:$0xff] }
 0x297   :  { %4645 = vmatmul.mubr.f32.gmra.mxu1 %v3946_v59  ;;  %4734 = vmatprep.subr.mxu1 %v5330_v44  ;;  %v6064_v61 = vpop.permute.xlu0 %1100  ;;  %v3968_v59 = vld [vmem:[%s7307_s2 + $0x138] sm:$0xff] }
 0x298   :  { %4735 = vmatpush3.msra.mxu1 %v920_v41  ;;  %4738 = vmatprep.mubr.msk.f32.mxu1 %vm5333_vm1, %v5330_v44 }
 0x299   :  { %4736 = vmatprep.subr.mxu1 %v5330_v44 }
 0x29a   :  { %4737 = vmatpush3.msra.mxu1 %v5947_v27  ;;  %v6075_v1 = vpop.permute.xlu1 %1444  ;;  %v3954_v27 = vld [vmem:[%s7307_s2 + $0xc8] sm:$0xff] }
 0x29b   :  { %4739 = vmatmul.mubr.f32.vlgmr.msra.gmra.mxu1 %v3947_v63  ;;  %4824 = vmatprep.subr.mxu1 %v5330_v44  ;;  %v1125_v2 = vpop.permute.xlu0 %1124 }
 0x29c   :  { %4766 = vmatpush3.msra.mxu0 %v1125_v2  ;;  %4825 = vmatpush3.msra.mxu1 %v5860_v62 }
 0x29d   :  { %4767 = vmatprep.subr.mxu0 %v5330_v44  ;;  %4826 = vmatprep.subr.mxu1 %v5330_v44 }
 0x29e   :  { %4741 = vmatprep.mubr.msk.f32.mxu1 %vm5333_vm1, %v5330_v44  ;;  %4768 = vmatpush3.msra.mxu0 %v5961_v33  ;;  %v6093_v62 = vpop.permute.xlu1 %1442  ;;  %v3956_v33 = vld [vmem:[%s7307_s2 + $0xd8] sm:$0xff] }
 0x29f   :  { %4827 = vmatpush3.msra.mxu1 %v5669_v42  ;;  %v6090_v5 = vpop.permute.xlu0 %1096  ;;  %4769 = vmatprep.subr.mxu0 %v5330_v44  ;;  %v3949_v42 = vld [vmem:[%s7307_s2 + $0xa0] sm:$0xff] }
 0x2a0   :  { %4742 = vmatmul.mubr.f32.gmra.mxu1 %v3948_v4  ;;  %4828 = vmatprep.subr.mxu1 %v5330_v44 }
 0x2a1   :  { %4770 = vmatpush3.msra.mxu0 %v5991_v46  ;;  %4829 = vmatpush3.msra.mxu1 %v5661_v40  ;;  %v6112_v40 = vpop.f32.mrf.mxu0  ;;  %v3966_v46 = vld [vmem:[%s7307_s2 + $0x128] sm:$0xff] }
 0x2a2   :  { %4771 = vmatprep.subr.mxu0 %v5330_v44  ;;  %4830 = vmatprep.subr.mxu1 %v5330_v44  ;;  %v6115_v8 = vpop.permute.xlu1 %1440 }
 0x2a3   :  { %4744 = vmatprep.mubr.msk.f32.mxu1 %vm5333_vm1, %v5330_v44  ;;  %4772 = vmatpush3.msra.mxu0 %v5974_v39  ;;  %v6108_v7 = vpop.permute.xlu0 %1621  ;;  %v6119_v9 = vpop.f32.mrf.mxu0 }
 0x2a4   :  { %4831 = vmatpush3.msra.mxu1 %v5655_v38  ;;  %4773 = vmatprep.subr.mxu0 %v5330_v44  ;;  %v3950_v38 = vld [vmem:[%s7307_s2 + $0xa8] sm:$0xff] }
 0x2a5   :  { %4745 = vmatmul.mubr.f32.gmra.mxu1 %v3949_v42  ;;  %4832 = vmatprep.subr.mxu1 %v5330_v44 }
 0x2a6   :  { %4774 = vmatpush3.msra.mxu0 %v6008_v49  ;;  %4833 = vmatpush3.msra.mxu1 %v5649_v36  ;;  %v6134_v36 = vpop.f32.mrf.mxu0  ;;  %v6140_v12 = vpop.permute.xlu1 %1438  ;;  %v3959_v49 = vld [vmem:[%s7307_s2 + $0xf0] sm:$0xff] }
 0x2a7   :  { %4775 = vmatprep.subr.mxu0 %v5330_v44  ;;  %4834 = vmatprep.subr.mxu1 %v5330_v44  ;;  %v6126_v10 = vpop.permute.xlu0 %1619 }
 0x2a8   :  { %4747 = vmatprep.mubr.msk.f32.mxu1 %vm5333_vm1, %v5330_v44  ;;  %4776 = vmatpush3.msra.mxu0 %v5988_v45  ;;  %v6147_v13 = vpop.f32.mrf.mxu0  ;;  %v3958_v45 = vld [vmem:[%s7307_s2 + $0xe8] sm:$0xff] }
 0x2a9   :  { %4835 = vmatpush3.msra.mxu1 %v5643_v34  ;;  %4777 = vmatprep.subr.mxu0 %v5330_v44  ;;  %v3951_v34 = vld [vmem:[%s7307_s2 + $0xb0] sm:$0xff] }
 0x2aa   :  { %4748 = vmatmul.mubr.f32.gmra.mxu1 %v3950_v38  ;;  %4836 = vmatprep.subr.mxu1 %v5330_v44  ;;  %v6159_v15 = vpop.f32.mrf.mxu0  ;;  %v6166_v17 = vpop.permute.xlu1 %1436 }
 0x2ab   :  { %4778 = vmatpush3.msra.mxu0 %v6023_v52  ;;  %4837 = vmatpush3.msra.mxu1 %v5637_v32  ;;  %v6138_v11 = vpop.permute.xlu0 %1617  ;;  %v3967_v52 = vld [vmem:[%s7307_s2 + $0x130] sm:$0xff] }
 0x2ac   :  { %4779 = vmatprep.subr.mxu0 %v5330_v44  ;;  %4838 = vmatprep.subr.mxu1 %v5330_v44  ;;  %v6171_v19 = vpop.f32.mrf.mxu0 }
 0x2ad   :  { %4750 = vmatprep.mubr.msk.f32.mxu1 %vm5333_vm1, %v5330_v44  ;;  %4780 = vmatpush3.msra.mxu0 %v6005_v48 }
 0x2ae   :  { %4839 = vmatpush3.msra.mxu1 %v5631_v30  ;;  %4781 = vmatprep.subr.mxu0 %v5330_v44  ;;  %v3952_v30 = vld [vmem:[%s7307_s2 + $0xb8] sm:$0xff]  ;;  %v6192_v25 = vpop.permute.xlu1 %1434 }
 0x2af   :  { %4751 = vmatmul.mubr.f32.gmra.mxu1 %v3951_v34  ;;  %4840 = vmatprep.subr.mxu1 %v5330_v44  ;;  %v6155_v32 = vpop.permute.xlu0 %1615 }
 0x2b0   :  { %4782 = vmatpush3.msra.mxu0 %v6038_v55  ;;  %4841 = vmatpush3.msra.mxu1 %v5625_v28 }
 0x2b1   :  { %4783 = vmatprep.subr.mxu0 %v5330_v44  ;;  %4842 = vmatprep.subr.mxu1 %v5330_v44 }
 0x2b2   :  { %4753 = vmatprep.mubr.msk.f32.mxu1 %vm5333_vm1, %v5330_v44  ;;  %4784 = vmatpush3.msra.mxu0 %v6020_v51 }
 0x2b3   :  { %4843 = vmatpush3.msra.mxu1 %v5619_v26  ;;  %4785 = vmatprep.subr.mxu0 %v5330_v44  ;;  %v6175_v28 = vpop.permute.xlu0 %1613  ;;  %v6185_v26 = vpop.f32.mrf.mxu0 }
 0x2b4   :  { %4754 = vmatmul.mubr.f32.gmra.mxu1 %v3952_v30  ;;  %4844 = vmatprep.subr.mxu1 %v5330_v44  ;;  %v3963_v30 = vld [vmem:[%s7307_s2 + $0x110] sm:$0xff] }
 0x2b5   :  { %4786 = vmatpush3.msra.mxu0 %v6051_v58  ;;  %4845 = vmatpush3.msra.mxu1 %v5613_v24  ;;  %v6196_v24 = vpop.f32.mrf.mxu0 }
 0x2b6   :  { %4787 = vmatprep.subr.mxu0 %v5330_v44  ;;  %4846 = vmatprep.subr.mxu1 %v5330_v44 }
 0x2b7   :  { %4756 = vmatprep.mubr.msk.f32.mxu1 %vm5333_vm1, %v5330_v44  ;;  %4788 = vmatpush3.msra.mxu0 %v6035_v54  ;;  %v6190_v23 = vpop.permute.xlu0 %1611  ;;  %v6211_v29 = vpop.f32.mrf.mxu0 }
 0x2b8   :  { %4847 = vmatpush3.msra.mxu1 %v5607_v22  ;;  %4789 = vmatprep.subr.mxu0 %v5330_v44 }
 0x2b9   :  { %4757 = vmatmul.mubr.f32.gmra.mxu1 %v3953_v21  ;;  %4848 = vmatprep.subr.mxu1 %v5330_v44  ;;  %v6218_v31 = vpop.f32.mrf.mxu0  ;;  %v3971_v21 = vld [vmem:[%s7307_s2 + $0x150] sm:$0xff] }
 0x2ba   :  { %4790 = vmatpush3.msra.mxu0 %v6064_v61  ;;  %4849 = vmatpush3.msra.mxu1 %v5601_v20  ;;  %v6215_v20 = vpop.permute.xlu1 %1432 }
 0x2bb   :  { %4791 = vmatprep.subr.mxu0 %v5330_v44  ;;  %4850 = vmatprep.subr.mxu1 %v5330_v44  ;;  %v6206_v22 = vpop.permute.xlu0 %1609 }
 0x2bc   :  { %4759 = vmatprep.mubr.msk.f32.mxu1 %vm5333_vm1, %v5330_v44  ;;  %4792 = vmatpush3.msra.mxu0 %v6048_v57 }
 0x2bd   :  { %4851 = vmatpush3.msra.mxu1 %v5597_v18  ;;  %4793 = vmatprep.subr.mxu0 %v5330_v44  ;;  %v3955_v18 = vld [vmem:[%s7307_s2 + $0xd0] sm:$0xff] }
 0x2be   :  { %4760 = vmatmul.mubr.f32.gmra.mxu1 %v3954_v27  ;;  %4852 = vmatprep.subr.mxu1 %v5330_v44  ;;  %v6241_v39 = vpop.permute.xlu1 %1430 }
 0x2bf   :  { %4794 = vmatpush3.msra.mxu0 %v6090_v5  ;;  %4853 = vmatpush3.msra.mxu1 %v5593_v16  ;;  %v1447_v35 = vpop.permute.xlu0 %1446  ;;  %v6234_v16 = vpop.f32.mrf.mxu0  ;;  %v3969_v5 = vld [vmem:[%s7307_s2 + $0x140] sm:$0xff] }
 0x2c0   :  { %4795 = vmatprep.subr.mxu0 %v5330_v44  ;;  %4854 = vmatprep.subr.mxu1 %v5330_v44 }
 0x2c1   :  { %4762 = vmatprep.mubr.msk.f32.mxu1 %vm5333_vm1, %v5330_v44  ;;  %4796 = vmatpush3.msra.mxu0 %v6061_v60  ;;  %v6249_v41 = vpop.f32.mrf.mxu0 }
 0x2c2   :  { %4855 = vmatpush3.msra.mxu1 %v5589_v14  ;;  %4798 = vmatmul.mubr.f32.vlgmr.msra.gmra.mxu0 %v3956_v33  ;;  %v3965_v14 = vld [vmem:[%s7307_s2 + $0x120] sm:$0xff]  ;;  %v6267_v48 = vpop.permute.xlu1 %1428 }
 0x2c3   :  { %4763 = vmatmul.mubr.f32.gmra.mxu1 %v3955_v18  ;;  %4800 = vmatprep.mubr.msk.f32.mxu0 %vm5333_vm1, %v5330_v44  ;;  %v1624_v43 = vpop.permute.xlu0 %1623  ;;  %v6264_v47 = vpop.f32.mrf.mxu0 }
 0x2c4   :  { %4856 = vmatprep.mubr.msk.f32.mxu1 %vm5333_vm1, %v5330_v44  ;;  %4883 = vmatprep.subr.mxu0 %v5330_v44 }
 0x2c5   :  { %4884 = vmatpush3.msra.mxu0 %v1447_v35  ;;  %4942 = vmatprep.subr.mxu1 %v5330_v44  ;;  %v6276_v51 = vpop.f32.mrf.mxu0  ;;  %v3972_v35 = vld [vmem:[%s7307_s2 + $0x158] sm:$0xff] }
 0x2c6   :  { %4801 = vmatmul.mubr.f32.gmra.mxu0 %v3957_v37  ;;  %4885 = vmatprep.subr.mxu0 %v5330_v44  ;;  %v1427_v55 = vpop.permute.xlu1 %1426 }
 0x2c7   :  { %4857 = vmatmul.mubr.f32.vlgmr.msra.gmra.mxu1 %v3965_v14  ;;  %4803 = vmatprep.mubr.msk.f32.mxu0 %vm5333_vm1, %v5330_v44  ;;  %v6274_v50 = vpop.permute.xlu0 %1607  ;;  %v4681_v53 = vpop.f32.mrf.mxu0  ;;  %v3974_v14 = vld [vmem:[%s7307_s2 + $0x168] sm:$0xff] }
 0x2c8   :  { %4859 = vmatprep.mubr.msk.f32.mxu1 %vm5333_vm1, %v5330_v44  ;;  %4886 = vmatpush3.msra.mxu0 %v6075_v1  ;;  %v3961_v1 = vld [vmem:[%s7307_s2 + $0x100] sm:$0xff] }
 0x2c9   :  { %4887 = vmatprep.subr.mxu0 %v5330_v44  ;;  %4943 = vmatpush3.msra.mxu1 %v1624_v43  ;;  %v6289_v54 = vpop.f32.mrf.mxu0 }
 0x2ca   :  { %4804 = vmatmul.mubr.f32.gmra.mxu0 %v3958_v45  ;;  %4944 = vmatprep.subr.mxu1 %v5330_v44  ;;  %v1425_v63 = vpop.permute.xlu1 %1424  ;;  %v3973_v45 = vld [vmem:[%s7307_s2 + $0x160] sm:$0xff] }
 0x2cb   :  { %4860 = vmatmul.mubr.f32.gmra.mxu1 %v3966_v46  ;;  %4888 = vmatpush3.msra.mxu0 %v6093_v62  ;;  %v6298_v57 = vpop.permute.xlu0 %1605  ;;  %v4684_v58 = vpop.f32.mrf.mxu0  ;;  %v3975_v46 = vld [vmem:[%s7307_s2 + $0x170] sm:$0xff] }
 0x2cc   :  { %4889 = vmatprep.subr.mxu0 %v5330_v44  ;;  %4806 = vmatprep.mubr.msk.f32.mxu0 %vm5333_vm1, %v5330_v44  ;;  %v3978_v58 = vld [vmem:[%s7307_s2 + $0x188] sm:$0xff] }
 0x2cd   :  { %4862 = vmatprep.mubr.msk.f32.mxu1 %vm5333_vm1, %v5330_v44  ;;  %4890 = vmatpush3.msra.mxu0 %v6115_v8  ;;  %v6309_v60 = vpop.f32.mrf.mxu0  ;;  %v3962_v8 = vld [vmem:[%s7307_s2 + $0x108] sm:$0xff] }
 0x2ce   :  { %4945 = vmatpush3.msra.mxu1 %v6108_v7  ;;  %4807 = vmatmul.mubr.f32.gmra.mxu0 %v3959_v49  ;;  %v1423_v7 = vpop.permute.xlu1 %1422  ;;  %v3983_v49 = vld [vmem:[%s7307_s2 + $0x1b0] sm:$0xff] }
 0x2cf   :  { %4891 = vmatprep.subr.mxu0 %v5330_v44  ;;  %4863 = vmatmul.mubr.f32.gmra.mxu1 %v3967_v52  ;;  %v4687_v61 = vpop.f32.mrf.mxu0  ;;  %v1604_v2 = vpop.permute.xlu0 %1603  ;;  %v3976_v52 = vld [vmem:[%s7307_s2 + $0x178] sm:$0xff] }
 0x2d0   :  { %4946 = vmatprep.subr.mxu1 %v5330_v44  ;;  %4892 = vmatpush3.msra.mxu0 %v6140_v12  ;;  %v3979_v61 = vld [vmem:[%s7307_s2 + $0x190] sm:$0xff] }
 0x2d1   :  { %4947 = vmatpush3.msra.mxu1 %v6126_v10  ;;  %4893 = vmatprep.subr.mxu0 %v5330_v44  ;;  %v6320_v4 = vpop.f32.mrf.mxu0 }
 0x2d2   :  { %4948 = vmatprep.subr.mxu1 %v5330_v44  ;;  %4809 = vmatprep.mubr.msk.f32.mxu0 %vm5333_vm1, %v5330_v44 }
 0x2d3   :  { %4865 = vmatprep.mubr.msk.f32.mxu1 %vm5333_vm1, %v5330_v44  ;;  %4894 = vmatpush3.msra.mxu0 %v6166_v17  ;;  %v4690_v62 = vpop.f32.mrf.mxu0  ;;  %v1602_v38 = vpop.permute.xlu0 %1601 }
 0x2d4   :  { %4949 = vmatpush3.msra.mxu1 %v6138_v11  ;;  %4810 = vmatmul.mubr.f32.gmra.mxu0 %v3960_v56  ;;  %v3970_v11 = vld [vmem:[%s7307_s2 + $0x148] sm:$0xff]  ;;  %v3977_v56 = vld [vmem:[%s7307_s2 + $0x180] sm:$0xff] }
 0x2d5   :  { %4895 = vmatprep.subr.mxu0 %v5330_v44  ;;  %4866 = vmatmul.mubr.f32.gmra.mxu1 %v3968_v59  ;;  %v6333_v42 = vpop.f32.mrf.mxu0 }
 0x2d6   :  { %4950 = vmatprep.subr.mxu1 %v5330_v44  ;;  %4896 = vmatpush3.msra.mxu0 %v6192_v25 }
 0x2d7   :  { %4951 = vmatpush3.msra.mxu1 %v6155_v32  ;;  %4897 = vmatprep.subr.mxu0 %v5330_v44  ;;  %v4693_v10 = vpop.f32.mrf.mxu0  ;;  %v1421_v32 = vpop.permute.xlu1 %1420 }
 0x2d8   :  { %4952 = vmatprep.subr.mxu1 %v5330_v44  ;;  %4812 = vmatprep.mubr.msk.f32.mxu0 %vm5333_vm1, %v5330_v44  ;;  %v1600_v17 = vpop.permute.xlu0 %1599 }
 0x2d9   :  { %4868 = vmatprep.mubr.msk.f32.mxu1 %vm5333_vm1, %v5330_v44  ;;  %4898 = vmatpush3.msra.mxu0 %v6215_v20  ;;  %v6351_v12 = vpop.f32.mrf.mxu0 }
 0x2da   :  { %4953 = vmatpush3.msra.mxu1 %v6175_v28  ;;  %4813 = vmatmul.mubr.f32.gmra.mxu0 %v3961_v1  ;;  %v3980_v1 = vld [vmem:[%s7307_s2 + $0x198] sm:$0xff] }
 0x2db   :  { %4899 = vmatprep.subr.mxu0 %v5330_v44  ;;  %4869 = vmatmul.mubr.f32.gmra.mxu1 %v3969_v5  ;;  %v4696_v34 = vpop.f32.mrf.mxu0  ;;  %v1419_v27 = vpop.permute.xlu1 %1418  ;;  %v3981_v5 = vld [vmem:[%s7307_s2 + $0x1a0] sm:$0xff] }
 0x2dc   :  { %4954 = vmatprep.subr.mxu1 %v5330_v44  ;;  %4900 = vmatpush3.msra.mxu0 %v6241_v39  ;;  %v1598_v20 = vpop.permute.xlu0 %1597  ;;  %v4002_v34 = vld [vmem:[%s7307_s2 + $0x248] sm:$0xff] }
 0x2dd   :  { %4955 = vmatpush3.msra.mxu1 %v6190_v23  ;;  %4901 = vmatprep.subr.mxu0 %v5330_v44  ;;  %v6361_v28 = vpop.f32.mrf.mxu0 }
 0x2de   :  { %4956 = vmatprep.subr.mxu1 %v5330_v44  ;;  %4815 = vmatprep.mubr.msk.f32.mxu0 %vm5333_vm1, %v5330_v44 }
 0x2df   :  { %4871 = vmatprep.mubr.msk.f32.mxu1 %vm5333_vm1, %v5330_v44  ;;  %4902 = vmatpush3.msra.mxu0 %v6267_v48  ;;  %v4699_v23 = vpop.f32.mrf.mxu0  ;;  %v1417_v39 = vpop.permute.xlu1 %1416 }
 0x2e0   :  { %4957 = vmatpush3.msra.mxu1 %v6206_v22  ;;  %4816 = vmatmul.mubr.f32.gmra.mxu0 %v3962_v8  ;;  %v3964_v22 = vld [vmem:[%s7307_s2 + $0x118] sm:$0xff]  ;;  %v1596_v43 = vpop.permute.xlu0 %1595 }
 0x2e1   :  { %4903 = vmatprep.subr.mxu0 %v5330_v44  ;;  %4872 = vmatmul.mubr.f32.gmra.mxu1 %v3970_v11  ;;  %v6373_v25 = vpop.f32.mrf.mxu0  ;;  %v4001_v11 = vld [vmem:[%s7307_s2 + $0x240] sm:$0xff] }
 0x2e2   :  { %4958 = vmatprep.subr.mxu1 %v5330_v44  ;;  %4904 = vmatpush3.msra.mxu0 %v1427_v55  ;;  %v3984_v55 = vld [vmem:[%s7307_s2 + $0x1b8] sm:$0xff] }
 0x2e3   :  { %4959 = vmatpush3.msra.mxu1 %v6274_v50  ;;  %4905 = vmatprep.subr.mxu0 %v5330_v44  ;;  %v4702_v33 = vpop.f32.mrf.mxu0  ;;  %v1594_v48 = vpop.permute.xlu1 %1593 }
 0x2e4   :  { %4960 = vmatprep.subr.mxu1 %v5330_v44  ;;  %4818 = vmatprep.mubr.msk.f32.mxu0 %vm5333_vm1, %v5330_v44  ;;  %v1801_v50 = vpop.permute.xlu0 %1800 }
 0x2e5   :  { %4874 = vmatprep.mubr.msk.f32.mxu1 %vm5333_vm1, %v5330_v44  ;;  %4906 = vmatpush3.msra.mxu0 %v1425_v63  ;;  %v6388_v18 = vpop.f32.mrf.mxu0 }
 0x2e6   :  { %4961 = vmatpush3.msra.mxu1 %v6298_v57  ;;  %4819 = vmatmul.mubr.f32.gmra.mxu0 %v3963_v30  ;;  %v4003_v30 = vld [vmem:[%s7307_s2 + $0x250] sm:$0xff] }
 0x2e7   :  { %4907 = vmatprep.subr.mxu0 %v5330_v44  ;;  %4875 = vmatmul.mubr.f32.gmra.mxu1 %v3971_v21  ;;  %v4705_v37 = vpop.f32.mrf.mxu0  ;;  %v1799_v53 = vpop.permute.xlu1 %1798  ;;  %v4004_v21 = vld [vmem:[%s7307_s2 + $0x258] sm:$0xff] }
 0x2e8   :  { %4962 = vmatprep.subr.mxu1 %v5330_v44  ;;  %4908 = vmatpush3.msra.mxu0 %v1423_v7  ;;  %v3982_v7 = vld [vmem:[%s7307_s2 + $0x1a8] sm:$0xff] }
 0x2e9   :  { %4963 = vmatpush3.msra.mxu1 %v1604_v2  ;;  %4909 = vmatprep.subr.mxu0 %v5330_v44  ;;  %v4006_v37 = vld [vmem:[%s7307_s2 + $0x268] sm:$0xff] }
 0x2ea   :  { %4964 = vmatprep.subr.mxu1 %v5330_v44  ;;  %4821 = vmatprep.mubr.msk.f32.mxu0 %vm5333_vm1, %v5330_v44 }
 0x2eb   :  { %4877 = vmatprep.mubr.msk.f32.mxu1 %vm5333_vm1, %v5330_v44  ;;  %4910 = vmatpush3.msra.mxu0 %v1421_v32  ;;  %v1795_v57 = vpop.permute.xlu1 %1794  ;;  %v3995_v32 = vld [vmem:[%s7307_s2 + $0x210] sm:$0xff] }
 0x2ec   :  { %4965 = vmatpush3.msra.mxu1 %v1602_v38  ;;  %4822 = vmatmul.mubr.f32.gmra.mxu0 %v3964_v22  ;;  %v3992_v38 = vld [vmem:[%s7307_s2 + $0x1f8] sm:$0xff]  ;;  %v4005_v22 = vld [vmem:[%s7307_s2 + $0x260] sm:$0xff] }
 0x2ed   :  { %4911 = vmatprep.subr.mxu0 %v5330_v44  ;;  %4878 = vmatmul.mubr.f32.gmra.mxu1 %v3972_v35  ;;  %v3998_v35 = vld [vmem:[%s7307_s2 + $0x228] sm:$0xff] }
 0x2ee   :  { %4966 = vmatprep.subr.mxu1 %v5330_v44  ;;  %4912 = vmatpush3.msra.mxu0 %v1419_v27  ;;  %v3997_v27 = vld [vmem:[%s7307_s2 + $0x220] sm:$0xff] }
 0x2ef   :  { %4967 = vmatpush3.msra.mxu1 %v1600_v17  ;;  %4913 = vmatprep.subr.mxu0 %v5330_v44  ;;  %v1791_v59 = vpop.permute.xlu1 %1790  ;;  %v3996_v17 = vld [vmem:[%s7307_s2 + $0x218] sm:$0xff] }
 0x2f0   :  { %4968 = vmatprep.subr.mxu1 %v5330_v44  ;;  %4880 = vmatprep.mubr.msk.f32.mxu1 %vm5333_vm1, %v5330_v44 }
 0x2f1   :  { %4914 = vmatpush3.msra.mxu0 %v1417_v39  ;;  %4915 = vmatprep.mubr.msk.f32.mxu0 %vm5333_vm1, %v5330_v44 }
 0x2f2   :  { %4969 = vmatpush3.msra.mxu1 %v1598_v20  ;;  %4916 = vmatmul.mubr.f32.vlgmr.msra.gmra.mxu0 %v3974_v14  ;;  %v3999_v14 = vld [vmem:[%s7307_s2 + $0x230] sm:$0xff] }
 0x2f3   :  { %4881 = vmatmul.mubr.f32.gmra.mxu1 %v3973_v45  ;;  %4970 = vmatprep.subr.mxu1 %v5330_v44  ;;  %v1787_v63 = vpop.permute.xlu1 %1786  ;;  %v4007_v45 = vld [vmem:[%s7307_s2 + $0x270] sm:$0xff] }
 0x2f4   :  { %4971 = vmatpush3.msra.mxu1 %v1596_v43  ;;  %4918 = vmatprep.mubr.msk.f32.mxu0 %vm5333_vm1, %v5330_v44 }
 0x2f5   :  { %4972 = vmatprep.subr.mxu1 %v5330_v44  ;;  %4974 = vmatprep.mubr.msk.f32.mxu1 %vm5333_vm1, %v5330_v44 }
 0x2f6   :  { %4973 = vmatpush3.msra.mxu1 %v1594_v48  ;;  %4919 = vmatmul.mubr.f32.gmra.mxu0 %v3975_v46  ;;  %v4000_v48 = vld [vmem:[%s7307_s2 + $0x238] sm:$0xff] }
 0x2f7   :  { %5001 = vmatprep.subr.mxu0 %v5330_v44  ;;  %4975 = vmatmul.mubr.f32.vlgmr.msra.gmra.mxu1 %v3983_v49  ;;  %v1783_v2 = vpop.permute.xlu1 %1782 }
 0x2f8   :  { %5060 = vmatprep.subr.mxu1 %v5330_v44  ;;  %5002 = vmatpush3.msra.mxu0 %v1801_v50  ;;  %v4008_v50 = vld [vmem:[%s7307_s2 + $0x278] sm:$0xff] }
 0x2f9   :  { %5061 = vmatpush3.msra.mxu1 %v6249_v41  ;;  %5003 = vmatprep.subr.mxu0 %v5330_v44  ;;  %v1797_v41 = vpop.permute.xlu0 %1796 }
 0x2fa   :  { %5062 = vmatprep.subr.mxu1 %v5330_v44  ;;  %4921 = vmatprep.mubr.msk.f32.mxu0 %vm5333_vm1, %v5330_v44 }
 0x2fb   :  { %4977 = vmatprep.mubr.msk.f32.mxu1 %vm5333_vm1, %v5330_v44  ;;  %5004 = vmatpush3.msra.mxu0 %v1799_v53  ;;  %v1779_v62 = vpop.permute.xlu1 %1778 }
 0x2fc   :  { %5063 = vmatpush3.msra.mxu1 %v6264_v47  ;;  %4922 = vmatmul.mubr.f32.gmra.mxu0 %v3976_v52  ;;  %v3985_v47 = vld [vmem:[%s7307_s2 + $0x1c0] sm:$0xff] }
 0x2fd   :  { %5005 = vmatprep.subr.mxu0 %v5330_v44  ;;  %4978 = vmatmul.mubr.f32.gmra.mxu1 %v3984_v55  ;;  %v4009_v55 = vld [vmem:[%s7307_s2 + $0x280] sm:$0xff] }
 0x2fe   :  { %5064 = vmatprep.subr.mxu1 %v5330_v44  ;;  %5006 = vmatpush3.msra.mxu0 %v1797_v41 }
 0x2ff   :  { %5065 = vmatpush3.msra.mxu1 %v6218_v31  ;;  %5007 = vmatprep.subr.mxu0 %v5330_v44  ;;  %v1793_v31 = vpop.permute.xlu0 %1792  ;;  %v1775_v8 = vpop.permute.xlu1 %1774 }
 0x300   :  { %5066 = vmatprep.subr.mxu1 %v5330_v44  ;;  %4924 = vmatprep.mubr.msk.f32.mxu0 %vm5333_vm1, %v5330_v44 }
 0x301   :  { %4980 = vmatprep.mubr.msk.f32.mxu1 %vm5333_vm1, %v5330_v44  ;;  %5008 = vmatpush3.msra.mxu0 %v1795_v57 }
 0x302   :  { %5067 = vmatpush3.msra.mxu1 %v6234_v16  ;;  %4925 = vmatmul.mubr.f32.gmra.mxu0 %v3977_v56  ;;  %v3986_v16 = vld [vmem:[%s7307_s2 + $0x1c8] sm:$0xff] }
 0x303   :  { %5009 = vmatprep.subr.mxu0 %v5330_v44  ;;  %4981 = vmatmul.mubr.f32.gmra.mxu1 %v3985_v47  ;;  %v1771_v10 = vpop.permute.xlu1 %1770 }
 0x304   :  { %5068 = vmatprep.subr.mxu1 %v5330_v44  ;;  %5010 = vmatpush3.msra.mxu0 %v1793_v31 }
 0x305   :  { %5069 = vmatpush3.msra.mxu1 %v6196_v24  ;;  %5011 = vmatprep.subr.mxu0 %v5330_v44  ;;  %v1789_v24 = vpop.permute.xlu0 %1788 }
 0x306   :  { %5070 = vmatprep.subr.mxu1 %v5330_v44  ;;  %4927 = vmatprep.mubr.msk.f32.mxu0 %vm5333_vm1, %v5330_v44 }
 0x307   :  { %4983 = vmatprep.mubr.msk.f32.mxu1 %vm5333_vm1, %v5330_v44  ;;  %5012 = vmatpush3.msra.mxu0 %v1791_v59 }
 0x308   :  { %5071 = vmatpush3.msra.mxu1 %v6211_v29  ;;  %4928 = vmatmul.mubr.f32.gmra.mxu0 %v3978_v58  ;;  %v3987_v29 = vld [vmem:[%s7307_s2 + $0x1d0] sm:$0xff] }
 0x309   :  { %5013 = vmatprep.subr.mxu0 %v5330_v44  ;;  %4984 = vmatmul.mubr.f32.gmra.mxu1 %v3986_v16 }
 0x30a   :  { %5072 = vmatprep.subr.mxu1 %v5330_v44  ;;  %5014 = vmatpush3.msra.mxu0 %v1789_v24 }
 0x30b   :  { %5073 = vmatpush3.msra.mxu1 %v6171_v19  ;;  %5015 = vmatprep.subr.mxu0 %v5330_v44  ;;  %v1785_v19 = vpop.permute.xlu0 %1784 }
 0x30c   :  { %5074 = vmatprep.subr.mxu1 %v5330_v44  ;;  %4930 = vmatprep.mubr.msk.f32.mxu0 %vm5333_vm1, %v5330_v44 }
 0x30d   :  { %4986 = vmatprep.mubr.msk.f32.mxu1 %vm5333_vm1, %v5330_v44  ;;  %5016 = vmatpush3.msra.mxu0 %v1787_v63 }
 0x30e   :  { %5075 = vmatpush3.msra.mxu1 %v6185_v26  ;;  %4931 = vmatmul.mubr.f32.gmra.mxu0 %v3979_v61  ;;  %v3988_v26 = vld [vmem:[%s7307_s2 + $0x1d8] sm:$0xff] }
 0x30f   :  { %5017 = vmatprep.subr.mxu0 %v5330_v44  ;;  %4987 = vmatmul.mubr.f32.gmra.mxu1 %v3987_v29 }
 0x310   :  { %5076 = vmatprep.subr.mxu1 %v5330_v44  ;;  %5018 = vmatpush3.msra.mxu0 %v1785_v19 }
 0x311   :  { %5077 = vmatpush3.msra.mxu1 %v6147_v13  ;;  %5019 = vmatprep.subr.mxu0 %v5330_v44  ;;  %v1781_v13 = vpop.permute.xlu0 %1780 }
 0x312   :  { %5078 = vmatprep.subr.mxu1 %v5330_v44  ;;  %4933 = vmatprep.mubr.msk.f32.mxu0 %vm5333_vm1, %v5330_v44 }
 0x313   :  { %4989 = vmatprep.mubr.msk.f32.mxu1 %vm5333_vm1, %v5330_v44  ;;  %5020 = vmatpush3.msra.mxu0 %v1783_v2 }
 0x314   :  { %5079 = vmatpush3.msra.mxu1 %v6159_v15  ;;  %4934 = vmatmul.mubr.f32.gmra.mxu0 %v3980_v1  ;;  %v3989_v15 = vld [vmem:[%s7307_s2 + $0x1e0] sm:$0xff] }
 0x315   :  { %5021 = vmatprep.subr.mxu0 %v5330_v44  ;;  %4990 = vmatmul.mubr.f32.gmra.mxu1 %v3988_v26 }
 0x316   :  { %5080 = vmatprep.subr.mxu1 %v5330_v44  ;;  %5022 = vmatpush3.msra.mxu0 %v1781_v13 }
 0x317   :  { %5081 = vmatpush3.msra.mxu1 %v6119_v9  ;;  %5023 = vmatprep.subr.mxu0 %v5330_v44  ;;  %v1777_v9 = vpop.permute.xlu0 %1776 }
 0x318   :  { %5082 = vmatprep.subr.mxu1 %v5330_v44  ;;  %4936 = vmatprep.mubr.msk.f32.mxu0 %vm5333_vm1, %v5330_v44 }
 0x319   :  { %4992 = vmatprep.mubr.msk.f32.mxu1 %vm5333_vm1, %v5330_v44  ;;  %5024 = vmatpush3.msra.mxu0 %v1779_v62 }
 0x31a   :  { %5083 = vmatpush3.msra.mxu1 %v6134_v36  ;;  %4937 = vmatmul.mubr.f32.gmra.mxu0 %v3981_v5  ;;  %v3990_v36 = vld [vmem:[%s7307_s2 + $0x1e8] sm:$0xff] }
 0x31b   :  { %5025 = vmatprep.subr.mxu0 %v5330_v44  ;;  %4993 = vmatmul.mubr.f32.gmra.mxu1 %v3989_v15 }
 0x31c   :  { %5084 = vmatprep.subr.mxu1 %v5330_v44  ;;  %5026 = vmatpush3.msra.mxu0 %v1777_v9 }
 0x31d   :  { %5085 = vmatpush3.msra.mxu1 %v6096_v6  ;;  %5027 = vmatprep.subr.mxu0 %v5330_v44  ;;  %v1773_v6 = vpop.permute.xlu0 %1772 }
 0x31e   :  { %5086 = vmatprep.subr.mxu1 %v5330_v44  ;;  %4939 = vmatprep.mubr.msk.f32.mxu0 %vm5333_vm1, %v5330_v44 }
 0x31f   :  { %4995 = vmatprep.mubr.msk.f32.mxu1 %vm5333_vm1, %v5330_v44  ;;  %5028 = vmatpush3.msra.mxu0 %v1775_v8 }
 0x320   :  { %5087 = vmatpush3.msra.mxu1 %v6112_v40  ;;  %4940 = vmatmul.mubr.f32.gmra.mxu0 %v3982_v7  ;;  %v3991_v40 = vld [vmem:[%s7307_s2 + $0x1f0] sm:$0xff] }
 0x321   :  { %5029 = vmatprep.subr.mxu0 %v5330_v44  ;;  %4996 = vmatmul.mubr.f32.gmra.mxu1 %v3990_v36 }
 0x322   :  { %5088 = vmatprep.subr.mxu1 %v5330_v44  ;;  %5030 = vmatpush3.msra.mxu0 %v1773_v6 }
 0x323   :  { %5089 = vmatpush3.msra.mxu1 %v6071_v0  ;;  %5031 = vmatprep.subr.mxu0 %v5330_v44  ;;  %v3993_v0 = vld [vmem:[%s7307_s2 + $0x200] sm:$0xff] }
 0x324   :  { %5090 = vmatprep.subr.mxu1 %v5330_v44  ;;  %4998 = vmatprep.mubr.msk.f32.mxu1 %vm5333_vm1, %v5330_v44 }
 0x325   :  { %5032 = vmatpush3.msra.mxu0 %v1771_v10  ;;  %5033 = vmatprep.mubr.msk.f32.mxu0 %vm5333_vm1, %v5330_v44 }
 0x326   :  { %5091 = vmatpush3.msra.mxu1 %v6079_v3  ;;  %5034 = vmatmul.mubr.f32.vlgmr.msra.gmra.mxu0 %v3992_v38  ;;  %v3994_v3 = vld [vmem:[%s7307_s2 + $0x208] sm:$0xff] }
 0x327   :  { %4999 = vmatmul.mubr.f32.gmra.mxu1 %v3991_v40  ;;  %5036 = vmatprep.mubr.msk.f32.mxu0 %vm5333_vm1, %v5330_v44 }
 0x328   :  { %5092 = vmatprep.mubr.msk.f32.mxu1 %vm5333_vm1, %v5330_v44  ;;  %5119 = vmatprep.subr.mxu0 %v5330_v44 }
 0x329   :  { %5146 = vmatprep.subr.mxu1 %v5330_v44 }
 0x32a   :  { %5037 = vmatmul.mubr.f32.gmra.mxu0 %v3993_v0 }
 0x32b   :  { %5093 = vmatmul.mubr.f32.vlgmr.msra.gmra.mxu1 %v4001_v11  ;;  %5039 = vmatprep.mubr.msk.f32.mxu0 %vm5333_vm1, %v5330_v44 }
 0x32c   :  { %5095 = vmatprep.mubr.msk.f32.mxu1 %vm5333_vm1, %v5330_v44 }
 0x32e   :  { %5040 = vmatmul.mubr.f32.gmra.mxu0 %v3994_v3 }
 0x32f   :  { %5096 = vmatmul.mubr.f32.gmra.mxu1 %v4002_v34  ;;  %5042 = vmatprep.mubr.msk.f32.mxu0 %vm5333_vm1, %v5330_v44 }
 0x330   :  { %5098 = vmatprep.mubr.msk.f32.mxu1 %vm5333_vm1, %v5330_v44 }
 0x332   :  { %5043 = vmatmul.mubr.f32.gmra.mxu0 %v3995_v32 }
 0x333   :  { %5099 = vmatmul.mubr.f32.gmra.mxu1 %v4003_v30  ;;  %5045 = vmatprep.mubr.msk.f32.mxu0 %vm5333_vm1, %v5330_v44 }
 0x334   :  { %5101 = vmatprep.mubr.msk.f32.mxu1 %vm5333_vm1, %v5330_v44 }
 0x336   :  { %5046 = vmatmul.mubr.f32.gmra.mxu0 %v3996_v17  ;;  %v753_v23 = vpop.f32.mrf.mxu1 }
 0x337   :  { %5102 = vmatmul.mubr.f32.gmra.mxu1 %v4004_v21  ;;  %5048 = vmatprep.mubr.msk.f32.mxu0 %vm5333_vm1, %v5330_v44  ;;  %v864_v61 = vadd.f32 %v6276_v51, %v753_v23 }
 0x338   :  { %5104 = vmatprep.mubr.msk.f32.mxu1 %vm5333_vm1, %v5330_v44  ;;  %v4622_v20 = vpop.f32.mrf.mxu1 }
 0x33a   :  { %5049 = vmatmul.mubr.f32.gmra.mxu0 %v3997_v27  ;;  %v758_v33 = vpop.f32.mrf.mxu1 }
 0x33b   :  { %5105 = vmatmul.mubr.f32.gmra.mxu1 %v4005_v22  ;;  %5051 = vmatprep.mubr.msk.f32.mxu0 %vm5333_vm1, %v5330_v44  ;;  %v869_v1 = vadd.f32 %v6289_v54, %v758_v33 }
 0x33c   :  { %5107 = vmatprep.mubr.msk.f32.mxu1 %vm5333_vm1, %v5330_v44  ;;  %v4625_v39 = vpop.f32.mrf.mxu1 }
 0x33e   :  { %5052 = vmatmul.mubr.f32.gmra.mxu0 %v3998_v35 }
 0x33f   :  { %5108 = vmatmul.mubr.f32.gmra.mxu1 %v4006_v37  ;;  %5054 = vmatprep.mubr.msk.f32.mxu0 %vm5333_vm1, %v5330_v44  ;;  %v763_v43 = vpop.f32.mrf.mxu1 }
 0x340   :  { %5110 = vmatprep.mubr.msk.f32.mxu1 %vm5333_vm1, %v5330_v44  ;;  %v874_v5 = vadd.f32 %v6309_v60, %v763_v43 }
 0x341   :  { %v4628_v46 = vpop.f32.mrf.mxu1 }
 0x342   :  { %5055 = vmatmul.mubr.f32.gmra.mxu0 %v3999_v14 }
 0x343   :  { %5111 = vmatmul.mubr.f32.gmra.mxu1 %v4007_v45  ;;  %5057 = vmatprep.mubr.msk.f32.mxu0 %vm5333_vm1, %v5330_v44  ;;  %v768_v49 = vpop.f32.mrf.mxu1 }
 0x344   :  { %5113 = vmatprep.mubr.msk.f32.mxu1 %vm5333_vm1, %v5330_v44  ;;  %v879_v7 = vadd.f32 %v6320_v4, %v768_v49 }
 0x345   :  { %v4631_v52 = vpop.f32.mrf.mxu1 }
 0x346   :  { %5058 = vmatmul.mubr.f32.gmra.mxu0 %v4000_v48 }
 0x347   :  { %5114 = vmatmul.mubr.f32.gmra.mxu1 %v4008_v50  ;;  %v773_v53 = vpop.f32.mrf.mxu1  ;;  %5137 = vmatprep.mubr.msk.f32.mxu0 %vm5333_vm1, %v5330_v44 }
 0x348   :  { %5116 = vmatprep.mubr.msk.f32.mxu1 %vm5333_vm1, %v5330_v44  ;;  %v884_v51 = vadd.f32 %v6333_v42, %v773_v53 }
 0x349   :  { %v4634_v41 = vpop.f32.mrf.mxu1 }
 0x34b   :  { %5117 = vmatmul.mubr.f32.gmra.mxu1 %v4009_v55  ;;  %v778_v56 = vpop.f32.mrf.mxu1 }
 0x34c   :  { %5164 = vmatprep.mubr.msk.f32.mxu1 %vm5333_vm1, %v5330_v44  ;;  %v889_v54 = vadd.f32 %v6351_v12, %v778_v56 }
 0x34d   :  { %v4637_v57 = vpop.f32.mrf.mxu1 }
 0x34f   :  { %v783_v47 = vpop.f32.mrf.mxu1 }
 0x350   :  { %v894_v60 = vadd.f32 %v6361_v28, %v783_v47 }
 0x351   :  { %v4640_v31 = vpop.f32.mrf.mxu1 }
 0x353   :  { %v788_v58 = vpop.f32.mrf.mxu1 }
 0x354   :  { %v899_v4 = vadd.f32 %v6373_v25, %v788_v58 }
 0x355   :  { %v4643_v59 = vpop.f32.mrf.mxu1 }
 0x357   :  { %v793_v16 = vpop.f32.mrf.mxu1 }
 0x358   :  { %v904_v42 = vadd.f32 %v6388_v18, %v793_v16 }
 0x359   :  { %v4646_v24 = vpop.f32.mrf.mxu1 }
 0x35b   :  { %v1031_v63 = vpop.f32.mrf.mxu1 }
 0x35c   :  { %v1075_v29 = vadd.f32 %v1031_v63, %v864_v61 }
 0x35d   :  { %v4740_v19 = vpop.f32.mrf.mxu1 }
 0x360   :  { %v1036_v2 = vpop.f32.mrf.mxu1 }
 0x361   :  { %v1076_v26 = vadd.f32 %v1036_v2, %v869_v1 }
 0x362   :  { %v4743_v13 = vpop.f32.mrf.mxu1 }
 0x365   :  { %v1041_v62 = vpop.f32.mrf.mxu1 }
 0x366   :  { %v1077_v15 = vadd.f32 %v1041_v62, %v874_v5 }
 0x367   :  { %v4746_v9 = vpop.f32.mrf.mxu1 }
 0x36a   :  { %v1046_v8 = vpop.f32.mrf.mxu1 }
 0x36b   :  { %v1078_v36 = vadd.f32 %v1046_v8, %v879_v7 }
 0x36c   :  { %v4749_v6 = vpop.f32.mrf.mxu1 }
 0x36f   :  { %v1051_v38 = vpop.f32.mrf.mxu1 }
 0x370   :  { %v1079_v10 = vadd.f32 %v1051_v38, %v884_v51 }
 0x371   :  { %v4752_v40 = vpop.f32.mrf.mxu1 }
 0x374   :  { %v1056_v0 = vpop.f32.mrf.mxu1 }
 0x375   :  { %v1080_v11 = vadd.f32 %v1056_v0, %v889_v54 }
 0x376   :  { %v4755_v3 = vpop.f32.mrf.mxu1 }
 0x379   :  { %v1061_v34 = vpop.f32.mrf.mxu1 }
 0x37a   :  { %v1081_v32 = vadd.f32 %v1061_v34, %v894_v60 }
 0x37b   :  { %v4758_v30 = vpop.f32.mrf.mxu1 }
 0x37e   :  { %v1066_v17 = vpop.f32.mrf.mxu1 }
 0x37f   :  { %v1082_v21 = vadd.f32 %v1066_v17, %v899_v4 }
 0x380   :  { %v4761_v23 = vpop.f32.mrf.mxu1 }
 0x382   :  { %v1208_v27 = vpop.f32.mrf.mxu0 }
 0x383   :  { %v1071_v22 = vpop.f32.mrf.mxu1  ;;  %v1252_v20 = vadd.f32 %v1208_v27, %v1075_v29 }
 0x384   :  { %v1083_v33 = vadd.f32 %v1071_v22, %v904_v42  ;;  %v4799_v12 = vpop.f32.mrf.mxu0 }
 0x385   :  { %v4764_v35 = vpop.f32.mrf.mxu1 }
 0x386   :  { %v1213_v37 = vpop.f32.mrf.mxu0 }
 0x387   :  { %v1253_v39 = vadd.f32 %v1213_v37, %v1076_v26  ;;  %v1337_v14 = vpop.f32.mrf.mxu1 }
 0x388   :  { %v1381_v28 = vadd.f32 %v1337_v14, %v1252_v20  ;;  %v4802_v43 = vpop.f32.mrf.mxu0 }
 0x389   :  { %v4858_v45 = vpop.f32.mrf.mxu1 }
 0x38a   :  { %v1218_v46 = vpop.f32.mrf.mxu0 }
 0x38b   :  { %v1254_v48 = vadd.f32 %v1218_v46, %v1077_v15  ;;  %v1342_v25 = vpop.f32.mrf.mxu1 }
 0x38c   :  { %v1382_v49 = vadd.f32 %v1342_v25, %v1253_v39  ;;  %v4805_v50 = vpop.f32.mrf.mxu0 }
 0x38d   :  { %v4861_v52 = vpop.f32.mrf.mxu1 }
 0x38e   :  { %v1223_v53 = vpop.f32.mrf.mxu0 }
 0x38f   :  { %v1255_v18 = vadd.f32 %v1223_v53, %v1078_v36  ;;  %v1347_v55 = vpop.f32.mrf.mxu1 }
 0x390   :  { %v1383_v41 = vadd.f32 %v1347_v55, %v1254_v48  ;;  %v4808_v56 = vpop.f32.mrf.mxu0 }
 0x391   :  { %v4864_v57 = vpop.f32.mrf.mxu1 }
 0x394   :  { %v1228_v47 = vpop.f32.mrf.mxu0 }
 0x395   :  { %v1256_v31 = vadd.f32 %v1228_v47, %v1079_v10  ;;  %v1352_v58 = vpop.f32.mrf.mxu1 }
 0x396   :  { %v1384_v59 = vadd.f32 %v1352_v58, %v1255_v18  ;;  %v4811_v16 = vpop.f32.mrf.mxu0 }
 0x397   :  { %v4867_v24 = vpop.f32.mrf.mxu1 }
 0x39a   :  { %v1233_v61 = vpop.f32.mrf.mxu0 }
 0x39b   :  { %v1257_v63 = vadd.f32 %v1233_v61, %v1080_v11  ;;  %v1357_v29 = vpop.f32.mrf.mxu1 }
 0x39c   :  { %v1385_v19 = vadd.f32 %v1357_v29, %v1256_v31  ;;  %v4814_v1 = vpop.f32.mrf.mxu0 }
 0x39d   :  { %v4870_v2 = vpop.f32.mrf.mxu1 }
 0x3a0   :  { %v1238_v26 = vpop.f32.mrf.mxu0 }
 0x3a1   :  { %v1258_v13 = vadd.f32 %v1238_v26, %v1081_v32  ;;  %v1362_v5 = vpop.f32.mrf.mxu1 }
 0x3a2   :  { %v6644_v62 = vadd.f32 %v1362_v5, %v1257_v63  ;;  %v4817_v15 = vpop.f32.mrf.mxu0 }
 0x3a3   :  { %v4873_v9 = vpop.f32.mrf.mxu1 }
 0x3a6   :  { %v1243_v7 = vpop.f32.mrf.mxu0 }
 0x3a7   :  { %v1259_v8 = vadd.f32 %v1243_v7, %v1082_v21  ;;  %v1367_v36 = vpop.f32.mrf.mxu1 }
 0x3a8   :  { %v6646_v6 = vadd.f32 %v1367_v36, %v1258_v13  ;;  %v4820_v51 = vpop.f32.mrf.mxu0 }
 0x3a9   :  { %v4876_v38 = vpop.f32.mrf.mxu1 }
 0x3ac   :  { %v1248_v10 = vpop.f32.mrf.mxu0 }
 0x3ad   :  { %v1260_v40 = vadd.f32 %v1248_v10, %v1083_v33  ;;  %v1372_v54 = vpop.f32.mrf.mxu1 }
 0x3ae   :  { %v6648_v0 = vadd.f32 %v1372_v54, %v1259_v8  ;;  %v4823_v11 = vpop.f32.mrf.mxu0 }
 0x3af   :  { %v4879_v3 = vpop.f32.mrf.mxu1 }
 0x3b2   :  { %v1530_v60 = vpop.f32.mrf.mxu0 }
 0x3b3   :  { %v1377_v34 = vpop.f32.mrf.mxu1  ;;  %v1574_v32 = vadd.f32 %v1530_v60, %v1381_v28 }
 0x3b4   :  { %v6650_v30 = vadd.f32 %v1377_v34, %v1260_v40  ;;  %v4917_v4 = vpop.f32.mrf.mxu0 }
 0x3b5   :  { %v4882_v17 = vpop.f32.mrf.mxu1 }
 0x3b6   :  { %v1535_v21 = vpop.f32.mrf.mxu0 }
 0x3b7   :  { %v1575_v23 = vadd.f32 %v1535_v21, %v1382_v49  ;;  %v1707_v42 = vpop.f32.mrf.mxu1 }
 0x3b8   :  { %v6652_v27 = vadd.f32 %v1707_v42, %v1574_v32  ;;  %v4920_v22 = vpop.f32.mrf.mxu0 }
 0x3b9   :  { %v4976_v20 = vpop.f32.mrf.mxu1 }
 0x3bc   :  { %v1540_v33 = vpop.f32.mrf.mxu0 }
 0x3bd   :  { %v1576_v12 = vadd.f32 %v1540_v33, %v1383_v41  ;;  %v1712_v35 = vpop.f32.mrf.mxu1 }
 0x3be   :  { %v6654_v37 = vadd.f32 %v1712_v35, %v1575_v23  ;;  %v4923_v39 = vpop.f32.mrf.mxu0 }
 0x3bf   :  { %v4979_v14 = vpop.f32.mrf.mxu1 }
 0x3c2   :  { %v1545_v43 = vpop.f32.mrf.mxu0 }
 0x3c3   :  { %v1577_v28 = vadd.f32 %v1545_v43, %v1384_v59  ;;  %v1717_v45 = vpop.f32.mrf.mxu1 }
 0x3c4   :  { %v6656_v46 = vadd.f32 %v1717_v45, %v1576_v12  ;;  %v4926_v48 = vpop.f32.mrf.mxu0 }
 0x3c5   :  { %v4982_v25 = vpop.f32.mrf.mxu1 }
 0x3c8   :  { %v1550_v49 = vpop.f32.mrf.mxu0 }
 0x3c9   :  { %v1578_v50 = vadd.f32 %v1550_v49, %v1385_v19  ;;  %v1722_v52 = vpop.f32.mrf.mxu1 }
 0x3ca   :  { %v6658_v53 = vadd.f32 %v1722_v52, %v1577_v28  ;;  %v4929_v18 = vpop.f32.mrf.mxu0 }
 0x3cb   :  { %v4985_v55 = vpop.f32.mrf.mxu1 }
 0x3ce   :  { %v1555_v41 = vpop.f32.mrf.mxu0 }
 0x3cf   :  { %v1727_v56 = vpop.f32.mrf.mxu1 }
 0x3d0   :  { %v6660_v57 = vadd.f32 %v1727_v56, %v1578_v50  ;;  %v4932_v47 = vpop.f32.mrf.mxu0  ;;  %v1579_v56 = vadd.f32 %v1555_v41, %v6644_v62 }
 0x3d1   :  { %v4988_v31 = vpop.f32.mrf.mxu1 }
 0x3d4   :  { %v1560_v58 = vpop.f32.mrf.mxu0 }
 0x3d5   :  { %v1732_v59 = vpop.f32.mrf.mxu1  ;;  %v1580_v49 = vadd.f32 %v1560_v58, %v6646_v6 }
 0x3d6   :  { %v4935_v16 = vpop.f32.mrf.mxu0 }
 0x3d7   :  { %v4991_v24 = vpop.f32.mrf.mxu1 }
 0x3da   :  { %v1565_v61 = vpop.f32.mrf.mxu0 }
 0x3db   :  { %v1737_v63 = vpop.f32.mrf.mxu1  ;;  %v1581_v45 = vadd.f32 %v1565_v61, %v6648_v0 }
 0x3dc   :  { %v4938_v29 = vpop.f32.mrf.mxu0  ;;  %v1757_v47 = vadd.f32 %v1737_v63, %v1580_v49  ;;  %v2487_v49 = vld [vmem:[%s7310_s7 + $0x78] sm:$0xff] }
 0x3dd   :  { %v4994_v1 = vpop.f32.mrf.mxu1 }
 0x3de   :  { %v1756_v1 = vadd.f32 %v1732_v59, %v1579_v56  ;;  %v2486_v56 = vld [vmem:[%s7310_s7 + $0x70] sm:$0xff] }
 0x3e0   :  { %v1570_v19 = vpop.f32.mrf.mxu0 }
 0x3e1   :  { %v1742_v2 = vpop.f32.mrf.mxu1  ;;  %v1582_v50 = vadd.f32 %v1570_v19, %v6650_v30  ;;  %v4010_v30 = vld [vmem:[%s7308_s4] ss:$0 sm:$0xff] }
 0x3e2   :  { %v4941_v26 = vpop.f32.mrf.mxu0  ;;  %v1758_v52 = vadd.f32 %v1742_v2, %v1581_v45  ;;  %v4022_v45 = vld [vmem:[%s7309_s5 + $0x40] sm:$0xff] }
 0x3e3   :  { %v4997_v13 = vpop.f32.mrf.mxu1 }
 0x3e6   :  { %v6662_v5 = vpop.f32.mrf.mxu0 }
 0x3e7   :  { %v1747_v15 = vpop.f32.mrf.mxu1 }
 0x3e8   :  { %v5035_v9 = vpop.f32.mrf.mxu0  ;;  %v1759_v31 = vadd.f32 %v1747_v15, %v1582_v50  ;;  %v2483_v50 = vld [vmem:[%s7310_s7 + $0x58] sm:$0xff] }
 0x3e9   :  { %v5000_v7 = vpop.f32.mrf.mxu1 }
 0x3ea   :  { %v6664_v8 = vpop.f32.mrf.mxu0 }
 0x3eb   :  { %v6666_v36 = vpop.f32.mrf.mxu1 }
 0x3ec   :  { %v5038_v51 = vpop.f32.mrf.mxu0 }
 0x3ed   :  { %v5094_v38 = vpop.f32.mrf.mxu1 }
 0x3ee   :  { %v1894_v10 = vpop.f32.mrf.mxu0 }
 0x3ef   :  { %v6668_v40 = vpop.f32.mrf.mxu1  ;;  %v1930_v38 = vadd.f32 %v1894_v10, %v6656_v46  ;;  %v1928_v46 = vadd.f32 %v6662_v5, %v6652_v27 }
 0x3f0   :  { %v5041_v54 = vpop.f32.mrf.mxu0 }
 0x3f1   :  { %v5097_v11 = vpop.f32.mrf.mxu1 }
 0x3f2   :  { %v1899_v3 = vpop.f32.mrf.mxu0 }
 0x3f3   :  { %v2023_v60 = vpop.f32.mrf.mxu1  ;;  %v1931_v2 = vadd.f32 %v1899_v3, %v6658_v53  ;;  %v1929_v53 = vadd.f32 %v6664_v8, %v6654_v37  ;;  %v2057_v37 = vadd.f32 %v6666_v36, %v1928_v46 }
 0x3f4   :  { %v5044_v34 = vpop.f32.mrf.mxu0 }
 0x3f5   :  { %v5100_v32 = vpop.f32.mrf.mxu1  ;;  %v2058_v10 = vadd.f32 %v6668_v40, %v1929_v53  ;;  %v2073_v40 = vadd.f32 %v4010_v30, %v2057_v37 }
 0x3f6   :  { %v1904_v4 = vpop.f32.mrf.mxu0 }
 0x3f7   :  { %v2028_v17 = vpop.f32.mrf.mxu1  ;;  %v1932_v62 = vadd.f32 %v1904_v4, %v6660_v57  ;;  %v2059_v57 = vadd.f32 %v2023_v60, %v1930_v38  ;;  %v2074_v27 = vadd.f32 %v4010_v30, %v2058_v10 }
 0x3f8   :  { %v5047_v21 = vpop.f32.mrf.mxu0  ;;  %v2060_v54 = vadd.f32 %v2028_v17, %v1931_v2 }
 0x3f9   :  { %v5103_v23 = vpop.f32.mrf.mxu1  ;;  %v2075_v8 = vadd.f32 %v4010_v30, %v2059_v57  ;;  %v2083_v36 = vmax.f32 %v2074_v27, 0.0  ;;  %v2485_v57 = vld [vmem:[%s7310_s7 + $0x68] sm:$0xff] }
 0x3fa   :  { %v1909_v42 = vpop.f32.mrf.mxu0  ;;  %v2076_v4 = vadd.f32 %v4010_v30, %v2060_v54  ;;  %v2082_v23 = vmax.f32 %v2073_v40, 0.0 }
 0x3fb   :  { %v2033_v22 = vpop.f32.mrf.mxu1  ;;  %v1933_v9 = vadd.f32 %v1909_v42, %v1756_v1  ;;  %v2084_v21 = vmax.f32 %v2075_v8, 0.0  ;;  %v2091_v42 = vld [vmem:[%s7309_s5] sm:$0xff]  ;;  %v2490_v1 = vld [vmem:[%s7310_s7 + $0x90] sm:$0xff]  ;;  %v2479_v8 = vld [vmem:[%s7310_s7 + $0x38] sm:$0xff] }
 0x3fc   :  { %v5050_v20 = vpop.f32.mrf.mxu0  ;;  %v2061_v59 = vadd.f32 %v2033_v22, %v1932_v62  ;;  %v2085_v5 = vmax.f32 %v2076_v4, 0.0  ;;  %v4014_v22 = vld [vmem:[%s7309_s5 + $0x18] sm:$0xff]  ;;  %v2480_v4 = vld [vmem:[%s7310_s7 + $0x40] sm:$0xff] }
 0x3fd   :  { %v5106_v33 = vpop.f32.mrf.mxu1  ;;  %v2092_v20 = vld [vmem:[%s7309_s5 + $0x8] sm:$0xff] }
 0x3fe   :  { %v1914_v12 = vpop.f32.mrf.mxu0  ;;  %v2077_v3 = vadd.f32 %v4010_v30, %v2061_v59  ;;  %v4015_v33 = vld [vmem:[%s7309_s5 + $0x20] sm:$0xff] }
 0x3ff   :  { %v2038_v35 = vpop.f32.mrf.mxu1  ;;  %v1934_v26 = vadd.f32 %v1914_v12, %v1757_v47  ;;  %v2093_v12 = vld [vmem:[%s7309_s5 + $0x10] sm:$0xff]  ;;  %v2477_v47 = vld [vmem:[%s7310_s7 + $0x28] sm:$0xff] }
 0x400   :  { %v5053_v39 = vpop.f32.mrf.mxu0  ;;  %v2062_v41 = vadd.f32 %v2038_v35, %v1933_v9  ;;  %v2086_v60 = vmax.f32 %v2077_v3, 0.0  ;;  %v4016_v35 = vld [vmem:[%s7309_s5 + $0x28] sm:$0xff] }
 0x401   :  { %v5109_v14 = vpop.f32.mrf.mxu1  ;;  %v4020_v39 = vld [vmem:[%s7309_s5 + $0x30] sm:$0xff] }
 0x402   :  { %v1919_v43 = vpop.f32.mrf.mxu0  ;;  %v2078_v11 = vadd.f32 %v4010_v30, %v2062_v41  ;;  %v4026_v14 = vld [vmem:[%s7309_s5 + $0x48] sm:$0xff] }
 0x403   :  { %v2043_v28 = vpop.f32.mrf.mxu1  ;;  %v1935_v16 = vadd.f32 %v1919_v43, %v1758_v52  ;;  %v4021_v43 = vld [vmem:[%s7309_s5 + $0x38] sm:$0xff] }
 0x404   :  { %v5056_v48 = vpop.f32.mrf.mxu0  ;;  %v2063_v7 = vadd.f32 %v2043_v28, %v1934_v26  ;;  %v2087_v17 = vmax.f32 %v2078_v11, 0.0  ;;  %v4027_v28 = vld [vmem:[%s7309_s5 + $0x50] sm:$0xff]  ;;  %v2491_v52 = vld [vmem:[%s7310_s7 + $0x98] sm:$0xff]  ;;  %v2489_v11 = vld [vmem:[%s7310_s7 + $0x88] sm:$0xff] }
 0x405   :  { %v5112_v25 = vpop.f32.mrf.mxu1  ;;  %v4028_v48 = vld [vmem:[%s7309_s5 + $0x58] sm:$0xff] }
 0x406   :  { %v1924_v18 = vpop.f32.mrf.mxu0  ;;  %v2079_v15 = vadd.f32 %v4010_v30, %v2063_v7  ;;  %v2488_v25 = vld [vmem:[%s7310_s7 + $0x80] sm:$0xff] }
 0x407   :  { %v2048_v55 = vpop.f32.mrf.mxu1  ;;  %v1936_v13 = vadd.f32 %v1924_v18, %v1759_v31  ;;  %v2482_v18 = vld [vmem:[%s7310_s7 + $0x50] sm:$0xff]  ;;  %v2473_v31 = vld [vmem:[%s7310_s7 + $0x8] sm:$0xff] }
 0x408   :  { %v5059_v24 = vpop.f32.mrf.mxu0  ;;  %v2064_v0 = vadd.f32 %v2048_v55, %v1935_v16  ;;  %v2088_v32 = vmax.f32 %v2079_v15, 0.0  ;;  %v2478_v55 = vld [vmem:[%s7310_s7 + $0x30] sm:$0xff]  ;;  %v2481_v16 = vld [vmem:[%s7310_s7 + $0x48] sm:$0xff] }
 0x409   :  { %v5115_v29 = vpop.f32.mrf.mxu1  ;;  %v2472_v24 = vld [vmem:[%s7310_s7] sm:$0xff] }
 0x40a   :  { %v2080_v63 = vadd.f32 %v4010_v30, %v2064_v0  ;;  %v2476_v29 = vld [vmem:[%s7310_s7 + $0x20] sm:$0xff] }
 0x40b   :  { %v2053_v61 = vpop.f32.mrf.mxu1 }
 0x40c   :  { %v2065_v6 = vadd.f32 %v2053_v61, %v1936_v13  ;;  %v6682_v34 = vmax.f32 %v2080_v63, 0.0 }
 0x40d   :  { %v5118_v58 = vpop.f32.mrf.mxu1 }
 0x40e   :  { %v2081_v19 = vadd.f32 %v4010_v30, %v2065_v6 }
 0x410   :  { %v6679_v51 = vmax.f32 %v2081_v19, 0.0 }
 0x412   :  { %5120 = vmatpush3.msra.mxu0 %v6679_v51  ;;  %5147 = vmatpush3.msra.mxu1 %v6679_v51 }
 0x413   :  { %5121 = vmatprep.subr.mxu0 %v5330_v44  ;;  %5148 = vmatprep.subr.mxu1 %v5330_v44 }
 0x414   :  { %5122 = vmatpush3.msra.mxu0 %v6682_v34  ;;  %5149 = vmatpush3.msra.mxu1 %v6682_v34 }
 0x415   :  { %5123 = vmatprep.subr.mxu0 %v5330_v44  ;;  %5150 = vmatprep.subr.mxu1 %v5330_v44 }
 0x416   :  { %5124 = vmatpush3.msra.mxu0 %v2088_v32  ;;  %5151 = vmatpush3.msra.mxu1 %v2088_v32 }
 0x417   :  { %5125 = vmatprep.subr.mxu0 %v5330_v44  ;;  %5152 = vmatprep.subr.mxu1 %v5330_v44 }
 0x418   :  { %5126 = vmatpush3.msra.mxu0 %v2087_v17  ;;  %5153 = vmatpush3.msra.mxu1 %v2087_v17 }
 0x419   :  { %5127 = vmatprep.subr.mxu0 %v5330_v44  ;;  %5154 = vmatprep.subr.mxu1 %v5330_v44 }
 0x41a   :  { %5128 = vmatpush3.msra.mxu0 %v2086_v60  ;;  %5155 = vmatpush3.msra.mxu1 %v2086_v60 }
 0x41b   :  { %5129 = vmatprep.subr.mxu0 %v5330_v44  ;;  %5156 = vmatprep.subr.mxu1 %v5330_v44 }
 0x41c   :  { %5130 = vmatpush3.msra.mxu0 %v2085_v5  ;;  %5157 = vmatpush3.msra.mxu1 %v2085_v5 }
 0x41d   :  { %5131 = vmatprep.subr.mxu0 %v5330_v44  ;;  %5158 = vmatprep.subr.mxu1 %v5330_v44 }
 0x41e   :  { %5132 = vmatpush3.msra.mxu0 %v2084_v21  ;;  %5159 = vmatpush3.msra.mxu1 %v2084_v21 }
 0x41f   :  { %5133 = vmatprep.subr.mxu0 %v5330_v44  ;;  %5160 = vmatprep.subr.mxu1 %v5330_v44 }
 0x420   :  { %5134 = vmatpush3.msra.mxu0 %v2083_v36  ;;  %5161 = vmatpush3.msra.mxu1 %v2083_v36 }
 0x421   :  { %5135 = vmatprep.subr.mxu0 %v5330_v44  ;;  %5162 = vmatprep.subr.mxu1 %v5330_v44 }
 0x422   :  { %5136 = vmatpush3.msra.mxu0 %v2082_v23  ;;  %5163 = vmatpush3.msra.mxu1 %v2082_v23 }
 0x423   :  { %5173 = vmatprep.subr.mxu0 %v5330_v44  ;;  %5200 = vmatprep.subr.mxu1 %v5330_v44 }
 0x424   :  { %5138 = vmatmul.mubr.msk.f32.vlgmr.msra.gmra.mxu0 %vm2094_vm2, %v2091_v42  ;;  %5165 = vmatmul.mubr.msk.f32.vlgmr.msra.gmra.mxu1 %vm2094_vm2, %v4014_v22 }
 0x425   :  { %5174 = vmatpush3.msra.mxu0 %v6679_v51  ;;  %5201 = vmatpush3.msra.mxu1 %v6679_v51 }
 0x426   :  { %5175 = vmatprep.subr.mxu0 %v5330_v44  ;;  %5202 = vmatprep.subr.mxu1 %v5330_v44 }
 0x427   :  { %5176 = vmatpush3.msra.mxu0 %v6682_v34  ;;  %5203 = vmatpush3.msra.mxu1 %v6682_v34 }
 0x428   :  { %5177 = vmatprep.subr.mxu0 %v5330_v44  ;;  %5204 = vmatprep.subr.mxu1 %v5330_v44 }
 0x429   :  { %5178 = vmatpush3.msra.mxu0 %v2088_v32  ;;  %5205 = vmatpush3.msra.mxu1 %v2088_v32  ;;  %v2484_v32 = vld [vmem:[%s7310_s7 + $0x60] sm:$0xff] }
 0x42a   :  { %5179 = vmatprep.subr.mxu0 %v5330_v44  ;;  %5206 = vmatprep.subr.mxu1 %v5330_v44 }
 0x42b   :  { %5180 = vmatpush3.msra.mxu0 %v2087_v17  ;;  %5207 = vmatpush3.msra.mxu1 %v2087_v17 }
 0x42c   :  { %5181 = vmatprep.subr.mxu0 %v5330_v44  ;;  %5208 = vmatprep.subr.mxu1 %v5330_v44 }
 0x42d   :  { %5140 = vmatprep.mubr.msk.f32.mxu0 %vm5333_vm1, %v5330_v44  ;;  %5182 = vmatpush3.msra.mxu0 %v2086_v60 }
 0x42e   :  { %5209 = vmatpush3.msra.mxu1 %v2086_v60  ;;  %5141 = vmatmul.mubr.msk.f32.gmra.mxu0 %vm2094_vm2, %v2092_v20 }
 0x42f   :  { %5183 = vmatprep.subr.mxu0 %v5330_v44  ;;  %5210 = vmatprep.subr.mxu1 %v5330_v44 }
 0x430   :  { %5167 = vmatprep.mubr.msk.f32.mxu1 %vm5333_vm1, %v5330_v44  ;;  %5184 = vmatpush3.msra.mxu0 %v2085_v5 }
 0x431   :  { %5211 = vmatpush3.msra.mxu1 %v2085_v5  ;;  %5185 = vmatprep.subr.mxu0 %v5330_v44  ;;  %v2475_v5 = vld [vmem:[%s7310_s7 + $0x18] sm:$0xff] }
 0x432   :  { %5168 = vmatmul.mubr.msk.f32.gmra.mxu1 %vm2094_vm2, %v4015_v33  ;;  %5212 = vmatprep.subr.mxu1 %v5330_v44 }
 0x433   :  { %5143 = vmatprep.mubr.msk.f32.mxu0 %vm5333_vm1, %v5330_v44  ;;  %5186 = vmatpush3.msra.mxu0 %v2084_v21 }
 0x434   :  { %5213 = vmatpush3.msra.mxu1 %v2084_v21  ;;  %5144 = vmatmul.mubr.msk.f32.gmra.mxu0 %vm2094_vm2, %v2093_v12  ;;  %v2474_v21 = vld [vmem:[%s7310_s7 + $0x10] sm:$0xff] }
 0x435   :  { %5187 = vmatprep.subr.mxu0 %v5330_v44  ;;  %5214 = vmatprep.subr.mxu1 %v5330_v44 }
 0x436   :  { %5170 = vmatprep.mubr.msk.f32.mxu1 %vm5333_vm1, %v5330_v44  ;;  %5188 = vmatpush3.msra.mxu0 %v2083_v36 }
 0x437   :  { %5215 = vmatpush3.msra.mxu1 %v2083_v36  ;;  %5189 = vmatprep.subr.mxu0 %v5330_v44 }
 0x438   :  { %5171 = vmatmul.mubr.msk.f32.gmra.mxu1 %vm2094_vm2, %v4016_v35  ;;  %5216 = vmatprep.subr.mxu1 %v5330_v44 }
 0x439   :  { %5190 = vmatpush3.msra.mxu0 %v2082_v23  ;;  %5191 = vmatprep.mubr.msk.f32.mxu0 %vm5333_vm1, %v5330_v44 }
 0x43a   :  { %5217 = vmatpush3.msra.mxu1 %v2082_v23  ;;  %5192 = vmatmul.mubr.msk.f32.vlgmr.msra.gmra.mxu0 %vm2094_vm2, %v4020_v39 }
 0x43b   :  { %5218 = vmatprep.mubr.msk.f32.mxu1 %vm5333_vm1, %v5330_v44  ;;  %5194 = vmatprep.mubr.msk.f32.mxu0 %vm5333_vm1, %v5330_v44 }
 0x43c   :  { %5219 = vmatmul.mubr.msk.f32.vlgmr.msra.gmra.mxu1 %vm2094_vm2, %v4026_v14  ;;  %5227 = vmatprep.subr.mxu1 %v5330_v44 }
 0x43d   :  { %5221 = vmatprep.mubr.msk.f32.mxu1 %vm5333_vm1, %v5330_v44  ;;  %2525 = vmatprep.subr.mxu0 %v2488_v25 }
 0x43e   :  { %5195 = vmatmul.mubr.msk.f32.gmra.mxu0 %vm2094_vm2, %v4021_v43  ;;  %5228 = vmatpush3.msra.mxu1 %v2491_v52 }
 0x43f   :  { %5197 = vmatprep.mubr.msk.f32.mxu0 %vm5333_vm1, %v5330_v44  ;;  %2526 = vmatpush1.msra.mxu0 %v2487_v49  ;;  %v2747_v49 = vld [vmem:[%s7311_s6] sm:$0xff] }
 0x440   :  { %5222 = vmatmul.mubr.msk.f32.gmra.mxu1 %vm2094_vm2, %v4027_v28  ;;  %2527 = vmatprep.subr.mxu0 %v2483_v50 }
 0x441   :  { %5224 = vmatprep.mubr.msk.f32.mxu1 %vm5333_vm1, %v5330_v44  ;;  %5229 = vmatprep.subr.mxu1 %v5330_v44 }
 0x442   :  { %5198 = vmatmul.mubr.msk.f32.gmra.mxu0 %vm2094_vm2, %v4022_v45  ;;  %5230 = vmatpush3.msra.mxu1 %v2486_v56 }
 0x443   :  { %2565 = vmatprep.mubr.f32.mxu0 %v5330_v44  ;;  %2528 = vmatpush1.msra.mxu0 %v2482_v18 }
 0x444   :  { %5225 = vmatmul.mubr.msk.f32.gmra.mxu1 %vm2094_vm2, %v4028_v48  ;;  %2529 = vmatprep.subr.mxu0 %v2478_v55 }
 0x445   :  { %5235 = vmatprep.mubr.msk.f32.mxu1 %vm5333_vm1, %v5330_v44  ;;  %5231 = vmatprep.subr.mxu1 %v5330_v44 }
 0x446   :  { %2530 = vmatpush1.msra.mxu0 %v2477_v47  ;;  %5232 = vmatpush3.msra.mxu1 %v2481_v16 }
 0x447   :  { %2531 = vmatprep.subr.mxu0 %v2473_v31  ;;  %5233 = vmatprep.subr.mxu1 %v5330_v44 }
 0x448   :  { %2532 = vmatpush1.msra.mxu0 %v2472_v24  ;;  %5234 = vmatpush3.msra.mxu1 %v2476_v29 }
 0x449   :  { %5253 = vmatprep.subr.mxu1 %v5330_v44  ;;  %2608 = vmatprep.subr.mxu0 %v2490_v1  ;;  %v4041_v1 = vld [vmem:[%s7311_s6 + $0x8] sm:$0xff] }
 0x4e4   :  { %v2170_v26 = vpop.f32.mrf.mxu0  ;;  %v2263_v13 = vpop.f32.mrf.mxu1 }
 0x4e5   :  { %v2277_v63 = vmax.f32 %v2170_v26, %v2263_v13 }
 0x4e6   :  { %v5139_v0 = vpop.f32.mrf.mxu0  ;;  %v5166_v61 = vpop.f32.mrf.mxu1 }
 0x4e7   :  { %v4044_v61 = vld [vmem:[%s7311_s6 + $0x10] sm:$0xff] }
 0x4ee   :  { %v2175_v9 = vpop.f32.mrf.mxu0 }
 0x4f0   :  { %v5142_v7 = vpop.f32.mrf.mxu0 }
 0x4f2   :  { %v2268_v6 = vpop.f32.mrf.mxu1 }
 0x4f3   :  { %v2278_v38 = vmax.f32 %v2175_v9, %v2268_v6  ;;  %v4046_v9 = vld [vmem:[%s7311_s6 + $0x18] sm:$0xff] }
 0x4f4   :  { %v2180_v30 = vpop.f32.mrf.mxu0  ;;  %v5169_v58 = vpop.f32.mrf.mxu1 }
 0x4f5   :  { %v4048_v58 = vld [vmem:[%s7311_s6 + $0x20] sm:$0xff] }
 0x4f6   :  { %v5145_v62 = vpop.f32.mrf.mxu0 }
 0x4f7   :  { %v4050_v62 = vld [vmem:[%s7311_s6 + $0x28] sm:$0xff] }
 0x4f8   :  { %v2273_v41 = vpop.f32.mrf.mxu1 }
 0x4f9   :  { %v2279_v17 = vmax.f32 %v2180_v30, %v2273_v41 }
 0x4fa   :  { %v5172_v19 = vpop.f32.mrf.mxu1  ;;  %v2359_v2 = vpop.f32.mrf.mxu0 }
 0x4fb   :  { %v2373_v59 = vmax.f32 %v2277_v63, %v2359_v2  ;;  %v4052_v2 = vld [vmem:[%s7311_s6 + $0x30] sm:$0xff] }
 0x4fc   :  { %v5193_v15 = vpop.f32.mrf.mxu0  ;;  %v2455_v51 = vpop.f32.mrf.mxu1 }
 0x4fd   :  { %v2469_v54 = vmax.f32 %v2373_v59, %v2455_v51  ;;  %v4054_v59 = vld [vmem:[%s7311_s6 + $0x38] sm:$0xff]  ;;  %v4056_v15 = vld [vmem:[%s7311_s6 + $0x40] sm:$0xff]  ;;  %v3515_v51 = vld [vmem:[%s7312_s9 + $0xe8] sm:$0xff] }
 0x4fe   :  { %v2364_v34 = vpop.f32.mrf.mxu0  ;;  %v5220_v53 = vpop.f32.mrf.mxu1 }
 0x4ff   :  { %v2374_v3 = vmax.f32 %v2278_v38, %v2364_v34  ;;  %4032 = vmatmul.mubr.msk.f32.vlgmr.msra.gmra.mxu0 %vm249_vm0, %v2469_v54  ;;  %5236 = vmatmul.mubr.msk.f32.vlgmr.msra.gmra.mxu1 %vm249_vm0, %v2469_v54  ;;  %v3511_v34 = vld [vmem:[%s7312_s9 + $0xc8] sm:$0xff]  ;;  %v3510_v53 = vld [vmem:[%s7312_s9 + $0xc0] sm:$0xff] }
 0x500   :  { %v5196_v46 = vpop.f32.mrf.mxu0  ;;  %v2460_v10 = vpop.f32.mrf.mxu1  ;;  %2571 = vmatprep.mubr.f32.mxu0 %v5330_v44  ;;  %2609 = vmatpush1.msra.mxu0 %v2489_v11  ;;  %v3514_v11 = vld [vmem:[%s7312_s9 + $0xe0] sm:$0xff] }
 0x501   :  { %v2470_v37 = vmax.f32 %v2374_v3, %v2460_v10  ;;  %2610 = vmatprep.subr.mxu0 %v2485_v57  ;;  %5238 = vmatprep.mubr.msk.f32.mxu1 %vm5333_vm1, %v5330_v44  ;;  %v3516_v57 = vld [vmem:[%s7312_s9 + $0xf0] sm:$0xff]  ;;  %v3507_v3 = vld [vmem:[%s7312_s9 + $0xa8] sm:$0xff]  ;;  %v3509_v10 = vld [vmem:[%s7312_s9 + $0xb8] sm:$0xff] }
 0x502   :  { %v2369_v60 = vpop.f32.mrf.mxu0  ;;  %v5223_v27 = vpop.f32.mrf.mxu1  ;;  %2611 = vmatpush1.msra.mxu0 %v2484_v32  ;;  %v3513_v32 = vld [vmem:[%s7312_s9 + $0xd8] sm:$0xff]  ;;  %v3512_v46 = vld [vmem:[%s7312_s9 + $0xd0] sm:$0xff] }
 0x503   :  { %v2375_v40 = vmax.f32 %v2279_v17, %v2369_v60  ;;  %4033 = vmatmul.mubr.msk.f32.gmra.mxu0 %vm249_vm0, %v2470_v37  ;;  %2612 = vmatprep.subr.mxu0 %v2480_v4  ;;  %v3506_v4 = vld [vmem:[%s7312_s9 + $0xa0] sm:$0xff]  ;;  %v3503_v17 = vld [vmem:[%s7312_s9 + $0x88] sm:$0xff] }
 0x504   :  { %v2465_v36 = vpop.f32.mrf.mxu1  ;;  %2577 = vmatprep.mubr.f32.mxu0 %v5330_v44  ;;  %2613 = vmatpush1.msra.mxu0 %v2479_v8  ;;  %v5199_v23 = vpop.f32.mrf.mxu0  ;;  %v3505_v8 = vld [vmem:[%s7312_s9 + $0x98] sm:$0xff]  ;;  %v3502_v60 = vld [vmem:[%s7312_s9 + $0x80] sm:$0xff]  ;;  %v3499_v27 = vld [vmem:[%s7312_s9 + $0x68] sm:$0xff] }
 0x505   :  { %v2471_v42 = vmax.f32 %v2375_v40, %v2465_v36  ;;  %2614 = vmatprep.subr.mxu0 %v2475_v5  ;;  %5239 = vmatmul.mubr.msk.f32.gmra.mxu1 %vm249_vm0, %v2470_v37  ;;  %v3504_v5 = vld [vmem:[%s7312_s9 + $0x90] sm:$0xff]  ;;  %v3501_v40 = vld [vmem:[%s7312_s9 + $0x78] sm:$0xff]  ;;  %v3495_v23 = vld [vmem:[%s7312_s9 + $0x48] sm:$0xff] }
 0x506   :  { %2615 = vmatpush1.msra.mxu0 %v2474_v21  ;;  %5241 = vmatprep.mubr.msk.f32.mxu1 %vm5333_vm1, %v5330_v44  ;;  %v5226_v22 = vpop.f32.mrf.mxu1  ;;  %v3498_v21 = vld [vmem:[%s7312_s9 + $0x60] sm:$0xff]  ;;  %v3500_v36 = vld [vmem:[%s7312_s9 + $0x70] sm:$0xff] }
 0x507   :  { %4034 = vmatmul.mubr.msk.f32.gmra.mxu0 %vm249_vm0, %v2471_v42  ;;  %5244 = vmatprep.subr.mxu0 %v5330_v44  ;;  %v3494_v22 = vld [vmem:[%s7312_s9 + $0x40] sm:$0xff] }
 0x508   :  { %2648 = vmatprep.mubr.f32.mxu0 %v5330_v44 }
 0x509   :  { %5242 = vmatmul.mubr.msk.f32.gmra.mxu1 %vm249_vm0, %v2471_v42 }
 0x50a   :  { %5259 = vmatprep.mubr.msk.f32.mxu1 %vm5333_vm1, %v5330_v44 }
 0x50b   :  { %4035 = vmatmul.mubr.msk.f32.vlgmr.msra.gmra.mxu0 %vm249_vm0, %v2469_v54 }
 0x50c   :  { %2654 = vmatprep.mubr.f32.mxu0 %v5330_v44 }
 0x50f   :  { %4036 = vmatmul.mubr.msk.f32.gmra.mxu0 %vm249_vm0, %v2470_v37  ;;  %v3508_v37 = vld [vmem:[%s7312_s9 + $0xb0] sm:$0xff] }
 0x510   :  { %2660 = vmatprep.mubr.f32.mxu0 %v5330_v44 }
 0x513   :  { %4037 = vmatmul.mubr.msk.f32.gmra.mxu0 %vm249_vm0, %v2471_v42  ;;  %v3497_v42 = vld [vmem:[%s7312_s9 + $0x58] sm:$0xff] }
 0x514   :  { %5250 = vmatprep.mubr.msk.f32.mxu0 %vm5333_vm1, %v5330_v44 }
 0x5bf   :  { %v2567_v20 = vpop.f32.mrf.mxu0  ;;  %v6891_v33 = vpop.f32.mrf.mxu1 }
 0x5c1   :  { %v6893_v12 = vpop.f32.mrf.mxu0  ;;  %v5237_v35 = vpop.f32.mrf.mxu1 }
 0x5c2   :  { %v3490_v35 = vld [vmem:[%s7312_s9 + $0x20] sm:$0xff] }
 0x5c3   :  { %v2573_v39 = vpop.f32.mrf.mxu0 }
 0x5c4   :  { %2755 = vrot.lane.b32.xlu1 %v2573_v39, %s5332_s24 }
 0x5c5   :  { %v2575_v14 = vpop.f32.mrf.mxu0  ;;  %v6896_v43 = vpop.f32.mrf.mxu1 }
 0x5c7   :  { %v2579_v28 = vpop.f32.mrf.mxu0  ;;  %v5240_v45 = vpop.f32.mrf.mxu1 }
 0x5c8   :  { %2757 = vrot.lane.b32.xlu0 %v2579_v28, %s5332_s24  ;;  %5254 = vmatpush3.msra.mxu1 %v2579_v28  ;;  %v3486_v28 = vld [vmem:[%s7312_s9] sm:$0xff]  ;;  %v3488_v45 = vld [vmem:[%s7312_s9 + $0x10] sm:$0xff] }
 0x5c9   :  { %v2581_v48 = vpop.f32.mrf.mxu0  ;;  %5255 = vmatprep.subr.mxu1 %v5330_v44  ;;  %v6900_v25 = vpop.f32.mrf.mxu1 }
 0x5ca   :  { %5256 = vmatpush3.msra.mxu1 %v2573_v39  ;;  %2994 = vrot.lane.b32.xlu1 %v2581_v48, %s5332_s24  ;;  %v3492_v39 = vld [vmem:[%s7312_s9 + $0x30] sm:$0xff] }
 0x5cb   :  { %v2650_v50 = vpop.f32.mrf.mxu0  ;;  %5257 = vmatprep.subr.mxu1 %v5330_v44  ;;  %v5243_v52 = vpop.f32.mrf.mxu1 }
 0x5cc   :  { %2753 = vrot.lane.b32.xlu0 %v2567_v20, %s5332_s24  ;;  %5258 = vmatpush3.msra.mxu1 %v2567_v20  ;;  %v3496_v20 = vld [vmem:[%s7312_s9 + $0x50] sm:$0xff] }
 0x5cd   :  { %v6908_v18 = vpop.f32.mrf.mxu0  ;;  %5271 = vmatprep.subr.mxu1 %v5330_v44  ;;  %5260 = vmatmul.mubr.msk.f32.vlgmr.msra.gmra.mxu1 %vm2762_vm3, %v2747_v49 }
 0x5ce   :  { %2990 = vrot.lane.b32.xlu1 %v6893_v12, %s5332_s24  ;;  %5277 = vmatprep.mubr.msk.f32.mxu1 %vm5333_vm1, %v5330_v44 }
 0x5cf   :  { %v2656_v55 = vpop.f32.mrf.mxu0 }
 0x5d0   :  { %2992 = vrot.lane.b32.xlu0 %v2575_v14, %s5332_s24 }
 0x5d1   :  { %v6917_v56 = vpop.f32.mrf.mxu0 }
 0x5d2   :  { %3156 = vrot.lane.b32.xlu1 %v2656_v55, %s5332_s24 }
 0x5d3   :  { %v2662_v47 = vpop.f32.mrf.mxu0 }
 0x5d4   :  { %3158 = vrot.lane.b32.xlu0 %v2662_v47, %s5332_s24 }
 0x5d5   :  { %v2664_v31 = vpop.f32.mrf.mxu0 }
 0x5d6   :  { %3322 = vrot.lane.b32.xlu1 %v2664_v31, %s5332_s24 }
 0x5d8   :  { %3154 = vrot.lane.b32.xlu0 %v2650_v50, %s5332_s24 }
 0x5da   :  { %3318 = vrot.lane.b32.xlu1 %v6908_v18, %s5332_s24 }
 0x5dc   :  { %3320 = vrot.lane.b32.xlu0 %v6917_v56, %s5332_s24 }
 0x636   :  { %v2756_v16 = vpop.permute.xlu1 %2755 }
 0x63a   :  { %v2758_v24 = vpop.permute.xlu0 %2757 }
 0x63b   :  { %5245 = vmatpush3.msra.mxu0 %v2758_v24 }
 0x63c   :  { %5246 = vmatprep.subr.mxu0 %v5330_v44  ;;  %v2995_v29 = vpop.permute.xlu1 %2994 }
 0x63d   :  { %5247 = vmatpush3.msra.mxu0 %v2756_v16  ;;  %5272 = vmatpush3.msra.mxu1 %v2995_v29 }
 0x63e   :  { %5248 = vmatprep.subr.mxu0 %v5330_v44  ;;  %v2754_v26 = vpop.permute.xlu0 %2753  ;;  %5273 = vmatprep.subr.mxu1 %v5330_v44 }
 0x63f   :  { %5249 = vmatpush3.msra.mxu0 %v2754_v26 }
 0x640   :  { %5262 = vmatprep.subr.mxu0 %v5330_v44  ;;  %5251 = vmatmul.mubr.msk.f32.vlgmr.msra.gmra.mxu0 %vm2762_vm3, %v4041_v1  ;;  %v2991_v13 = vpop.permute.xlu1 %2990 }
 0x641   :  { %5263 = vmatpush3.msra.mxu0 %v2581_v48  ;;  %5268 = vmatprep.mubr.msk.f32.mxu0 %vm5333_vm1, %v5330_v44  ;;  %v3721_v48 = vld [vmem:[%s7313_s11 + $0xf8] sm:$0xff] }
 0x642   :  { %v2993_v0 = vpop.permute.xlu0 %2992  ;;  %5264 = vmatprep.subr.mxu0 %v5330_v44 }
 0x643   :  { %5265 = vmatpush3.msra.mxu0 %v2575_v14  ;;  %5274 = vmatpush3.msra.mxu1 %v2993_v0  ;;  %v3487_v14 = vld [vmem:[%s7312_s9 + $0x8] sm:$0xff] }
 0x644   :  { %5266 = vmatprep.subr.mxu0 %v5330_v44  ;;  %5275 = vmatprep.subr.mxu1 %v5330_v44  ;;  %v3157_v6 = vpop.permute.xlu1 %3156 }
 0x645   :  { %5267 = vmatpush3.msra.mxu0 %v6893_v12  ;;  %5276 = vmatpush3.msra.mxu1 %v2991_v13  ;;  %v3493_v12 = vld [vmem:[%s7312_s9 + $0x38] sm:$0xff] }
 0x646   :  { %5280 = vmatprep.subr.mxu0 %v5330_v44  ;;  %5289 = vmatprep.subr.mxu1 %v5330_v44  ;;  %v3159_v7 = vpop.permute.xlu0 %3158 }
 0x647   :  { %5269 = vmatmul.mubr.msk.f32.vlgmr.msra.gmra.mxu0 %vm2762_vm3, %v4044_v61  ;;  %5278 = vmatmul.mubr.msk.f32.vlgmr.msra.gmra.mxu1 %vm2762_vm3, %v4046_v9 }
 0x648   :  { %5281 = vmatpush3.msra.mxu0 %v2662_v47  ;;  %5290 = vmatpush3.msra.mxu1 %v3159_v7  ;;  %v3323_v41 = vpop.permute.xlu1 %3322 }
 0x649   :  { %5282 = vmatprep.subr.mxu0 %v5330_v44  ;;  %5291 = vmatprep.subr.mxu1 %v5330_v44 }
 0x64a   :  { %5283 = vmatpush3.msra.mxu0 %v2656_v55  ;;  %5292 = vmatpush3.msra.mxu1 %v3157_v6  ;;  %v3155_v30 = vpop.permute.xlu0 %3154 }
 0x64b   :  { %5293 = vmatprep.subr.mxu1 %v5330_v44  ;;  %5284 = vmatprep.subr.mxu0 %v5330_v44 }
 0x64c   :  { %5285 = vmatpush3.msra.mxu0 %v2650_v50  ;;  %5294 = vmatpush3.msra.mxu1 %v3155_v30  ;;  %v3319_v19 = vpop.permute.xlu1 %3318 }
 0x64d   :  { %5286 = vmatprep.mubr.msk.f32.mxu0 %vm5333_vm1, %v5330_v44  ;;  %5295 = vmatprep.mubr.msk.f32.mxu1 %vm5333_vm1, %v5330_v44 }
 0x64e   :  { %5298 = vmatprep.subr.mxu0 %v5330_v44  ;;  %5307 = vmatprep.subr.mxu1 %v5330_v44  ;;  %v3321_v63 = vpop.permute.xlu0 %3320 }
 0x64f   :  { %5287 = vmatmul.mubr.msk.f32.vlgmr.msra.gmra.mxu0 %vm2762_vm3, %v4048_v58  ;;  %5296 = vmatmul.mubr.msk.f32.vlgmr.msra.gmra.mxu1 %vm2762_vm3, %v4050_v62 }
 0x650   :  { %5299 = vmatpush3.msra.mxu0 %v2664_v31  ;;  %5308 = vmatpush3.msra.mxu1 %v3323_v41  ;;  %v4058_v41 = vld [vmem:[%s7314_s8] ss:$0 sm:$0xff] }
 0x651   :  { %5300 = vmatprep.subr.mxu0 %v5330_v44  ;;  %5309 = vmatprep.subr.mxu1 %v5330_v44 }
 0x652   :  { %5301 = vmatpush3.msra.mxu0 %v6917_v56  ;;  %5310 = vmatpush3.msra.mxu1 %v3321_v63 }
 0x653   :  { %5302 = vmatprep.subr.mxu0 %v5330_v44  ;;  %5311 = vmatprep.subr.mxu1 %v5330_v44 }
 0x654   :  { %5303 = vmatpush3.msra.mxu0 %v6908_v18  ;;  %5312 = vmatpush3.msra.mxu1 %v3319_v19 }
 0x655   :  { %5304 = vmatprep.mubr.msk.f32.mxu0 %vm5333_vm1, %v5330_v44  ;;  %5316 = vmatprep.subr.mxu0 %v5330_v44 }
 0x656   :  { %5305 = vmatmul.mubr.msk.f32.vlgmr.msra.gmra.mxu0 %vm2762_vm3, %v4052_v2  ;;  %5313 = vmatprep.mubr.msk.f32.mxu1 %vm5333_vm1, %v5330_v44 }
 0x657   :  { %5317 = vmatpush3.msra.mxu0 %v6900_v25  ;;  %5314 = vmatmul.mubr.msk.f32.vlgmr.msra.gmra.mxu1 %vm2762_vm3, %v4054_v59  ;;  %v3753_v25 = vld [vmem:[%s7313_s11 + $0x1f8] sm:$0xff] }
 0x658   :  { %5318 = vmatprep.subr.mxu0 %v5330_v44  ;;  %5322 = vmatprep.mubr.msk.f32.mxu0 %vm5333_vm1, %v5330_v44 }
 0x659   :  { %5319 = vmatpush3.msra.mxu0 %v6896_v43  ;;  %3608 = vmatprep.mubr.f32.mxu1 %v5330_v44  ;;  %v3489_v43 = vld [vmem:[%s7312_s9 + $0x18] sm:$0xff] }
 0x65a   :  { %5320 = vmatprep.subr.mxu0 %v5330_v44  ;;  %3560 = vmatprep.subr.mxu1 %v3515_v51  ;;  %v3737_v51 = vld [vmem:[%s7313_s11 + $0x178] sm:$0xff] }
 0x65b   :  { %5321 = vmatpush3.msra.mxu0 %v6891_v33  ;;  %3561 = vmatpush1.msra.mxu1 %v3514_v11  ;;  %v3491_v33 = vld [vmem:[%s7312_s9 + $0x28] sm:$0xff]  ;;  %v3704_v11 = vld [vmem:[%s7313_s11 + $0x70] sm:$0xff] }
 0x65c   :  { %5323 = vmatmul.mubr.msk.f32.vlgmr.msra.gmra.mxu0 %vm2762_vm3, %v4056_v15  ;;  %3562 = vmatprep.subr.mxu1 %v3511_v34  ;;  %v3705_v15 = vld [vmem:[%s7313_s11 + $0x78] sm:$0xff]  ;;  %v3736_v34 = vld [vmem:[%s7313_s11 + $0x170] sm:$0xff] }
 0x65d   :  { %3679 = vmatprep.mubr.f32.mxu0 %v5330_v44  ;;  %v3517_v44 = vld [vmem:[%s7312_s9 + $0xf8] sm:$0xff]  ;;  %3563 = vmatpush1.msra.mxu1 %v3510_v53  ;;  %v3751_v53 = vld [vmem:[%s7313_s11 + $0x1e8] sm:$0xff] }
 0x65e   :  { %3631 = vmatprep.subr.mxu0 %v3517_v44  ;;  %3564 = vmatprep.subr.mxu1 %v3507_v3  ;;  %v3719_v44 = vld [vmem:[%s7313_s11 + $0xe8] sm:$0xff] }
 0x65f   :  { %3632 = vmatpush1.msra.mxu0 %v3516_v57  ;;  %3565 = vmatpush1.msra.mxu1 %v3506_v4  ;;  %v3703_v57 = vld [vmem:[%s7313_s11 + $0x68] sm:$0xff]  ;;  %v3734_v4 = vld [vmem:[%s7313_s11 + $0x160] sm:$0xff] }
 0x660   :  { %3633 = vmatprep.subr.mxu0 %v3513_v32  ;;  %3566 = vmatprep.subr.mxu1 %v3503_v17  ;;  %v3735_v3 = vld [vmem:[%s7313_s11 + $0x168] sm:$0xff]  ;;  %v3718_v32 = vld [vmem:[%s7313_s11 + $0xe0] sm:$0xff]  ;;  %v3717_v17 = vld [vmem:[%s7313_s11 + $0xd8] sm:$0xff] }
 0x661   :  { %3634 = vmatpush1.msra.mxu0 %v3512_v46  ;;  %3567 = vmatpush1.msra.mxu1 %v3502_v60  ;;  %v3750_v46 = vld [vmem:[%s7313_s11 + $0x1e0] sm:$0xff]  ;;  %v3733_v60 = vld [vmem:[%s7313_s11 + $0x158] sm:$0xff] }
 0x662   :  { %3635 = vmatprep.subr.mxu0 %v3509_v10  ;;  %3568 = vmatprep.subr.mxu1 %v3499_v27  ;;  %v3702_v10 = vld [vmem:[%s7313_s11 + $0x60] sm:$0xff]  ;;  %v3716_v27 = vld [vmem:[%s7313_s11 + $0xd0] sm:$0xff] }
 0x663   :  { %3636 = vmatpush1.msra.mxu0 %v3508_v37  ;;  %3569 = vmatpush1.msra.mxu1 %v3498_v21  ;;  %v3749_v37 = vld [vmem:[%s7313_s11 + $0x1d8] sm:$0xff]  ;;  %v3732_v21 = vld [vmem:[%s7313_s11 + $0x150] sm:$0xff] }
 0x664   :  { %3637 = vmatprep.subr.mxu0 %v3505_v8  ;;  %3570 = vmatprep.subr.mxu1 %v3495_v23  ;;  %v3701_v8 = vld [vmem:[%s7313_s11 + $0x58] sm:$0xff]  ;;  %v3747_v23 = vld [vmem:[%s7313_s11 + $0x1c8] sm:$0xff] }
 0x665   :  { %3638 = vmatpush1.msra.mxu0 %v3504_v5  ;;  %3571 = vmatpush1.msra.mxu1 %v3494_v22  ;;  %v3748_v5 = vld [vmem:[%s7313_s11 + $0x1d0] sm:$0xff]  ;;  %v3731_v22 = vld [vmem:[%s7313_s11 + $0x148] sm:$0xff] }
 0x666   :  { %3639 = vmatprep.subr.mxu0 %v3501_v40  ;;  %3572 = vmatprep.subr.mxu1 %v3491_v33  ;;  %v3700_v40 = vld [vmem:[%s7313_s11 + $0x50] sm:$0xff]  ;;  %v3746_v33 = vld [vmem:[%s7313_s11 + $0x1c0] sm:$0xff] }
 0x667   :  { %3640 = vmatpush1.msra.mxu0 %v3500_v36  ;;  %3573 = vmatpush1.msra.mxu1 %v3490_v35  ;;  %v3715_v36 = vld [vmem:[%s7313_s11 + $0xc8] sm:$0xff]  ;;  %v3730_v35 = vld [vmem:[%s7313_s11 + $0x140] sm:$0xff] }
 0x668   :  { %3641 = vmatprep.subr.mxu0 %v3497_v42  ;;  %3574 = vmatprep.subr.mxu1 %v3487_v14  ;;  %v3699_v42 = vld [vmem:[%s7313_s11 + $0x48] sm:$0xff]  ;;  %v3745_v14 = vld [vmem:[%s7313_s11 + $0x1b8] sm:$0xff] }
 0x669   :  { %3642 = vmatpush1.msra.mxu0 %v3496_v20  ;;  %3575 = vmatpush1.msra.mxu1 %v3486_v28  ;;  %v3714_v20 = vld [vmem:[%s7313_s11 + $0xc0] sm:$0xff]  ;;  %v3729_v28 = vld [vmem:[%s7313_s11 + $0x138] sm:$0xff] }
 0x66a   :  { %3643 = vmatprep.subr.mxu0 %v3493_v12  ;;  %4430 = vmatprep.subr.mxu1 %v3721_v48  ;;  %v3698_v12 = vld [vmem:[%s7313_s11 + $0x40] sm:$0xff]  ;;  %v3744_v48 = vld [vmem:[%s7313_s11 + $0x1b0] sm:$0xff] }
 0x66b   :  { %3644 = vmatpush1.msra.mxu0 %v3492_v39  ;;  %v3713_v39 = vld [vmem:[%s7313_s11 + $0xb8] sm:$0xff] }
 0x66c   :  { %3645 = vmatprep.subr.mxu0 %v3489_v43  ;;  %v3697_v43 = vld [vmem:[%s7313_s11 + $0x38] sm:$0xff] }
 0x66d   :  { %3646 = vmatpush1.msra.mxu0 %v3488_v45  ;;  %v3712_v45 = vld [vmem:[%s7313_s11 + $0xb0] sm:$0xff] }
 0x66e   :  { %4465 = vmatprep.subr.mxu0 %v3753_v25  ;;  %v3696_v25 = vld [vmem:[%s7313_s11 + $0x30] sm:$0xff] }
 0x68d   :  { %v7004_v38 = vpop.f32.mrf.mxu1 }
 0x68f   :  { %v5261_v54 = vpop.f32.mrf.mxu1 }
 0x690   :  { %v3752_v54 = vld [vmem:[%s7313_s11 + $0x1f0] sm:$0xff] }
 0x700   :  { %v2832_v49 = vpop.f32.mrf.mxu0 }
 0x701   :  { %v2906_v55 = vadd.f32 %v7004_v38, %v2832_v49  ;;  %v3720_v38 = vld [vmem:[%s7313_s11 + $0xf0] sm:$0xff] }
 0x702   :  { %v5252_v50 = vpop.f32.mrf.mxu0  ;;  %v3728_v49 = vld [vmem:[%s7313_s11 + $0x130] sm:$0xff] }
 0x703   :  { %v3711_v50 = vld [vmem:[%s7313_s11 + $0xa8] sm:$0xff] }
 0x707   :  { %v2980_v52 = vpop.f32.mrf.mxu0  ;;  %v3068_v18 = vpop.f32.mrf.mxu1 }
 0x708   :  { %v2984_v31 = vadd.f32 %v2980_v52, %v2906_v55  ;;  %v3743_v52 = vld [vmem:[%s7313_s11 + $0x1a8] sm:$0xff] }
 0x709   :  { %v5270_v56 = vpop.f32.mrf.mxu0  ;;  %v5279_v47 = vpop.f32.mrf.mxu1  ;;  %v3727_v55 = vld [vmem:[%s7313_s11 + $0x128] sm:$0xff] }
 0x70a   :  { %v3072_v16 = vadd.f32 %v3068_v18, %v2984_v31  ;;  %v3695_v18 = vld [vmem:[%s7313_s11 + $0x28] sm:$0xff]  ;;  %v3710_v56 = vld [vmem:[%s7313_s11 + $0xa0] sm:$0xff] }
 0x70b   :  { %v3694_v47 = vld [vmem:[%s7313_s11 + $0x20] sm:$0xff] }
 0x70c   :  { %v3742_v31 = vld [vmem:[%s7313_s11 + $0x1a0] sm:$0xff] }
 0x70f   :  { %v3144_v24 = vpop.f32.mrf.mxu0  ;;  %v3232_v29 = vpop.f32.mrf.mxu1 }
 0x710   :  { %v3148_v1 = vadd.f32 %v3144_v24, %v3072_v16  ;;  %v3726_v16 = vld [vmem:[%s7313_s11 + $0x120] sm:$0xff]  ;;  %v3709_v24 = vld [vmem:[%s7313_s11 + $0x98] sm:$0xff] }
 0x711   :  { %v5288_v26 = vpop.f32.mrf.mxu0  ;;  %v5297_v13 = vpop.f32.mrf.mxu1 }
 0x712   :  { %v3236_v0 = vadd.f32 %v3232_v29, %v3148_v1  ;;  %v3741_v29 = vld [vmem:[%s7313_s11 + $0x198] sm:$0xff]  ;;  %v3708_v13 = vld [vmem:[%s7313_s11 + $0x90] sm:$0xff] }
 0x713   :  { %v3693_v1 = vld [vmem:[%s7313_s11 + $0x18] sm:$0xff] }
 0x714   :  { %v3725_v26 = vld [vmem:[%s7313_s11 + $0x118] sm:$0xff] }
 0x716   :  { %v3308_v61 = vpop.f32.mrf.mxu0 }
 0x717   :  { %v3312_v9 = vadd.f32 %v3308_v61, %v3236_v0  ;;  %v3396_v7 = vpop.f32.mrf.mxu1  ;;  %v3740_v0 = vld [vmem:[%s7313_s11 + $0x190] sm:$0xff] }
 0x718   :  { %v5306_v6 = vpop.f32.mrf.mxu0  ;;  %v3692_v61 = vld [vmem:[%s7313_s11 + $0x10] sm:$0xff] }
 0x719   :  { %v5315_v30 = vpop.f32.mrf.mxu1  ;;  %v3400_v58 = vadd.f32 %v3396_v7, %v3312_v9  ;;  %v3724_v9 = vld [vmem:[%s7313_s11 + $0x110] sm:$0xff]  ;;  %v3707_v7 = vld [vmem:[%s7313_s11 + $0x88] sm:$0xff] }
 0x71a   :  { %v3739_v6 = vld [vmem:[%s7313_s11 + $0x188] sm:$0xff] }
 0x71b   :  { %v3691_v30 = vld [vmem:[%s7313_s11 + $0x8] sm:$0xff] }
 0x71c   :  { %v3472_v62 = vpop.f32.mrf.mxu0 }
 0x71d   :  { %v3476_v63 = vadd.f32 %v3472_v62, %v3400_v58  ;;  %v3723_v58 = vld [vmem:[%s7313_s11 + $0x108] sm:$0xff]  ;;  %v3706_v62 = vld [vmem:[%s7313_s11 + $0x80] sm:$0xff] }
 0x71e   :  { %v5324_v19 = vpop.f32.mrf.mxu0 }
 0x71f   :  { %v3484_v2 = vadd.f32 %v4058_v41, %v3476_v63  ;;  %v3690_v41 = vld [vmem:[%s7313_s11] sm:$0xff] }
 0x720   :  { %v3738_v63 = vld [vmem:[%s7313_s11 + $0x180] sm:$0xff] }
 0x721   :  { %v3485_v59 = vmax.f32 %v3484_v2, 0.0  ;;  %v3722_v19 = vld [vmem:[%s7313_s11 + $0x100] sm:$0xff]  ;;  %v3520_v2 = vlaneseq }
 0x723   :  { %4059 = vmatmul.mubr.msk.f32.vlgmr.msra.gmra.mxu1 %vm3540_vm4, %v3485_v59  ;;  %4060 = vmatmul.mubr.msk.f32.vlgmr.msra.gmra.mxu0 %vm3540_vm4, %v3485_v59  ;;  %v3521_v59 = vshrl.u32 %v3520_v2, 7 }
 0x724   :  { %4431 = vmatpush3.msra.mxu1 %v3705_v15  ;;  %4466 = vmatpush3.msra.mxu0 %v3737_v51 }
 0x725   :  { %4432 = vmatprep.subr.mxu1 %v3720_v38  ;;  %4467 = vmatprep.subr.mxu0 %v3752_v54  ;;  %v3522_v15 = vsub.s32 0, %v3521_v59  ;;  %v3530_v51 = vsub.s32 2, %v3521_v59  ;;  %v3518_v38 = vld [vmem:[%s7315_s10] sm:$0xf]  ;;  %v3526_v54 = vsub.s32 1, %v3521_v59 }
 0x726   :  { %4433 = vmatpush3.msra.mxu1 %v3704_v11  ;;  %4468 = vmatpush3.msra.mxu0 %v3736_v34  ;;  %v3534_v11 = vsub.s32 3, %v3521_v59 }
 0x727   :  { %4434 = vmatprep.subr.mxu1 %v3719_v44  ;;  %4469 = vmatprep.subr.mxu0 %v3751_v53  ;;  %v3523_v34 = vrot.slane %v3518_v38, %v3522_v15  ;;  %v3531_v44 = vrot.slane %v3518_v38, %v3530_v51  ;;  %v3527_v53 = vrot.slane %v3518_v38, %v3526_v54 }
 0x728   :  { %4435 = vmatpush3.msra.mxu1 %v3703_v57  ;;  %4470 = vmatpush3.msra.mxu0 %v3735_v3  ;;  %v3535_v57 = vrot.slane %v3518_v38, %v3534_v11 }
 0x729   :  { %4436 = vmatprep.subr.mxu1 %v3718_v32  ;;  %4471 = vmatprep.subr.mxu0 %v3750_v46 }
 0x72a   :  { %4437 = vmatpush3.msra.mxu1 %v3702_v10  ;;  %4472 = vmatpush3.msra.mxu0 %v3734_v4 }
 0x72b   :  { %4438 = vmatprep.subr.mxu1 %v3717_v17  ;;  %4473 = vmatprep.subr.mxu0 %v3749_v37 }
 0x72c   :  { %4439 = vmatpush3.msra.mxu1 %v3701_v8  ;;  %4474 = vmatpush3.msra.mxu0 %v3733_v60 }
 0x72d   :  { %4440 = vmatprep.subr.mxu1 %v3716_v27  ;;  %4475 = vmatprep.subr.mxu0 %v3748_v5 }
 0x72e   :  { %4441 = vmatpush3.msra.mxu1 %v3700_v40  ;;  %4476 = vmatpush3.msra.mxu0 %v3732_v21 }
 0x72f   :  { %4442 = vmatprep.subr.mxu1 %v3715_v36  ;;  %4477 = vmatprep.subr.mxu0 %v3747_v23  ;;  %v4061_v23 = vld [vmem:[%s7316_s12] ss:$0 sm:$0xff] }
 0x730   :  { %4443 = vmatpush3.msra.mxu1 %v3699_v42  ;;  %4478 = vmatpush3.msra.mxu0 %v3731_v22 }
 0x731   :  { %4444 = vmatprep.subr.mxu1 %v3714_v20  ;;  %4479 = vmatprep.subr.mxu0 %v3746_v33 }
 0x732   :  { %4445 = vmatpush3.msra.mxu1 %v3698_v12  ;;  %4480 = vmatpush3.msra.mxu0 %v3730_v35 }
 0x733   :  { %4446 = vmatprep.subr.mxu1 %v3713_v39  ;;  %4481 = vmatprep.subr.mxu0 %v3745_v14 }
 0x734   :  { %4447 = vmatpush3.msra.mxu1 %v3697_v43  ;;  %4482 = vmatpush3.msra.mxu0 %v3729_v28 }
 0x735   :  { %4448 = vmatprep.subr.mxu1 %v3712_v45  ;;  %4483 = vmatprep.subr.mxu0 %v3744_v48 }
 0x736   :  { %4449 = vmatpush3.msra.mxu1 %v3696_v25  ;;  %4484 = vmatpush3.msra.mxu0 %v3728_v49 }
 0x737   :  { %4450 = vmatprep.subr.mxu1 %v3711_v50  ;;  %4485 = vmatprep.subr.mxu0 %v3743_v52 }
 0x738   :  { %4451 = vmatpush3.msra.mxu1 %v3695_v18  ;;  %4486 = vmatpush3.msra.mxu0 %v3727_v55 }
 0x739   :  { %4452 = vmatprep.subr.mxu1 %v3710_v56  ;;  %4487 = vmatprep.subr.mxu0 %v3742_v31 }
 0x73a   :  { %4453 = vmatpush3.msra.mxu1 %v3694_v47  ;;  %4488 = vmatpush3.msra.mxu0 %v3726_v16 }
 0x73b   :  { %4454 = vmatprep.subr.mxu1 %v3709_v24  ;;  %4489 = vmatprep.subr.mxu0 %v3741_v29 }
 0x73c   :  { %4455 = vmatpush3.msra.mxu1 %v3693_v1  ;;  %4490 = vmatpush3.msra.mxu0 %v3725_v26 }
 0x73d   :  { %4456 = vmatprep.subr.mxu1 %v3708_v13  ;;  %4491 = vmatprep.subr.mxu0 %v3740_v0 }
 0x73e   :  { %4457 = vmatpush3.msra.mxu1 %v3692_v61  ;;  %4492 = vmatpush3.msra.mxu0 %v3724_v9 }
 0x73f   :  { %4458 = vmatprep.subr.mxu1 %v3707_v7  ;;  %4493 = vmatprep.subr.mxu0 %v3739_v6 }
 0x740   :  { %4459 = vmatpush3.msra.mxu1 %v3691_v30  ;;  %4494 = vmatpush3.msra.mxu0 %v3723_v58 }
 0x741   :  { %4460 = vmatprep.subr.mxu1 %v3706_v62  ;;  %4495 = vmatprep.subr.mxu0 %v3738_v63 }
 0x742   :  { %4461 = vmatpush3.msra.mxu1 %v3690_v41  ;;  %4496 = vmatpush3.msra.mxu0 %v3722_v19 }
 0x7e3   :  { %v3610_v3 = vpop.f32.mrf.mxu1  ;;  %v3681_v32 = vpop.f32.mrf.mxu0 }
 0x7e4   :  { %v3611_v46 = vadd.f32 %v3610_v3, %v3523_v34  ;;  %v3682_v4 = vadd.f32 %v3681_v32, %v3531_v44 }
 0x7e5   :  { %v3612_v10 = vpop.f32.mrf.mxu1  ;;  %v3683_v17 = vpop.f32.mrf.mxu0 }
 0x7e6   :  { %v3613_v37 = vadd.f32 %v3612_v10, %v3527_v53  ;;  %v3684_v8 = vadd.f32 %v3683_v17, %v3535_v57  ;;  %v3686_v5 = vmax.f32 %v3611_v46, 0.0  ;;  %v3688_v40 = vmax.f32 %v3682_v4, 0.0 }
 0x7e8   :  { %v3687_v60 = vmax.f32 %v3613_v37, 0.0  ;;  %v3689_v27 = vmax.f32 %v3684_v8, 0.0 }
 0x7ea   :  { %3825 = vmatprep.mubr.f32.mxu1 %v3687_v60  ;;  %3895 = vmatprep.mubr.f32.mxu0 %v3689_v27 }
 0x7eb   :  { %3826 = vmatmul.mubr.f32.vlgmr.msra.gmra.mxu1 %v3686_v5  ;;  %3896 = vmatmul.mubr.f32.vlgmr.msra.gmra.mxu0 %v3688_v40 }
 0x8ab   :  { %v4462_v21 = vpop.f32.mrf.mxu1  ;;  %v4497_v36 = vpop.f32.mrf.mxu0 }
 0x8ad   :  { %v4463_v42 = vpop.f32.mrf.mxu1  ;;  %v4498_v22 = vpop.f32.mrf.mxu0 }
 0x8ae   :  { %v4464_v20 = vadd.f32 %v4463_v42, %v4462_v21  ;;  %v4499_v12 = vadd.f32 %v4498_v22, %v4497_v36 }
 0x8b0   :  { %v3828_v33 = vadd.f32 %v4464_v20, %v4061_v23 }
 0x8b2   :  { %v3898_v35 = vadd.f32 %v4499_v12, %v3828_v33 }
 0x8b4   :  { %3901 = vst [vmem:[%s7317_s13] sm:$0xff] %v3898_v35 }

</bundles_post_ra>
